<compile_context>
chip_gen: v7x
topology: tpu7x:2x2x1
jax: 0.10.0
libtpu: 0.0.40
codegen_flags: <defaults>
</compile_context>

<pallas_src>
import functools

import numpy as np
import jax
import jax.numpy as jnp
from jax.experimental import pallas as pl
from jax.experimental.pallas import tpu as pltpu


def _round_up(x, m):
    return (x + m - 1) // m * m


def _vmem_limit_bytes():
    # v7x has 64 MiB VMEM per TensorCore, v5e/v6e have 128 MiB.  Ask for 3/4
    # of physical (capped at 96 MiB); fall back to a v7x-safe 48 MiB.
    try:
        cap = int(pltpu.get_tpu_info().vmem_capacity_bytes)
        return int(min(cap * 3 // 4, 96 << 20))
    except Exception:
        return 48 << 20


# ----------------------------------------------------------------------------
# Kernel 1: depthwise conv + bias, in-kernel halo padding, row-chunked
# accumulation, packed partial BatchNorm statistics.
# ----------------------------------------------------------------------------
def _dw_conv_kernel(x_ref, wdw_ref, bdw_ref, y_ref, stats_ref, xpad_ref, *,
                    ksize, stride, padding, h_out, w_out, th_chunk):
    # x_ref:     (Bt, H, W, Cin)           unpadded input block
    # xpad_ref:  (Bt, Hp, Wp_pad, Cin) f32 zero-padded VMEM scratch (persistent)
    # y_ref:     (Bt, H_out, W_out, Cin)   conv output (f32 or bf16)
    # stats_ref: (1, 1, 2*Cin)             [sum(y) | sum((y-b)^2)] for this step
    bt, hp, wp_pad, cin = xpad_ref.shape
    h, w = x_ref.shape[1], x_ref.shape[2]
    w_keep = stride * (w_out - 1) + 1
    f32 = jnp.float32

    # ---- halo-only zeroing (padding rows/cols + W alignment tail). --------
    # The interior is overwritten below every step; the halo is tiny, so we
    # re-zero it each step rather than gating on program_id == 0 (which would
    # be wrong on the core that starts at a non-zero step under megacore).
    if padding > 0:
        xpad_ref[:, 0:padding, :, :] = jnp.zeros((bt, padding, wp_pad, cin), f32)
        xpad_ref[:, padding + h:hp, :, :] = jnp.zeros(
            (bt, hp - padding - h, wp_pad, cin), f32)
        xpad_ref[:, padding:padding + h, 0:padding, :] = jnp.zeros(
            (bt, h, padding, cin), f32)
    if wp_pad > padding + w:
        xpad_ref[:, padding:padding + h, padding + w:wp_pad, :] = jnp.zeros(
            (bt, h, wp_pad - padding - w, cin), f32)

    # ---- interior copy (cast to f32). --------------------------------------
    xpad_ref[:, padding:padding + h, padding:padding + w, :] = (
        x_ref[...].astype(f32))

    wdw = wdw_ref[...].astype(f32)          # (K, K, Cin)
    bdw = bdw_ref[...].astype(f32)          # (1, Cin)

    def conv_rows(r0, th, s_acc, q_acc):
        # Depthwise conv for output rows [r0, r0+th); th is a Python int so
        # acc and the tap slabs stay small, vreg-resident tiles.
        acc = None
        for kh in range(ksize):
            if stride == 1:
                rows = pl.ds(r0 + kh, th)
            else:
                rows = pl.ds(r0 * stride + kh, th, stride)   # stride at the slice
            xr = xpad_ref[:, rows, :, :]                     # (bt, th, Wp_pad, Cin)
            for kw in range(ksize):
                # Shift W (sublane axis) left by kw on the XLU; wrapped
                # columns land beyond w_keep and are cropped below.
                xs = xr if kw == 0 else pltpu.roll(xr, wp_pad - kw, axis=2)
                tap = xs * wdw[kh, kw, :]
                # Depthwise bias folded into the first tap: no extra pass.
                acc = tap + bdw if acc is None else acc + tap
        # Crop (and decimate when stride > 1) the W axis once per chunk.
        if stride == 1:
            y = acc[:, :, :w_out, :]
        else:
            y = acc[:, :, :w_keep:stride, :]
        y_ref[:, pl.ds(r0, th), :, :] = y.astype(y_ref.dtype)

        # Partial BatchNorm statistics on the f32 values (before any bf16
        # cast).  Sum-of-squares is centered on the depthwise bias to avoid
        # E[y^2]-E[y]^2 cancellation.
        s_acc = s_acc + jnp.sum(y, axis=(0, 1, 2)).reshape(1, cin)
        yc = y - bdw
        q_acc = q_acc + jnp.sum(yc * yc, axis=(0, 1, 2)).reshape(1, cin)
        return s_acc, q_acc

    s_acc = jnp.zeros((1, cin), f32)
    q_acc = jnp.zeros((1, cin), f32)
    n_full = h_out // th_chunk
    rem = h_out - n_full * th_chunk

    if n_full == 1:
        s_acc, q_acc = conv_rows(0, th_chunk, s_acc, q_acc)
    elif n_full > 1:
        def body(i, carry):
            return conv_rows(i * th_chunk, th_chunk, *carry)
        s_acc, q_acc = jax.lax.fori_loop(0, n_full, body, (s_acc, q_acc),
                                         unroll=n_full <= 4)
    if rem > 0:
        s_acc, q_acc = conv_rows(n_full * th_chunk, rem, s_acc, q_acc)

    # One packed, lane-dense stats store per grid step.
    stats_ref[...] = jnp.concatenate([s_acc, q_acc], axis=-1).reshape(
        1, 1, 2 * cin)


# ----------------------------------------------------------------------------
# Kernel 2: pointwise 1x1 conv with BatchNorm pre-folded into weights/bias.
# One flattened matmul over M = N*H_out*W_out rows, tiled by TM.
# ----------------------------------------------------------------------------
def _pw_conv_kernel(y_ref, w_ref, b_ref, o_ref):
    out = jnp.dot(y_ref[...], w_ref[...], preferred_element_type=jnp.float32)
    o_ref[...] = (out + b_ref[...]).astype(o_ref.dtype)


def depthwise_conv2d_forward(x_nchw, params, *, kernel_size, padding, stride,
                             eps=1e-5, interm_dtype=jnp.bfloat16):
    N, Cin, H, W = x_nchw.shape
    Cout = params["w_pw"].shape[1]
    K = kernel_size

    Hp, Wp = H + 2 * padding, W + 2 * padding
    H_out = (Hp - K) // stride + 1
    W_out = (Wp - K) // stride + 1
    Wp_pad = _round_up(Wp, 8)                      # sublane-aligned padded W
    interm_bytes = np.dtype(interm_dtype).itemsize
    vmem_limit = _vmem_limit_bytes()

    # NCHW -> NHWC (channels on lanes).  Padding / f32 cast happen in-kernel.
    x = jnp.transpose(x_nchw, (0, 2, 3, 1))

    # --- batch-block size: VMEM-budget driven.  Inputs/outputs are double-
    # buffered by the pipeline, the pad scratch is persistent.  Prefer >= 2
    # grid steps so the pipeline / second TensorCore (v7x) have work.
    per_img = (2 * H * W * Cin * x.dtype.itemsize
               + Hp * Wp_pad * Cin * 4
               + 2 * H_out * W_out * Cin * interm_bytes)
    budget = 12 << 20
    bt = 1
    for cand in range(N, 0, -1):
        if N % cand == 0 and cand * per_img <= budget:
            bt = cand
            break
    if N // bt < 2 and N > 1:
        for cand in range(bt - 1, 0, -1):
            if N % cand == 0 and cand * per_img <= budget:
                bt = cand
                break
    nb = N // bt

    # Rows per inner accumulation chunk: keep each slab around <= 16 vregs.
    row_bytes = bt * Wp_pad * Cin * 4
    th_chunk = max(1, min(H_out, (64 * 1024) // max(row_bytes, 1)))

    wdw = params["w_dw"]                           # (K, K, Cin)
    bdw = params["b_dw"].reshape(1, Cin)

    dw_kernel = functools.partial(
        _dw_conv_kernel, ksize=K, stride=stride, padding=padding,
        h_out=H_out, w_out=W_out, th_chunk=th_chunk)
    dw_cost = pl.CostEstimate(
        flops=2 * N * H_out * W_out * Cin * (K * K + 2),
        transcendentals=0,
        bytes_accessed=int(N * H * W * Cin * x.dtype.itemsize
                           + N * H_out * W_out * Cin * interm_bytes
                           + nb * 2 * Cin * 4))
    y1, stats = pl.pallas_call(
        dw_kernel,
        out_shape=(
            jax.ShapeDtypeStruct((N, H_out, W_out, Cin), interm_dtype),
            jax.ShapeDtypeStruct((nb, 1, 2 * Cin), jnp.float32),
        ),
        grid=(nb,),
        in_specs=[
            pl.BlockSpec((bt, H, W, Cin), lambda n: (n, 0, 0, 0)),
            pl.BlockSpec((K, K, Cin), lambda n: (0, 0, 0)),
            pl.BlockSpec((1, Cin), lambda n: (0, 0)),
        ],
        out_specs=(
            pl.BlockSpec((bt, H_out, W_out, Cin), lambda n: (n, 0, 0, 0)),
            pl.BlockSpec((1, 1, 2 * Cin), lambda n: (n, 0, 0)),
        ),
        scratch_shapes=[pltpu.VMEM((bt, Hp, Wp_pad, Cin), jnp.float32)],
        compiler_params=pltpu.CompilerParams(
            dimension_semantics=("parallel",),
            vmem_limit_bytes=vmem_limit),
        cost_estimate=dw_cost,
    )(x, wdw, bdw)

    # --- train-mode BatchNorm2d statistics (biased variance), folded into the
    # pointwise weights so kernel 2 is a pure matmul + bias.
    count = N * H_out * W_out
    s = jnp.sum(stats[:, 0, :Cin], axis=0)
    q = jnp.sum(stats[:, 0, Cin:], axis=0)
    mean = s / count
    mean_c = mean - params["b_dw"]                 # bias-centered mean
    var = jnp.maximum(q / count - mean_c * mean_c, 0.0)
    scale = params["bn_gamma"] * jax.lax.rsqrt(var + eps)
    shift = params["bn_beta"] - mean * scale
    w_eff = (scale[:, None] * params["w_pw"]).astype(interm_dtype)   # (Cin, Cout)
    b_eff = (shift @ params["w_pw"] + params["b_pw"]).reshape(1, Cout)
    b_eff = b_eff.astype(jnp.float32)

    # --- pointwise 1x1 conv as one flattened, row-tiled MXU matmul.
    M = N * H_out * W_out
    row_out_bytes = Cin * interm_bytes + Cout * 4
    tm_cap = max(1024, min((3 << 20) // max(row_out_bytes, 1), 8192))
    TM = min(_round_up(M, 8), _round_up(tm_cap, 8))
    y1_flat = y1.reshape(M, Cin)                   # last dim unchanged
    pw_cost = pl.CostEstimate(
        flops=2 * M * Cin * Cout,
        transcendentals=0,
        bytes_accessed=int(M * Cin * interm_bytes + Cin * Cout * interm_bytes
                           + M * Cout * 4 + Cout * 4))
    out_flat = pl.pallas_call(
        _pw_conv_kernel,
        out_shape=jax.ShapeDtypeStruct((M, Cout), jnp.float32),
        grid=(pl.cdiv(M, TM),),
        in_specs=[
            pl.BlockSpec((TM, Cin), lambda m: (m, 0)),
            pl.BlockSpec((Cin, Cout), lambda m: (0, 0)),
            pl.BlockSpec((1, Cout), lambda m: (0, 0)),
        ],
        out_specs=pl.BlockSpec((TM, Cout), lambda m: (m, 0)),
        compiler_params=pltpu.CompilerParams(
            dimension_semantics=("parallel",),
            vmem_limit_bytes=vmem_limit),
        cost_estimate=pw_cost,
    )(y1_flat, w_eff, b_eff)

    out = out_flat.reshape(N, H_out, W_out, Cout)
    return jnp.transpose(out, (0, 3, 1, 2))        # back to NCHW


# Pure-JAX reference (mirrors the PyTorch module in its default training mode).
def _reference(x_nchw, params, *, kernel_size, padding, stride, eps=1e-5):
    Cin = x_nchw.shape[1]
    w_dw = jnp.transpose(params["w_dw"], (2, 0, 1))[:, None]        # (Cin,1,K,K)
    y = jax.lax.conv_general_dilated(
        x_nchw, w_dw, window_strides=(stride, stride),
        padding=[(padding, padding), (padding, padding)],
        feature_group_count=Cin,
        dimension_numbers=("NCHW", "OIHW", "NCHW"))
    y = y + params["b_dw"][None, :, None, None]
    mean = jnp.mean(y, axis=(0, 2, 3))
    var = jnp.var(y, axis=(0, 2, 3))                                # biased
    y = (y - mean[None, :, None, None]) / jnp.sqrt(var + eps)[None, :, None, None]
    y = y * params["bn_gamma"][None, :, None, None] + params["bn_beta"][None, :, None, None]
    w_pw = jnp.transpose(params["w_pw"], (1, 0))[:, :, None, None]  # (Cout,Cin,1,1)
    out = jax.lax.conv_general_dilated(
        y, w_pw, window_strides=(1, 1), padding="VALID",
        dimension_numbers=("NCHW", "OIHW", "NCHW"))
    return out + params["b_pw"][None, :, None, None]


if __name__ == "__main__":
    N, Cin, H, W = 2, 4, 16, 16
    Cout, K, PAD, STRIDE = 8, 3, 1, 1

    key = jax.random.PRNGKey(0)
    k1, k2, k3, k4, k5 = jax.random.split(key, 5)
    x = jax.random.normal(k1, (N, Cin, H, W), jnp.float32)
    params = dict(
        w_dw=jax.random.normal(k2, (K, K, Cin), jnp.float32) * 0.2,
        b_dw=jax.random.normal(k3, (Cin,), jnp.float32) * 0.1,
        bn_gamma=jnp.ones((Cin,), jnp.float32),    # PyTorch BatchNorm init
        bn_beta=jnp.zeros((Cin,), jnp.float32),
        w_pw=jax.random.normal(k4, (Cin, Cout), jnp.float32) * 0.2,
        b_pw=jax.random.normal(k5, (Cout,), jnp.float32) * 0.1,
    )

    ref = _reference(x, params, kernel_size=K, padding=PAD, stride=STRIDE)

    # f32 intermediate path: tight check against the reference math.
    out_f32 = depthwise_conv2d_forward(x, params, kernel_size=K, padding=PAD,
                                       stride=STRIDE, interm_dtype=jnp.float32)
    out_f32 = jax.block_until_ready(out_f32)
    assert out_f32.shape == (N, Cout, H, W), out_f32.shape
    assert jnp.allclose(out_f32, ref, atol=1e-4, rtol=1e-4), \
        float(jnp.max(jnp.abs(out_f32 - ref)))

    # Default (bf16 intermediate) fast path: looser tolerance from the
    # bfloat16 inter-kernel activations / folded weights.
    out_bf16 = depthwise_conv2d_forward(x, params, kernel_size=K, padding=PAD,
                                        stride=STRIDE)
    out_bf16 = jax.block_until_ready(out_bf16)
    assert out_bf16.shape == (N, Cout, H, W), out_bf16.shape
    assert jnp.allclose(out_bf16, ref, atol=1e-1, rtol=5e-2), \
        float(jnp.max(jnp.abs(out_bf16 - ref)))

    print("KERNEL_OK")
</pallas_src>

<mosaic_0001>
module attributes {stable_mosaic.version = 11 : i64} {
  func.func @_dw_conv_kernel(%arg0: i32, %arg1: memref<1x16x16x4xf32, #tpu.memory_space<vmem>>, %arg2: memref<3x3x4xf32, #tpu.memory_space<vmem>>, %arg3: memref<1x4xf32, #tpu.memory_space<vmem>>, %arg4: memref<1x16x16x4xf32, #tpu.memory_space<vmem>>, %arg5: memref<1x1x8xf32, #tpu.memory_space<vmem>>, %arg6: memref<1x18x24x4xf32, #tpu.memory_space<vmem>>) attributes {dimension_semantics = [#tpu.dimension_semantics<parallel>], iteration_bounds = array<i64: 2>, scalar_prefetch = 0 : i64, scratch_operands = 1 : i64, tpu.core_type = #tpu.core_type<tc>, window_params = [{transform_indices = @transform_0, window_bounds = array<i64: 1, 16, 16, 4>}, {pipeline_mode = #tpu.pipeline_mode<synchronous>, transform_indices = @transform_1, window_bounds = array<i64: 3, 3, 4>}, {pipeline_mode = #tpu.pipeline_mode<synchronous>, transform_indices = @transform_2, window_bounds = array<i64: 1, 4>}, {transform_indices = @transform_3, window_bounds = array<i64: 1, 16, 16, 4>}, {transform_indices = @transform_4, window_bounds = array<i64: 1, 1, 8>}]} {
    %cst = arith.constant 0.000000e+00 : f32
    %0 = vector.broadcast %cst : f32 to vector<1x1x24x4xf32>
    %c0 = arith.constant 0 : index
    %c0_0 = arith.constant 0 : index
    %c0_1 = arith.constant 0 : index
    %c0_2 = arith.constant 0 : index
    %1 = vector.load %arg6[%c0, %c0_0, %c0_1, %c0_2] : memref<1x18x24x4xf32, #tpu.memory_space<vmem>>, vector<1x1x24x4xf32>
    tpu.vector_store %arg6[%c0, %c0_0, %c0_1, %c0_2], %0 {strides = array<i32>} : memref<1x18x24x4xf32, #tpu.memory_space<vmem>>, vector<1x1x24x4xf32>,
    %cst_3 = arith.constant 0.000000e+00 : f32
    %2 = vector.broadcast %cst_3 : f32 to vector<1x1x24x4xf32>
    %c0_4 = arith.constant 0 : index
    %c17 = arith.constant 17 : index
    %c0_5 = arith.constant 0 : index
    %c0_6 = arith.constant 0 : index
    %3 = vector.load %arg6[%c0_4, %c17, %c0_5, %c0_6] : memref<1x18x24x4xf32, #tpu.memory_space<vmem>>, vector<1x1x24x4xf32>
    tpu.vector_store %arg6[%c0_4, %c17, %c0_5, %c0_6], %2 {strides = array<i32>} : memref<1x18x24x4xf32, #tpu.memory_space<vmem>>, vector<1x1x24x4xf32>,
    %cst_7 = arith.constant 0.000000e+00 : f32
    %4 = vector.broadcast %cst_7 : f32 to vector<1x16x1x4xf32>
    %c0_8 = arith.constant 0 : index
    %c1 = arith.constant 1 : index
    %c0_9 = arith.constant 0 : index
    %c0_10 = arith.constant 0 : index
    %5 = vector.load %arg6[%c0_8, %c1, %c0_9, %c0_10] : memref<1x18x24x4xf32, #tpu.memory_space<vmem>>, vector<1x16x1x4xf32>
    tpu.vector_store %arg6[%c0_8, %c1, %c0_9, %c0_10], %4 {strides = array<i32>} : memref<1x18x24x4xf32, #tpu.memory_space<vmem>>, vector<1x16x1x4xf32>,
    %cst_11 = arith.constant 0.000000e+00 : f32
    %6 = vector.broadcast %cst_11 : f32 to vector<1x16x7x4xf32>
    %c0_12 = arith.constant 0 : index
    %c1_13 = arith.constant 1 : index
    %c17_14 = arith.constant 17 : index
    %c0_15 = arith.constant 0 : index
    %7 = vector.load %arg6[%c0_12, %c1_13, %c17_14, %c0_15] : memref<1x18x24x4xf32, #tpu.memory_space<vmem>>, vector<1x16x7x4xf32>
    tpu.vector_store %arg6[%c0_12, %c1_13, %c17_14, %c0_15], %6 {strides = array<i32>} : memref<1x18x24x4xf32, #tpu.memory_space<vmem>>, vector<1x16x7x4xf32>,
    %c0_16 = arith.constant 0 : index
    %c0_17 = arith.constant 0 : index
    %c0_18 = arith.constant 0 : index
    %c0_19 = arith.constant 0 : index
    %8 = vector.load %arg1[%c0_16, %c0_17, %c0_18, %c0_19] : memref<1x16x16x4xf32, #tpu.memory_space<vmem>>, vector<1x16x16x4xf32>
    %c0_20 = arith.constant 0 : index
    %c1_21 = arith.constant 1 : index
    %c1_22 = arith.constant 1 : index
    %c0_23 = arith.constant 0 : index
    %9 = vector.load %arg6[%c0_20, %c1_21, %c1_22, %c0_23] : memref<1x18x24x4xf32, #tpu.memory_space<vmem>>, vector<1x16x16x4xf32>
    tpu.vector_store %arg6[%c0_20, %c1_21, %c1_22, %c0_23], %8 {strides = array<i32>} : memref<1x18x24x4xf32, #tpu.memory_space<vmem>>, vector<1x16x16x4xf32>,
    %c0_24 = arith.constant 0 : index
    %c0_25 = arith.constant 0 : index
    %c0_26 = arith.constant 0 : index
    %10 = vector.load %arg2[%c0_24, %c0_25, %c0_26] : memref<3x3x4xf32, #tpu.memory_space<vmem>>, vector<3x3x4xf32>
    %c0_27 = arith.constant 0 : index
    %c0_28 = arith.constant 0 : index
    %11 = vector.load %arg3[%c0_27, %c0_28] : memref<1x4xf32, #tpu.memory_space<vmem>>, vector<1x4xf32>
    %cst_29 = arith.constant 0.000000e+00 : f32
    %12 = vector.broadcast %cst_29 : f32 to vector<1x4xf32>
    %cst_30 = arith.constant 0.000000e+00 : f32
    %13 = vector.broadcast %cst_30 : f32 to vector<1x4xf32>
    %c0_31 = arith.constant 0 : index
    %c0_32 = arith.constant 0 : index
    %c0_33 = arith.constant 0 : index
    %c0_34 = arith.constant 0 : index
    %14 = vector.load %arg6[%c0_31, %c0_32, %c0_33, %c0_34] : memref<1x18x24x4xf32, #tpu.memory_space<vmem>>, vector<1x16x24x4xf32>
    %15 = vector.extract_strided_slice %10 {offsets = [0, 0, 0], sizes = [1, 1, 4], strides = [1, 1, 1]} : vector<3x3x4xf32> to vector<1x1x4xf32>
    %16 = vector.shape_cast %15 : vector<1x1x4xf32> to vector<4xf32>
    %17 = vector.shape_cast %16 : vector<4xf32> to vector<1x1x1x4xf32>
    %18 = vector.broadcast %17 : vector<1x1x1x4xf32> to vector<1x16x24x4xf32>
    %19 = arith.mulf %14, %18 : vector<1x16x24x4xf32>
    %20 = vector.shape_cast %11 : vector<1x4xf32> to vector<1x1x1x4xf32>
    %21 = vector.broadcast %20 : vector<1x1x1x4xf32> to vector<1x16x24x4xf32>
    %22 = arith.addf %19, %21 : vector<1x16x24x4xf32>
    %c23_i32 = arith.constant 23 : i32
    %23 = tpu.dynamic_rotate %14 by %c23_i32 dim 2 : vector<1x16x24x4xf32>, i32 -> vector<1x16x24x4xf32>
    %24 = vector.extract_strided_slice %10 {offsets = [0, 1, 0], sizes = [1, 1, 4], strides = [1, 1, 1]} : vector<3x3x4xf32> to vector<1x1x4xf32>
    %25 = vector.shape_cast %24 : vector<1x1x4xf32> to vector<4xf32>
    %26 = vector.shape_cast %25 : vector<4xf32> to vector<1x1x1x4xf32>
    %27 = vector.broadcast %26 : vector<1x1x1x4xf32> to vector<1x16x24x4xf32>
    %28 = arith.mulf %23, %27 : vector<1x16x24x4xf32>
    %29 = arith.addf %22, %28 : vector<1x16x24x4xf32>
    %c22_i32 = arith.constant 22 : i32
    %30 = tpu.dynamic_rotate %14 by %c22_i32 dim 2 : vector<1x16x24x4xf32>, i32 -> vector<1x16x24x4xf32>
    %31 = vector.extract_strided_slice %10 {offsets = [0, 2, 0], sizes = [1, 1, 4], strides = [1, 1, 1]} : vector<3x3x4xf32> to vector<1x1x4xf32>
    %32 = vector.shape_cast %31 : vector<1x1x4xf32> to vector<4xf32>
    %33 = vector.shape_cast %32 : vector<4xf32> to vector<1x1x1x4xf32>
    %34 = vector.broadcast %33 : vector<1x1x1x4xf32> to vector<1x16x24x4xf32>
    %35 = arith.mulf %30, %34 : vector<1x16x24x4xf32>
    %36 = arith.addf %29, %35 : vector<1x16x24x4xf32>
    %c0_35 = arith.constant 0 : index
    %c1_36 = arith.constant 1 : index
    %c0_37 = arith.constant 0 : index
    %c0_38 = arith.constant 0 : index
    %37 = vector.load %arg6[%c0_35, %c1_36, %c0_37, %c0_38] : memref<1x18x24x4xf32, #tpu.memory_space<vmem>>, vector<1x16x24x4xf32>
    %38 = vector.extract_strided_slice %10 {offsets = [1, 0, 0], sizes = [1, 1, 4], strides = [1, 1, 1]} : vector<3x3x4xf32> to vector<1x1x4xf32>
    %39 = vector.shape_cast %38 : vector<1x1x4xf32> to vector<4xf32>
    %40 = vector.shape_cast %39 : vector<4xf32> to vector<1x1x1x4xf32>
    %41 = vector.broadcast %40 : vector<1x1x1x4xf32> to vector<1x16x24x4xf32>
    %42 = arith.mulf %37, %41 : vector<1x16x24x4xf32>
    %43 = arith.addf %36, %42 : vector<1x16x24x4xf32>
    %c23_i32_39 = arith.constant 23 : i32
    %44 = tpu.dynamic_rotate %37 by %c23_i32_39 dim 2 : vector<1x16x24x4xf32>, i32 -> vector<1x16x24x4xf32>
    %45 = vector.extract_strided_slice %10 {offsets = [1, 1, 0], sizes = [1, 1, 4], strides = [1, 1, 1]} : vector<3x3x4xf32> to vector<1x1x4xf32>
    %46 = vector.shape_cast %45 : vector<1x1x4xf32> to vector<4xf32>
    %47 = vector.shape_cast %46 : vector<4xf32> to vector<1x1x1x4xf32>
    %48 = vector.broadcast %47 : vector<1x1x1x4xf32> to vector<1x16x24x4xf32>
    %49 = arith.mulf %44, %48 : vector<1x16x24x4xf32>
    %50 = arith.addf %43, %49 : vector<1x16x24x4xf32>
    %c22_i32_40 = arith.constant 22 : i32
    %51 = tpu.dynamic_rotate %37 by %c22_i32_40 dim 2 : vector<1x16x24x4xf32>, i32 -> vector<1x16x24x4xf32>
    %52 = vector.extract_strided_slice %10 {offsets = [1, 2, 0], sizes = [1, 1, 4], strides = [1, 1, 1]} : vector<3x3x4xf32> to vector<1x1x4xf32>
    %53 = vector.shape_cast %52 : vector<1x1x4xf32> to vector<4xf32>
    %54 = vector.shape_cast %53 : vector<4xf32> to vector<1x1x1x4xf32>
    %55 = vector.broadcast %54 : vector<1x1x1x4xf32> to vector<1x16x24x4xf32>
    %56 = arith.mulf %51, %55 : vector<1x16x24x4xf32>
    %57 = arith.addf %50, %56 : vector<1x16x24x4xf32>
    %c0_41 = arith.constant 0 : index
    %c2 = arith.constant 2 : index
    %c0_42 = arith.constant 0 : index
    %c0_43 = arith.constant 0 : index
    %58 = vector.load %arg6[%c0_41, %c2, %c0_42, %c0_43] : memref<1x18x24x4xf32, #tpu.memory_space<vmem>>, vector<1x16x24x4xf32>
    %59 = vector.extract_strided_slice %10 {offsets = [2, 0, 0], sizes = [1, 1, 4], strides = [1, 1, 1]} : vector<3x3x4xf32> to vector<1x1x4xf32>
    %60 = vector.shape_cast %59 : vector<1x1x4xf32> to vector<4xf32>
    %61 = vector.shape_cast %60 : vector<4xf32> to vector<1x1x1x4xf32>
    %62 = vector.broadcast %61 : vector<1x1x1x4xf32> to vector<1x16x24x4xf32>
    %63 = arith.mulf %58, %62 : vector<1x16x24x4xf32>
    %64 = arith.addf %57, %63 : vector<1x16x24x4xf32>
    %c23_i32_44 = arith.constant 23 : i32
    %65 = tpu.dynamic_rotate %58 by %c23_i32_44 dim 2 : vector<1x16x24x4xf32>, i32 -> vector<1x16x24x4xf32>
    %66 = vector.extract_strided_slice %10 {offsets = [2, 1, 0], sizes = [1, 1, 4], strides = [1, 1, 1]} : vector<3x3x4xf32> to vector<1x1x4xf32>
    %67 = vector.shape_cast %66 : vector<1x1x4xf32> to vector<4xf32>
    %68 = vector.shape_cast %67 : vector<4xf32> to vector<1x1x1x4xf32>
    %69 = vector.broadcast %68 : vector<1x1x1x4xf32> to vector<1x16x24x4xf32>
    %70 = arith.mulf %65, %69 : vector<1x16x24x4xf32>
    %71 = arith.addf %64, %70 : vector<1x16x24x4xf32>
    %c22_i32_45 = arith.constant 22 : i32
    %72 = tpu.dynamic_rotate %58 by %c22_i32_45 dim 2 : vector<1x16x24x4xf32>, i32 -> vector<1x16x24x4xf32>
    %73 = vector.extract_strided_slice %10 {offsets = [2, 2, 0], sizes = [1, 1, 4], strides = [1, 1, 1]} : vector<3x3x4xf32> to vector<1x1x4xf32>
    %74 = vector.shape_cast %73 : vector<1x1x4xf32> to vector<4xf32>
    %75 = vector.shape_cast %74 : vector<4xf32> to vector<1x1x1x4xf32>
    %76 = vector.broadcast %75 : vector<1x1x1x4xf32> to vector<1x16x24x4xf32>
    %77 = arith.mulf %72, %76 : vector<1x16x24x4xf32>
    %78 = arith.addf %71, %77 : vector<1x16x24x4xf32>
    %79 = vector.extract_strided_slice %78 {offsets = [0, 0, 0, 0], sizes = [1, 16, 16, 4], strides = [1, 1, 1, 1]} : vector<1x16x24x4xf32> to vector<1x16x16x4xf32>
    %c0_46 = arith.constant 0 : index
    %c0_47 = arith.constant 0 : index
    %c0_48 = arith.constant 0 : index
    %c0_49 = arith.constant 0 : index
    %80 = vector.load %arg4[%c0_46, %c0_47, %c0_48, %c0_49] : memref<1x16x16x4xf32, #tpu.memory_space<vmem>>, vector<1x16x16x4xf32>
    tpu.vector_store %arg4[%c0_46, %c0_47, %c0_48, %c0_49], %79 {strides = array<i32>} : memref<1x16x16x4xf32, #tpu.memory_space<vmem>>, vector<1x16x16x4xf32>,
    %cst_50 = arith.constant dense<0.000000e+00> : vector<4xf32>
    %81 = vector.multi_reduction <add>, %79, %cst_50 [0, 1, 2] : vector<1x16x16x4xf32> to vector<4xf32>
    %82 = vector.shape_cast %81 : vector<4xf32> to vector<1x4xf32>
    %83 = arith.addf %12, %82 : vector<1x4xf32>
    %84 = vector.shape_cast %11 : vector<1x4xf32> to vector<1x1x1x4xf32>
    %85 = vector.broadcast %84 : vector<1x1x1x4xf32> to vector<1x16x16x4xf32>
    %86 = arith.subf %79, %85 : vector<1x16x16x4xf32>
    %87 = arith.mulf %86, %86 : vector<1x16x16x4xf32>
    %cst_51 = arith.constant dense<0.000000e+00> : vector<4xf32>
    %88 = vector.multi_reduction <add>, %87, %cst_51 [0, 1, 2] : vector<1x16x16x4xf32> to vector<4xf32>
    %89 = vector.shape_cast %88 : vector<4xf32> to vector<1x4xf32>
    %90 = arith.addf %13, %89 : vector<1x4xf32>
    %91 = tpu.concatenate %83, %90 in 1 : vector<1x4xf32>, vector<1x4xf32> -> vector<1x8xf32>
    %92 = vector.shape_cast %91 : vector<1x8xf32> to vector<1x1x8xf32>
    %c0_52 = arith.constant 0 : index
    %c0_53 = arith.constant 0 : index
    %c0_54 = arith.constant 0 : index
    %93 = vector.load %arg5[%c0_52, %c0_53, %c0_54] : memref<1x1x8xf32, #tpu.memory_space<vmem>>, vector<1x1x8xf32>
    tpu.vector_store %arg5[%c0_52, %c0_53, %c0_54], %92 {strides = array<i32>} : memref<1x1x8xf32, #tpu.memory_space<vmem>>, vector<1x1x8xf32>,
    return
  }
  func.func @transform_0(%arg0: i32) -> (i32, i32, i32, i32) {
    %c0_i32 = arith.constant 0 : i32
    %c0_i32_0 = arith.constant 0 : i32
    %c0_i32_1 = arith.constant 0 : i32
    %c0_i32_2 = arith.constant 0 : i32
    return %arg0, %c0_i32, %c0_i32_0, %c0_i32_1 : i32, i32, i32, i32
  }
  func.func @transform_1(%arg0: i32) -> (i32, i32, i32) {
    %c0_i32 = arith.constant 0 : i32
    %c0_i32_0 = arith.constant 0 : i32
    %c0_i32_1 = arith.constant 0 : i32
    %c0_i32_2 = arith.constant 0 : i32
    return %c0_i32, %c0_i32_0, %c0_i32_1 : i32, i32, i32
  }
  func.func @transform_2(%arg0: i32) -> (i32, i32) {
    %c0_i32 = arith.constant 0 : i32
    %c0_i32_0 = arith.constant 0 : i32
    %c0_i32_1 = arith.constant 0 : i32
    return %c0_i32, %c0_i32_0 : i32, i32
  }
  func.func @transform_3(%arg0: i32) -> (i32, i32, i32, i32) {
    %c0_i32 = arith.constant 0 : i32
    %c0_i32_0 = arith.constant 0 : i32
    %c0_i32_1 = arith.constant 0 : i32
    %c0_i32_2 = arith.constant 0 : i32
    return %arg0, %c0_i32, %c0_i32_0, %c0_i32_1 : i32, i32, i32, i32
  }
  func.func @transform_4(%arg0: i32) -> (i32, i32, i32) {
    %c0_i32 = arith.constant 0 : i32
    %c0_i32_0 = arith.constant 0 : i32
    %c0_i32_1 = arith.constant 0 : i32
    return %arg0, %c0_i32, %c0_i32_0 : i32, i32, i32
  }
}

</mosaic_0001>

<bundles_post_ra>
// kernel: tpu_custom_call.1
= control target key start
LH: loop header
LB: loop body
LE: loop exit
PB: predicated region body
PF: predicated region fallthrough
CT: control target
= control target key end

     0   :  { %10 = vsyncpa [#allocation4], 0  ;;  %s4784_s0 = inlined_call_operand.vmem [shape: f32[2,16,16,4], index: 0, kind: input, shape index: {}]   ;;  %s4785_s1 = inlined_call_operand.vmem [shape: f32[3,3,4], index: 1, kind: input, shape index: {}]   ;;  %s4786_s2 = inlined_call_operand.vmem [shape: f32[1,4], index: 2, kind: input, shape index: {}]   ;;  %s4787_s3 = inlined_call_operand.vmem [shape: f32[2,16,16,4], index: 3, kind: output, shape index: {0}]   ;;  %s4788_s4 = inlined_call_operand.hbm [shape: f32[2,1,8], index: 4, kind: output, shape index: {1}]  }
   0x1   :  { %12 = vsyncpa [#allocation4 + $0x1], 0  ;;  %s2058_s15 = smov 0   ;;  %s2060_s16 = smov 0  }
   0x2   :  { %s2062_s17 = smov 0   ;;  %s2064_s18 = smov 0  }
   0x3 LB: > { %s2079_s19 = sadd.s32 4294967295, %s2028_s18   ;;  %s1910_s20 = sadd.s32 4294967294, %s2028_s18   ;;  %s2028_s18 = sphi %s2064_s18, %s5677_s18   ;;  %s2024_s17 = sphi %s2062_s17, %s5676_s17   ;;  %s2020_s16 = sphi %s2060_s16, %s5675_s16   ;;  %s2016_s15 = sphi %s2058_s15, %s5674_s15  }
   0x4   : > { %s2083_s21 = sadd.s32 1, %s2028_s18   ;;  %s119_s22 = sadd.s32 1, %s2024_s17 }
   0x5   : > { %s116_s23 = ssub.s32 %s2028_s18, %s2083_s21  ;;  %p129_p0 = scmp.ne.s32.totalorder %s2024_s17, %s2020_s16 }
   0x6   : > { %p117_p1 = scmp.eq.s32.totalorder %s116_s23, 0  ;;  %p130_p2 = scmp.eq.s32.totalorder %s2079_s19, 1 }
   0x7   : > { %p135_p3 = scmp.ne.s32.totalorder %s2020_s16, %s2016_s15  ;;  %p136_p4 = scmp.eq.s32.totalorder %s1910_s20, 1 }
   0x8   : > { %s2094_s24 = scalar_select %p117_p1, %s2024_s17, %s119_s22  }
   0x9   : > { %p2096_p5 = por %p130_p2, %p129_p0  ;;  %p2100_p6 = por %p136_p4, %p135_p3 }
   0xa   : > { %p1913_p7 = scmp.ge.s32.totalorder %s2028_s18, 1  ;;  %p168_p8 = scmp.lt.s32.totalorder %s2028_s18, 3 }
   0xc   : > { %p169_p9 = pnand %p1913_p7, %p168_p8 }
   0xe   : > { %172 = sbr.rel (%p169_p9) target bundleno = 548 (0x224), region = 32 }
  0x15   : > { %p198_p10 = scmp.lt.s32.totalorder %s2079_s19, 1  ;;  %vm208_vm0 = vcmask 31744   ;;  %vm217_vm1 = vcmask 24576   ;;  %vm234_vm2 = vcmask 30720   ;;  %v2030_v0 = vmov 0.0   ;;  %s196_s29 = sand.u32 1, %s2020_s16  }
  0x16   : > { %209 = vst.msk [vmem:[#allocation2] sm:$0xff] %vm208_vm0, %v2030_v0  ;;  %210 = vst.msk [vmem:[#allocation2 + $0x8] sm:$0xff] %vm208_vm0, %v2030_v0  ;;  %v367_v1 = vlaneseq  ;;  %v2178_v12 = vld [vmem:[%s4785_s1] sm:$0x7]  ;;  %v316_v26 = vld [vmem:[%s4785_s1 + $0x4] sm:$0x7] }
  0x17   : > { %211 = vst.msk [vmem:[#allocation2 + $0x10] sm:$0xff] %vm208_vm0, %v2030_v0  ;;  %213 = vst.msk [vmem:[#allocation2 + $0x198] sm:$0xff] %vm208_vm0, %v2030_v0  ;;  %s2148_s27 = scalar_select %p198_p10, %s2079_s19, 1  ;;  %v2266_v48 = vld [vmem:[%s4786_s2] ss:$0 sm:$0xff]  ;;  %vm1807_vm5 = vcmask 57344  }
  0x18   : > { %214 = vst.msk [vmem:[#allocation2 + $0x1a0] sm:$0xff] %vm208_vm0, %v2030_v0  ;;  %215 = vst.msk [vmem:[#allocation2 + $0x1a8] sm:$0xff] %vm208_vm0, %v2030_v0  ;;  %v2158_v2 = vshrl.u32 %v367_v1, 7  ;;  %s1919_s30 = sshll.u32 %s2079_s19, 4  ;;  %s1815_s10 = scalar_lea.sflag [#allocation4], %s196_s29 }
  0x19   : > { %218 = vst.msk [vmem:[#allocation2 + $0x18] sm:$0x1] %vm217_vm1, %v2030_v0  ;;  %219 = vst.msk [vmem:[#allocation2 + $0x30] sm:$0x1] %vm217_vm1, %v2030_v0  ;;  %s1922_s28 = sshll.u32 %s2148_s27, 8  ;;  %s4741_s9 = scalar_lea.hbm %s4788_s4, %s1919_s30 }
  0x1a   : > { %220 = vst.msk [vmem:[#allocation2 + $0x48] sm:$0x1] %vm217_vm1, %v2030_v0  ;;  %221 = vst.msk [vmem:[#allocation2 + $0x60] sm:$0x1] %vm217_vm1, %v2030_v0  ;;  %s2156_s5 = scalar_lea.vmem %s4784_s0, %s1922_s28  ;;  %v2187_v16 = vsub.s32 0, %v2158_v2  ;;  %v2221_v31 = vsub.s32 1, %v2158_v2  ;;  %s4375_s22 = scalar_lea.vmem %s4787_s3, %s1922_s28 }
  0x1b   : > { %222 = vst.msk [vmem:[#allocation2 + $0x78] sm:$0x1] %vm217_vm1, %v2030_v0  ;;  %223 = vst.msk [vmem:[#allocation2 + $0x90] sm:$0x1] %vm217_vm1, %v2030_v0  ;;  %v251_v3 = vld [vmem:[%s2156_s5] sm:$0xff]  ;;  %v252_v4 = vld [vmem:[%s2156_s5 + $0x8] sm:$0xff] }
  0x1c   : > { %224 = vst.msk [vmem:[#allocation2 + $0xa8] sm:$0x1] %vm217_vm1, %v2030_v0  ;;  %225 = vst.msk [vmem:[#allocation2 + $0xc0] sm:$0x1] %vm217_vm1, %v2030_v0  ;;  %v253_v5 = vld [vmem:[%s2156_s5 + $0x10] sm:$0xff]  ;;  %v254_v6 = vld [vmem:[%s2156_s5 + $0x18] sm:$0xff]  ;;  %v2218_v30 = vrot.slane %v2178_v12, %v2187_v16  ;;  %v2255_v45 = vrot.slane %v2178_v12, %v2221_v31  ;;  %v2258_v46 = vrot.slane %v316_v26, %v2187_v16 }
  0x1d   : > { %226 = vst.msk [vmem:[#allocation2 + $0xd8] sm:$0x1] %vm217_vm1, %v2030_v0  ;;  %227 = vst.msk [vmem:[#allocation2 + $0xf0] sm:$0x1] %vm217_vm1, %v2030_v0  ;;  %v255_v7 = vld [vmem:[%s2156_s5 + $0x20] sm:$0xff]  ;;  %v256_v8 = vld [vmem:[%s2156_s5 + $0x28] sm:$0xff]  ;;  %v2261_v47 = vrot.slane %v316_v26, %v2221_v31 }
  0x1e   : > { %228 = vst.msk [vmem:[#allocation2 + $0x108] sm:$0x1] %vm217_vm1, %v2030_v0  ;;  %229 = vst.msk [vmem:[#allocation2 + $0x120] sm:$0x1] %vm217_vm1, %v2030_v0  ;;  %v257_v9 = vld [vmem:[%s2156_s5 + $0x30] sm:$0xff]  ;;  %v258_v10 = vld [vmem:[%s2156_s5 + $0x38] sm:$0xff] }
  0x1f   : > { %230 = vst.msk [vmem:[#allocation2 + $0x138] sm:$0x1] %vm217_vm1, %v2030_v0  ;;  %231 = vst.msk [vmem:[#allocation2 + $0x150] sm:$0x1] %vm217_vm1, %v2030_v0  ;;  %v259_v11 = vld [vmem:[%s2156_s5 + $0x40] sm:$0xff]  ;;  %v260_v13 = vld [vmem:[%s2156_s5 + $0x48] sm:$0xff] }
  0x20   : > { %232 = vst.msk [vmem:[#allocation2 + $0x168] sm:$0x1] %vm217_vm1, %v2030_v0  ;;  %233 = vst.msk [vmem:[#allocation2 + $0x180] sm:$0x1] %vm217_vm1, %v2030_v0  ;;  %v261_v14 = vld [vmem:[%s2156_s5 + $0x50] sm:$0xff]  ;;  %v262_v15 = vld [vmem:[%s2156_s5 + $0x58] sm:$0xff] }
  0x21   : > { %235 = vst.msk [vmem:[#allocation2 + $0x29] sm:$0x7f] %vm234_vm2, %v2030_v0  ;;  %236 = vst.msk [vmem:[#allocation2 + $0x41] sm:$0x7f] %vm234_vm2, %v2030_v0  ;;  %v263_v17 = vld [vmem:[%s2156_s5 + $0x60] sm:$0xff]  ;;  %v264_v18 = vld [vmem:[%s2156_s5 + $0x68] sm:$0xff] }
  0x22   : > { %237 = vst.msk [vmem:[#allocation2 + $0x59] sm:$0x7f] %vm234_vm2, %v2030_v0  ;;  %238 = vst.msk [vmem:[#allocation2 + $0x71] sm:$0x7f] %vm234_vm2, %v2030_v0  ;;  %v265_v19 = vld [vmem:[%s2156_s5 + $0x70] sm:$0xff]  ;;  %v266_v20 = vld [vmem:[%s2156_s5 + $0x78] sm:$0xff] }
  0x23   : > { %239 = vst.msk [vmem:[#allocation2 + $0x89] sm:$0x7f] %vm234_vm2, %v2030_v0  ;;  %240 = vst.msk [vmem:[#allocation2 + $0xa1] sm:$0x7f] %vm234_vm2, %v2030_v0  ;;  %v267_v21 = vld [vmem:[%s2156_s5 + $0x80] sm:$0xff]  ;;  %v268_v22 = vld [vmem:[%s2156_s5 + $0x88] sm:$0xff] }
  0x24   : > { %241 = vst.msk [vmem:[#allocation2 + $0xb9] sm:$0x7f] %vm234_vm2, %v2030_v0  ;;  %242 = vst.msk [vmem:[#allocation2 + $0xd1] sm:$0x7f] %vm234_vm2, %v2030_v0  ;;  %v269_v23 = vld [vmem:[%s2156_s5 + $0x90] sm:$0xff]  ;;  %v270_v24 = vld [vmem:[%s2156_s5 + $0x98] sm:$0xff] }
  0x25   : > { %243 = vst.msk [vmem:[#allocation2 + $0xe9] sm:$0x7f] %vm234_vm2, %v2030_v0  ;;  %244 = vst.msk [vmem:[#allocation2 + $0x101] sm:$0x7f] %vm234_vm2, %v2030_v0  ;;  %v271_v25 = vld [vmem:[%s2156_s5 + $0xa0] sm:$0xff]  ;;  %v272_v27 = vld [vmem:[%s2156_s5 + $0xa8] sm:$0xff] }
  0x26   : > { %245 = vst.msk [vmem:[#allocation2 + $0x119] sm:$0x7f] %vm234_vm2, %v2030_v0  ;;  %246 = vst.msk [vmem:[#allocation2 + $0x131] sm:$0x7f] %vm234_vm2, %v2030_v0  ;;  %v273_v28 = vld [vmem:[%s2156_s5 + $0xb0] sm:$0xff]  ;;  %v274_v29 = vld [vmem:[%s2156_s5 + $0xb8] sm:$0xff] }
  0x27   : > { %247 = vst.msk [vmem:[#allocation2 + $0x149] sm:$0x7f] %vm234_vm2, %v2030_v0  ;;  %248 = vst.msk [vmem:[#allocation2 + $0x161] sm:$0x7f] %vm234_vm2, %v2030_v0  ;;  %v275_v32 = vld [vmem:[%s2156_s5 + $0xc0] sm:$0xff]  ;;  %v276_v33 = vld [vmem:[%s2156_s5 + $0xc8] sm:$0xff] }
  0x28   : > { %249 = vst.msk [vmem:[#allocation2 + $0x179] sm:$0x7f] %vm234_vm2, %v2030_v0  ;;  %250 = vst.msk [vmem:[#allocation2 + $0x191] sm:$0x7f] %vm234_vm2, %v2030_v0  ;;  %v277_v34 = vld [vmem:[%s2156_s5 + $0xd0] sm:$0xff]  ;;  %v2230_v35 = vsub.s32 2, %v2158_v2 }
  0x29   : > { %5006 = vst [vmem:[#allocation6_spill] sm:$0xff] %v2158_v2  ;;  %283 = vst.msk [vmem:[#allocation2 + $0x19] sm:$0xff] %vm208_vm0, %v251_v3  ;;  %v278_v36 = vld [vmem:[%s2156_s5 + $0xd8] sm:$0xff]  ;;  %v279_v37 = vld [vmem:[%s2156_s5 + $0xe0] sm:$0xff]  ;;  %vm491_vm3 = vcmp.lt.s32.totalorder %v2158_v2, 7  ;;  %vm640_vm4 = vcmp.lt.s32.totalorder %v2158_v2, 6 }
  0x2a   : > { %284 = vst.msk [vmem:[#allocation2 + $0x21] sm:$0xff] %vm208_vm0, %v252_v4  ;;  %285 = vst.msk [vmem:[#allocation2 + $0x31] sm:$0xff] %vm208_vm0, %v253_v5  ;;  %v280_v38 = vld [vmem:[%s2156_s5 + $0xe8] sm:$0xff]  ;;  %v281_v39 = vld [vmem:[%s2156_s5 + $0xf0] sm:$0xff]  ;;  %v2278_v53 = vrot.slane %v2178_v12, %v2230_v35  ;;  %v2281_v54 = vrot.slane %v316_v26, %v2230_v35  ;;  %s2031_s28 = smov 4   ;;  %s2032_s19 = smov [#allocation3]  }
  0x2b   : > { %286 = vst.msk [vmem:[#allocation2 + $0x39] sm:$0xff] %vm208_vm0, %v254_v6  ;;  %287 = vst.msk [vmem:[#allocation2 + $0x49] sm:$0xff] %vm208_vm0, %v255_v7  ;;  %v282_v40 = vld [vmem:[%s2156_s5 + $0xf8] sm:$0xff]  ;;  %v2243_v41 = vld [vmem:[#allocation2] sm:$0xff]  ;;  %s197_s5 = scalar_lea.vmem [#allocation3], %s196_s29  ;;  %s1970_s12 = sshll.u32 %s2032_s19, 4  ;;  %s1971_s12 = int_to_ptr.vmem [resolvable:$false] %s1970_s12 }
  0x2c   : > { %288 = vst.msk [vmem:[#allocation2 + $0x51] sm:$0xff] %vm208_vm0, %v256_v8  ;;  %289 = vst.msk [vmem:[#allocation2 + $0x61] sm:$0xff] %vm208_vm0, %v257_v9  ;;  %v2247_v42 = vld [vmem:[#allocation2 + $0x8] sm:$0xff]  ;;  %v371_v44 = vmul.f32 %v2218_v30, %v2243_v41  ;;  %s1830_s6 = sshll.u32 %s197_s5, 4  ;;  %s1972_s13 = scalar_lea.vmem %s1971_s12, 32  ;;  %s4743_s6 = int_to_ptr.vmem [resolvable:$true] %s1830_s6 }
  0x2d   : > { %290 = vst.msk [vmem:[#allocation2 + $0x69] sm:$0xff] %vm208_vm0, %v258_v10  ;;  %291 = vst.msk [vmem:[#allocation2 + $0x79] sm:$0xff] %vm208_vm0, %v259_v11  ;;  %v372_v51 = vmul.f32 %v2218_v30, %v2247_v42  ;;  %s1966_s11 = scalar_lea.vmem %s4743_s6, 16  ;;  %p1973_p0 = scmp.lt.s32.totalorder %s4743_s6, %s1971_s12 }
  0x2e   : > { %5007 = vst [vmem:[#allocation7_spill] sm:$0xff] %v2187_v16  ;;  %292 = vst.msk [vmem:[#allocation2 + $0x81] sm:$0xff] %vm208_vm0, %v260_v13  ;;  %v2312_v8 = vadd.f32 %v2266_v48, %v371_v44  ;;  %p1967_p11 = scmp.ne.s32.totalorder %s4743_s6, %s1966_s11  ;;  %p1974_p1 = scmp.lt.s32.totalorder %s1972_s13, %s1966_s11 }
  0x2f   : > { %293 = vst.msk [vmem:[#allocation2 + $0x91] sm:$0xff] %vm208_vm0, %v261_v14  ;;  %294 = vst.msk [vmem:[#allocation2 + $0x99] sm:$0xff] %vm208_vm0, %v262_v15  ;;  %v2324_v14 = vadd.f32 %v2266_v48, %v372_v51 }
  0x30   : > { %295 = vst.msk [vmem:[#allocation2 + $0xa9] sm:$0xff] %vm208_vm0, %v263_v17  ;;  %296 = vst.msk [vmem:[#allocation2 + $0xb1] sm:$0xff] %vm208_vm0, %v264_v18  ;;  %v2249_v43 = vld [vmem:[#allocation2 + $0x18] sm:$0xff]  ;;  %p1968_p12 = pnand %p1967_p11, %p2096_p5  ;;  %p1975_p2 = por %p1974_p1, %p1973_p0 }
  0x31   : > { %297 = vst.msk [vmem:[#allocation2 + $0xc1] sm:$0xff] %vm208_vm0, %v265_v19  ;;  %298 = vst.msk [vmem:[#allocation2 + $0xc9] sm:$0xff] %vm208_vm0, %v266_v20  ;;  %v2268_v49 = vld [vmem:[#allocation2 + $0x20] sm:$0xff]  ;;  %v2270_v50 = vld [vmem:[#allocation2 + $0x30] sm:$0xff]  ;;  %v373_v52 = vmul.f32 %v2218_v30, %v2249_v43 }
  0x32   : > { %299 = vst.msk [vmem:[#allocation2 + $0xd9] sm:$0xff] %vm208_vm0, %v267_v21  ;;  %300 = vst.msk [vmem:[#allocation2 + $0xe1] sm:$0xff] %vm208_vm0, %v268_v22  ;;  %v2283_v55 = vld [vmem:[#allocation2 + $0x38] sm:$0xff]  ;;  %v2285_v56 = vld [vmem:[#allocation2 + $0x48] sm:$0xff]  ;;  %v374_v57 = vmul.f32 %v2218_v30, %v2268_v49  ;;  %v375_v58 = vmul.f32 %v2218_v30, %v2270_v50  ;;  %p1969_p13 = pneg %p1968_p12 }
  0x33   : > { %301 = vst.msk [vmem:[#allocation2 + $0xf1] sm:$0xff] %vm208_vm0, %v269_v23  ;;  %302 = vst.msk [vmem:[#allocation2 + $0xf9] sm:$0xff] %vm208_vm0, %v270_v24  ;;  %v2293_v61 = vld [vmem:[#allocation2 + $0x50] sm:$0xff]  ;;  %v2295_v62 = vld [vmem:[#allocation2 + $0x60] sm:$0xff]  ;;  %v376_v63 = vmul.f32 %v2218_v30, %v2283_v55  ;;  %v377_v0 = vmul.f32 %v2218_v30, %v2285_v56  ;;  %v2327_v15 = vadd.f32 %v2266_v48, %v373_v52 }
  0x34   : > { %303 = vst.msk [vmem:[#allocation2 + $0x109] sm:$0xff] %vm208_vm0, %v271_v25  ;;  %5008 = vst [vmem:[#allocation8_spill] sm:$0xff] %v2221_v31  ;;  %v2303_v4 = vld [vmem:[#allocation2 + $0x68] sm:$0xff]  ;;  %v2305_v5 = vld [vmem:[#allocation2 + $0x78] sm:$0xff]  ;;  %v378_v6 = vmul.f32 %v2218_v30, %v2293_v61  ;;  %v379_v7 = vmul.f32 %v2218_v30, %v2295_v62  ;;  %v2338_v21 = vadd.f32 %v2266_v48, %v374_v57  ;;  %p1976_p3 = pnand %p1975_p2, %p1969_p13 }
  0x35   : > { %304 = vst.msk [vmem:[#allocation2 + $0x111] sm:$0xff] %vm208_vm0, %v272_v27  ;;  %305 = vst.msk [vmem:[#allocation2 + $0x121] sm:$0xff] %vm208_vm0, %v273_v28  ;;  %v2315_v10 = vld [vmem:[#allocation2 + $0x80] sm:$0xff]  ;;  %v380_v12 = vmul.f32 %v2218_v30, %v2303_v4  ;;  %v381_v13 = vmul.f32 %v2218_v30, %v2305_v5  ;;  %v2341_v22 = vadd.f32 %v2266_v48, %v375_v58 }
  0x36   : > { %306 = vst.msk [vmem:[#allocation2 + $0x129] sm:$0xff] %vm208_vm0, %v274_v29  ;;  %5009 = vst [vmem:[#allocation9_spill] sm:$0xff] %v2230_v35  ;;  %v2317_v11 = vld [vmem:[#allocation2 + $0x90] sm:$0xff]  ;;  %v2329_v17 = vld [vmem:[#allocation2 + $0x98] sm:$0xff]  ;;  %v382_v19 = vmul.f32 %v2218_v30, %v2315_v10  ;;  %v2352_v27 = vadd.f32 %v2266_v48, %v376_v63  ;;  %v2355_v28 = vadd.f32 %v2266_v48, %v377_v0 }
  0x37   : > { %307 = vst.msk [vmem:[#allocation2 + $0x139] sm:$0xff] %vm208_vm0, %v275_v32  ;;  %308 = vst.msk [vmem:[#allocation2 + $0x141] sm:$0xff] %vm208_vm0, %v276_v33  ;;  %v2331_v18 = vld [vmem:[#allocation2 + $0xa8] sm:$0xff]  ;;  %v383_v20 = vmul.f32 %v2218_v30, %v2317_v11  ;;  %v2343_v23 = vld [vmem:[#allocation2 + $0xb0] sm:$0xff]  ;;  %v384_v25 = vmul.f32 %v2218_v30, %v2329_v17  ;;  %v2380_v51 = vadd.f32 %v2266_v48, %v380_v12 }
  0x38   : > { %309 = vst.msk [vmem:[#allocation2 + $0x151] sm:$0xff] %vm208_vm0, %v277_v34  ;;  %310 = vst.msk [vmem:[#allocation2 + $0x159] sm:$0xff] %vm208_vm0, %v278_v36  ;;  %v2345_v24 = vld [vmem:[#allocation2 + $0xc0] sm:$0xff]  ;;  %v385_v26 = vmul.f32 %v2218_v30, %v2331_v18  ;;  %v2357_v29 = vld [vmem:[#allocation2 + $0xc8] sm:$0xff]  ;;  %v386_v33 = vmul.f32 %v2218_v30, %v2343_v23  ;;  %v2366_v36 = vadd.f32 %v2266_v48, %v378_v6 }
  0x39   : > { %311 = vst.msk [vmem:[#allocation2 + $0x169] sm:$0xff] %vm208_vm0, %v279_v37  ;;  %312 = vst.msk [vmem:[#allocation2 + $0x171] sm:$0xff] %vm208_vm0, %v280_v38  ;;  %v2359_v32 = vld [vmem:[#allocation2 + $0xd8] sm:$0xff]  ;;  %v387_v34 = vmul.f32 %v2218_v30, %v2345_v24  ;;  %v2369_v37 = vadd.f32 %v2266_v48, %v379_v7  ;;  %v2371_v38 = vld [vmem:[#allocation2 + $0xe0] sm:$0xff]  ;;  %v2383_v52 = vadd.f32 %v2266_v48, %v381_v13 }
  0x3a   : > { %5010 = vst [vmem:[#allocation10_spill] sm:$0xff] %v2243_v41  ;;  %313 = vst.msk [vmem:[#allocation2 + $0x181] sm:$0xff] %vm208_vm0, %v281_v39  ;;  %v2373_v39 = vld [vmem:[#allocation2 + $0xf0] sm:$0xff]  ;;  %v389_v44 = vmul.f32 %v2218_v30, %v2359_v32  ;;  %v2385_v57 = vld [vmem:[#allocation2 + $0xf8] sm:$0xff]  ;;  %v390_v63 = vmul.f32 %v2218_v30, %v2371_v38  ;;  %v2394_v6 = vadd.f32 %v2266_v48, %v382_v19 }
  0x3b   : > { %314 = vst.msk [vmem:[#allocation2 + $0x189] sm:$0xff] %vm208_vm0, %v282_v40  ;;  %5011 = vst [vmem:[#allocation11_spill] sm:$0xff] %v2258_v46  ;;  %v388_v40 = vmul.f32 %v2218_v30, %v2357_v29  ;;  %v2387_v58 = vld [vmem:[#allocation2 + $0x108] sm:$0xff]  ;;  %v391_v0 = vmul.f32 %v2218_v30, %v2373_v39  ;;  %v2397_v7 = vadd.f32 %v2266_v48, %v383_v20 }
  0x3c   : > { %5012 = vst [vmem:[#allocation12_spill] sm:$0xff] %v2261_v47  ;;  %5013 = vst [vmem:[#allocation13_spill] sm:$0xff] %v2268_v49  ;;  %v2399_v12 = vld [vmem:[#allocation2 + $0x110] sm:$0xff]  ;;  %v2401_v13 = vld [vmem:[#allocation2 + $0x120] sm:$0xff]  ;;  %v392_v60 = vmul.f32 %v2218_v30, %v2385_v57  ;;  %v393_v9 = vmul.f32 %v2218_v30, %v2387_v58  ;;  %v2408_v1 = vadd.f32 %v2266_v48, %v384_v25 }
  0x3d   : > { %5014 = vst [vmem:[#allocation14_spill] sm:$0xff] %v2278_v53  ;;  %5015 = vst [vmem:[#allocation15_spill] sm:$0xff] %v2281_v54  ;;  %v2411_v59 = vadd.f32 %v2266_v48, %v385_v26  ;;  %v2413_v19 = vld [vmem:[#allocation2 + $0x128] sm:$0xff]  ;;  %v394_v3 = vmul.f32 %v2218_v30, %v2399_v12  ;;  %v395_v35 = vmul.f32 %v2218_v30, %v2401_v13 }
  0x3e   : > { %5016 = vst [vmem:[#allocation16_spill] sm:$0xff] %v2283_v55  ;;  %5017 = vst [vmem:[#allocation17_spill] sm:$0xff] %v2293_v61  ;;  %v2415_v20 = vld [vmem:[#allocation2 + $0x138] sm:$0xff]  ;;  %v2422_v31 = vadd.f32 %v2266_v48, %v386_v33  ;;  %v2425_v16 = vadd.f32 %v2266_v48, %v387_v34  ;;  %v2427_v25 = vld [vmem:[#allocation2 + $0x140] sm:$0xff]  ;;  %v396_v54 = vmul.f32 %v2218_v30, %v2413_v19 }
  0x3f   : > { %5018 = vst [vmem:[#allocation18_spill] sm:$0xff] %v2303_v4  ;;  %5019 = vst [vmem:[#allocation19_spill] sm:$0xff] %v2315_v10  ;;  %v2429_v26 = vld [vmem:[#allocation2 + $0x150] sm:$0xff]  ;;  %v397_v47 = vmul.f32 %v2218_v30, %v2415_v20  ;;  %v2436_v46 = vadd.f32 %v2266_v48, %v388_v40  ;;  %v2439_v53 = vadd.f32 %v2266_v48, %v389_v44  ;;  %v2441_v33 = vld [vmem:[#allocation2 + $0x158] sm:$0xff] }
  0x40   : > { %5020 = vst [vmem:[#allocation20_spill] sm:$0xff] %v2329_v17  ;;  %5021 = vst [vmem:[#allocation21_spill] sm:$0xff] %v2341_v22  ;;  %v2443_v34 = vld [vmem:[#allocation2 + $0x168] sm:$0xff]  ;;  %v2455_v40 = vld [vmem:[#allocation2 + $0x170] sm:$0xff]  ;;  %v400_v44 = vmul.f32 %v2218_v30, %v2441_v33 }
  0x41   : > { %5022 = vst [vmem:[#allocation22_spill] sm:$0xff] %v2343_v23  ;;  %5023 = vst [vmem:[#allocation23_spill] sm:$0xff] %v2352_v27 }
  0x42   : > { %5024 = vst [vmem:[#allocation24_spill] sm:$0xff] %v2355_v28  ;;  %5025 = vst [vmem:[#allocation25_spill] sm:$0xff] %v2357_v29 }
  0x43   : > { %5026 = vst [vmem:[#allocation26_spill] sm:$0xff] %v2366_v36  ;;  %5027 = vst [vmem:[#allocation27_spill] sm:$0xff] %v2369_v37  ;;  %v2555_v36 = vld [vmem:[#allocation2 + $0x160] sm:$0xff] }
  0x44   : > { %5028 = vst [vmem:[#allocation28_spill] sm:$0xff] %v2371_v38  ;;  %5029 = vst [vmem:[#allocation29_spill] sm:$0xff] %v2380_v51  ;;  %v2547_v51 = vld [vmem:[#allocation2 + $0x130] sm:$0xff] }
  0x45   : > { %5030 = vst [vmem:[#allocation30_spill] sm:$0xff] %v2383_v52  ;;  %5031 = vst [vmem:[#allocation31_spill] sm:$0xff] %v2385_v57  ;;  %v470_v52 = vrot.slane %v2427_v25, 1 }
  0x46   : > { %5032 = vst [vmem:[#allocation32_spill] sm:$0xff] %v2394_v6  ;;  %5033 = vst [vmem:[#allocation33_spill] sm:$0xff] %v2397_v7  ;;  %v2465_v7 = vadd.f32 %v2266_v48, %v393_v9  ;;  %v2479_v6 = vadd.f32 %v2266_v48, %v397_v47  ;;  %v2517_v47 = vld [vmem:[#allocation2 + $0x88] sm:$0xff] }
  0x47   : > { %5034 = vst [vmem:[#allocation34_spill] sm:$0xff] %v2399_v12  ;;  %5035 = vst [vmem:[#allocation35_spill] sm:$0xff] %v2408_v1  ;;  %v2453_v1 = vadd.f32 %v2266_v48, %v391_v0  ;;  %v2470_v0 = vadd.f32 %v2266_v48, %v394_v3  ;;  %v2489_v3 = vadd.f32 %v2266_v48, %v400_v44  ;;  %v2503_v44 = vld [vmem:[#allocation2 + $0x10] sm:$0xff]  ;;  %v478_v28 = vrot.slane %v2517_v47, 1 }
  0x48   : > { %5036 = vst [vmem:[#allocation36_spill] sm:$0xff] %v2411_v59  ;;  %5037 = vst [vmem:[#allocation37_spill] sm:$0xff] %v2413_v19  ;;  %v2450_v59 = vadd.f32 %v2266_v48, %v390_v63  ;;  %v402_v63 = vmul.f32 %v2218_v30, %v2455_v40 }
  0x49   : > { %5038 = vst [vmem:[#allocation38_spill] sm:$0xff] %v2422_v31  ;;  %5039 = vst [vmem:[#allocation39_spill] sm:$0xff] %v2425_v16  ;;  %v398_v16 = vmul.f32 %v2218_v30, %v2427_v25  ;;  %v399_v31 = vmul.f32 %v2218_v30, %v2429_v26 }
  0x4a   : > { %5040 = vst [vmem:[#allocation40_spill] sm:$0xff] %v2427_v25  ;;  %5041 = vst [vmem:[#allocation41_spill] sm:$0xff] %v2436_v46  ;;  %v2462_v46 = vadd.f32 %v2266_v48, %v392_v60 }
  0x4b   : > { %5042 = vst [vmem:[#allocation42_spill] sm:$0xff] %v2439_v53  ;;  %5043 = vst [vmem:[#allocation43_spill] sm:$0xff] %v2441_v33  ;;  %v401_v53 = vmul.f32 %v2218_v30, %v2443_v34  ;;  %v2482_v60 = vadd.f32 %v2266_v48, %v398_v16  ;;  %v2485_v9 = vadd.f32 %v2266_v48, %v399_v31  ;;  %v2515_v31 = vld [vmem:[#allocation2 + $0x70] sm:$0xff]  ;;  %v2533_v30 = vld [vmem:[#allocation2 + $0xe8] sm:$0xff] }
  0x4c   : > { %5044 = vst [vmem:[#allocation44_spill] sm:$0xff] %v2450_v59  ;;  %5045 = vst [vmem:[#allocation45_spill] sm:$0xff] %v2453_v1  ;;  %v2473_v1 = vadd.f32 %v2266_v48, %v395_v35  ;;  %v2476_v59 = vadd.f32 %v2266_v48, %v396_v54  ;;  %v2498_v16 = vadd.f32 %v2266_v48, %v402_v63  ;;  %v2513_v63 = vld [vmem:[#allocation2 + $0x58] sm:$0xff]  ;;  %v458_v54 = vrot.slane %v2268_v49, 1  ;;  %v5299_v2 = vld [vmem:[#allocation28_spill] sm:$0xff] }
  0x4d   : > { %5046 = vst [vmem:[#allocation46_spill] sm:$0xff] %v2455_v40  ;;  %5047 = vst [vmem:[#allocation47_spill] sm:$0xff] %v2462_v46  ;;  %v2492_v35 = vadd.f32 %v2266_v48, %v401_v53  ;;  %v2511_v48 = vld [vmem:[#allocation2 + $0x40] sm:$0xff]  ;;  %v463_v53 = vrot.slane %v2329_v17, 1  ;;  %v465_v49 = vrot.slane %v2357_v29, 1  ;;  %v2549_v17 = vld [vmem:[#allocation2 + $0x148] sm:$0xff] }
  0x4e   : > { %5048 = vst [vmem:[#allocation48_spill] sm:$0xff] %v2465_v7  ;;  %5049 = vst [vmem:[#allocation49_spill] sm:$0xff] %v2470_v0  ;;  %v2531_v0 = vld [vmem:[#allocation2 + $0xd0] sm:$0xff]  ;;  %v466_v7 = vrot.slane %v2371_v38, 1  ;;  %v2539_v46 = vld [vmem:[#allocation2 + $0x100] sm:$0xff]  ;;  %v471_v29 = vrot.slane %v2441_v33, 1 }
  0x4f   : > { %5050 = vst [vmem:[#allocation50_spill] sm:$0xff] %v2473_v1  ;;  %5051 = vst [vmem:[#allocation51_spill] sm:$0xff] %v2476_v59  ;;  %v2525_v59 = vld [vmem:[#allocation2 + $0xb8] sm:$0xff]  ;;  %v462_v1 = vrot.slane %v2315_v10, 1  ;;  %v468_v10 = vrot.slane %v2399_v12, 1  ;;  %v472_v38 = vrot.slane %v2455_v40, 1 }
  0x50   : > { %5052 = vst [vmem:[#allocation52_spill] sm:$0xff] %v2479_v6  ;;  %5053 = vst [vmem:[#allocation53_spill] sm:$0xff] %v2482_v60  ;;  %v460_v60 = vrot.slane %v2293_v61, 1  ;;  %v461_v6 = vrot.slane %v2303_v4, 1  ;;  %v467_v4 = vrot.slane %v2385_v57, 1  ;;  %v469_v61 = vrot.slane %v2413_v19, 1 }
  0x51   : > { %5054 = vst [vmem:[#allocation54_spill] sm:$0xff] %v2485_v9  ;;  %5055 = vst [vmem:[#allocation55_spill] sm:$0xff] %v2489_v3  ;;  %v2505_v3 = vld [vmem:[#allocation2 + $0x28] sm:$0xff]  ;;  %v2523_v9 = vld [vmem:[#allocation2 + $0xa0] sm:$0xff]  ;;  %v475_v19 = vrot.slane %v2511_v48, 1  ;;  %v476_v25 = vrot.slane %v2513_v63, 1 }
  0x52   : > { %5056 = vst [vmem:[#allocation56_spill] sm:$0xff] %v2492_v35  ;;  %5057 = vst [vmem:[#allocation57_spill] sm:$0xff] %v2498_v16  ;;  %v459_v35 = vrot.slane %v2283_v55, 1  ;;  %v464_v16 = vrot.slane %v2343_v23, 1  ;;  %v2541_v55 = vld [vmem:[#allocation2 + $0x118] sm:$0xff]  ;;  %v473_v23 = vrot.slane %v2503_v44, 1 }
  0x53   : > { %5058 = vst [vmem:[#allocation58_spill] sm:$0xff] %v2503_v44  ;;  %5059 = vst [vmem:[#allocation59_spill] sm:$0xff] %v2505_v3  ;;  %v474_v37 = vrot.slane %v2505_v3, 1  ;;  %v2557_v57 = vld [vmem:[#allocation2 + $0x178] sm:$0xff]  ;;  %v477_v12 = vrot.slane %v2515_v31, 1  ;;  %v479_v33 = vrot.slane %v2523_v9, 1 }
  0x54   : > { %5060 = vst [vmem:[#allocation60_spill] sm:$0xff] %v2511_v48  ;;  %5061 = vst [vmem:[#allocation61_spill] sm:$0xff] %v2513_v63  ;;  %v480_v40 = vrot.slane %v2525_v59, 1  ;;  %v481_v44 = vrot.slane %v2531_v0, 1  ;;  %v482_v3 = vrot.slane %v2533_v30, 1  ;;  %v483_v27 = vrot.slane %v2539_v46, 1 }
  0x55   : > { %5062 = vst [vmem:[#allocation62_spill] sm:$0xff] %v2515_v31  ;;  %5063 = vst [vmem:[#allocation63_spill] sm:$0xff] %v2517_v47  ;;  %v484_v22 = vrot.slane %v2541_v55, 1  ;;  %v485_v48 = vrot.slane %v2547_v51, 1  ;;  %v486_v63 = vrot.slane %v2549_v17, 1  ;;  %v487_v31 = vrot.slane %v2555_v36, 1 }
  0x56   : > { %5064 = vst [vmem:[#allocation64_spill] sm:$0xff] %v2523_v9  ;;  %5065 = vst [vmem:[#allocation65_spill] sm:$0xff] %v2525_v59  ;;  %v488_v47 = vrot.slane %v2557_v57, 1  ;;  %v5074_v9 = vrot.slane %v2247_v42, 1 }
  0x57   : > { %5066 = vst [vmem:[#allocation66_spill] sm:$0xff] %v2531_v0  ;;  %5067 = vst [vmem:[#allocation67_spill] sm:$0xff] %v2533_v30  ;;  %v2579_v30 = vsel %vm491_vm3, %v458_v54, %v474_v37  ;;  %v2603_v37 = vsel %vm491_vm3, %v464_v16, %v480_v40  ;;  %v2627_v40 = vsel %vm491_vm3, %v470_v52, %v486_v63  ;;  %v5124_v0 = vld [vmem:[#allocation24_spill] sm:$0xff] }
  0x58   : > { %5068 = vst [vmem:[#allocation68_spill] sm:$0xff] %v2539_v46  ;;  %5069 = vst [vmem:[#allocation69_spill] sm:$0xff] %v2541_v55  ;;  %v492_v59 = vsel %vm491_vm3, %v5074_v9, %v473_v23  ;;  %v2583_v55 = vsel %vm491_vm3, %v459_v35, %v475_v19  ;;  %v2599_v23 = vsel %vm491_vm3, %v463_v53, %v479_v33  ;;  %v5123_v46 = vld [vmem:[#allocation23_spill] sm:$0xff] }
  0x59   : > { %5070 = vst [vmem:[#allocation70_spill] sm:$0xff] %v2547_v51  ;;  %5071 = vst [vmem:[#allocation71_spill] sm:$0xff] %v2549_v17  ;;  %v2587_v17 = vsel %vm491_vm3, %v460_v60, %v476_v25  ;;  %v2607_v19 = vsel %vm491_vm3, %v465_v49, %v481_v44  ;;  %v2619_v25 = vsel %vm491_vm3, %v468_v10, %v484_v22  ;;  %v5091_v22 = vrot.slane %v2243_v41, 1 }
  0x5a   : > { %5072 = vst [vmem:[#allocation72_spill] sm:$0xff] %v2555_v36  ;;  %5073 = vst [vmem:[#allocation73_spill] sm:$0xff] %v2557_v57  ;;  %v2591_v57 = vsel %vm491_vm3, %v461_v6, %v477_v12  ;;  %v2595_v36 = vsel %vm491_vm3, %v462_v1, %v478_v28  ;;  %v2611_v12 = vsel %vm491_vm3, %v466_v7, %v482_v3  ;;  %v5090_v3 = vrot.slane %v2247_v42, 1 }
  0x5b   : > { %5075 = vst [vmem:[#allocation74_spill] sm:$0xff] %v2579_v30  ;;  %5076 = vst [vmem:[#allocation75_spill] sm:$0xff] %v2583_v55  ;;  %v2615_v28 = vsel %vm491_vm3, %v467_v4, %v483_v27  ;;  %v2623_v33 = vsel %vm491_vm3, %v469_v61, %v485_v48  ;;  %v2631_v9 = vsel %vm491_vm3, %v471_v29, %v487_v31  ;;  %v5092_v48 = vrot.slane %v2249_v43, 1 }
  0x5c   : > { %5077 = vst [vmem:[#allocation76_spill] sm:$0xff] %v2587_v17  ;;  %5078 = vst [vmem:[#allocation77_spill] sm:$0xff] %v2591_v57  ;;  %v2635_v27 = vsel %vm491_vm3, %v472_v38, %v488_v47  ;;  %v508_v44 = vsel %vm491_vm3, %v5091_v22, %v5090_v3  ;;  %v5094_v31 = vrot.slane %v2270_v50, 1  ;;  %v5096_v47 = vrot.slane %v2285_v56, 1 }
  0x5d   : > { %5079 = vst [vmem:[#allocation78_spill] sm:$0xff] %v2595_v36  ;;  %5080 = vst [vmem:[#allocation79_spill] sm:$0xff] %v2599_v23  ;;  %v2647_v63 = vsel %vm491_vm3, %v5092_v48, %v458_v54  ;;  %v5098_v3 = vrot.slane %v2295_v62, 1  ;;  %v5100_v54 = vrot.slane %v2305_v5, 1 }
  0x5e   : > { %5081 = vst [vmem:[#allocation80_spill] sm:$0xff] %v2603_v37  ;;  %5082 = vst [vmem:[#allocation81_spill] sm:$0xff] %v2607_v19  ;;  %v2653_v51 = vsel %vm491_vm3, %v5094_v31, %v459_v35  ;;  %v2659_v41 = vsel %vm491_vm3, %v5096_v47, %v460_v60  ;;  %v5102_v35 = vrot.slane %v2317_v11, 1  ;;  %v5104_v60 = vrot.slane %v2331_v18, 1 }
  0x5f   : > { %5083 = vst [vmem:[#allocation82_spill] sm:$0xff] %v2611_v12  ;;  %5084 = vst [vmem:[#allocation83_spill] sm:$0xff] %v2615_v28  ;;  %v2665_v22 = vsel %vm491_vm3, %v5098_v3, %v461_v6  ;;  %v2671_v48 = vsel %vm491_vm3, %v5100_v54, %v462_v1  ;;  %v5106_v6 = vrot.slane %v2345_v24, 1  ;;  %v5108_v1 = vrot.slane %v2359_v32, 1 }
  0x60   : > { %5085 = vst [vmem:[#allocation84_spill] sm:$0xff] %v2619_v25  ;;  %5086 = vst [vmem:[#allocation85_spill] sm:$0xff] %v2623_v33  ;;  %v2677_v31 = vsel %vm491_vm3, %v5102_v35, %v463_v53  ;;  %v2683_v47 = vsel %vm491_vm3, %v5104_v60, %v464_v16  ;;  %v5110_v53 = vrot.slane %v2373_v39, 1  ;;  %v5112_v16 = vrot.slane %v2387_v58, 1 }
  0x61   : > { %5087 = vst [vmem:[#allocation86_spill] sm:$0xff] %v2627_v40  ;;  %5088 = vst [vmem:[#allocation87_spill] sm:$0xff] %v2631_v9  ;;  %v2689_v3 = vsel %vm491_vm3, %v5106_v6, %v465_v49  ;;  %v2695_v54 = vsel %vm491_vm3, %v5108_v1, %v466_v7  ;;  %v5114_v49 = vrot.slane %v2401_v13, 1  ;;  %v5116_v7 = vrot.slane %v2415_v20, 1 }
  0x62   : > { %5089 = vst [vmem:[#allocation88_spill] sm:$0xff] %v2635_v27  ;;  %5093 = vst [vmem:[#allocation89_spill] sm:$0xff] %v2647_v63  ;;  %v2701_v35 = vsel %vm491_vm3, %v5110_v53, %v467_v4  ;;  %v2707_v60 = vsel %vm491_vm3, %v5112_v16, %v468_v10  ;;  %v5118_v4 = vrot.slane %v2429_v26, 1  ;;  %v5120_v10 = vrot.slane %v2443_v34, 1 }
  0x63   : > { %5095 = vst [vmem:[#allocation90_spill] sm:$0xff] %v2653_v51  ;;  %5097 = vst [vmem:[#allocation91_spill] sm:$0xff] %v2659_v41  ;;  %v2713_v6 = vsel %vm491_vm3, %v5114_v49, %v469_v61  ;;  %v2719_v1 = vsel %vm491_vm3, %v5116_v7, %v470_v52  ;;  %v528_v61 = vmul.f32 %v2255_v45, %v508_v44 }
  0x64   : > { %5099 = vst [vmem:[#allocation92_spill] sm:$0xff] %v2665_v22  ;;  %5101 = vst [vmem:[#allocation93_spill] sm:$0xff] %v2671_v48  ;;  %v2725_v53 = vsel %vm491_vm3, %v5118_v4, %v471_v29  ;;  %v2731_v16 = vsel %vm491_vm3, %v5120_v10, %v472_v38  ;;  %v529_v49 = vmul.f32 %v2255_v45, %v492_v59 }
  0x65   : > { %5103 = vst [vmem:[#allocation94_spill] sm:$0xff] %v2677_v31  ;;  %5105 = vst [vmem:[#allocation95_spill] sm:$0xff] %v2683_v47  ;;  %v530_v52 = vmul.f32 %v2255_v45, %v2647_v63  ;;  %v531_v7 = vmul.f32 %v2255_v45, %v2579_v30  ;;  %v532_v29 = vmul.f32 %v2255_v45, %v2653_v51  ;;  %v5122_v63 = vld [vmem:[#allocation21_spill] sm:$0xff] }
  0x66   : > { %5107 = vst [vmem:[#allocation96_spill] sm:$0xff] %v2689_v3  ;;  %5109 = vst [vmem:[#allocation97_spill] sm:$0xff] %v2695_v54  ;;  %v533_v4 = vmul.f32 %v2255_v45, %v2583_v55  ;;  %v534_v38 = vmul.f32 %v2255_v45, %v2659_v41  ;;  %v535_v44 = vmul.f32 %v2255_v45, %v2587_v17 }
  0x67   : > { %5111 = vst [vmem:[#allocation98_spill] sm:$0xff] %v2701_v35  ;;  %5113 = vst [vmem:[#allocation99_spill] sm:$0xff] %v2707_v60  ;;  %v536_v59 = vmul.f32 %v2255_v45, %v2665_v22  ;;  %v537_v10 = vmul.f32 %v2255_v45, %v2591_v57  ;;  %v538_v30 = vmul.f32 %v2255_v45, %v2671_v48 }
  0x68   : > { %5115 = vst [vmem:[#allocation100_spill] sm:$0xff] %v2713_v6  ;;  %5117 = vst [vmem:[#allocation101_spill] sm:$0xff] %v2719_v1  ;;  %v539_v51 = vmul.f32 %v2255_v45, %v2595_v36  ;;  %v540_v55 = vmul.f32 %v2255_v45, %v2677_v31  ;;  %v541_v41 = vmul.f32 %v2255_v45, %v2599_v23 }
  0x69   : > { %5119 = vst [vmem:[#allocation102_spill] sm:$0xff] %v2725_v53  ;;  %5121 = vst [vmem:[#allocation103_spill] sm:$0xff] %v2731_v16  ;;  %v542_v17 = vmul.f32 %v2255_v45, %v2683_v47  ;;  %v543_v22 = vmul.f32 %v2255_v45, %v2603_v37  ;;  %v544_v57 = vmul.f32 %v2255_v45, %v2689_v3 }
  0x6a   : > { %v545_v48 = vmul.f32 %v2255_v45, %v2607_v19  ;;  %v546_v36 = vmul.f32 %v2255_v45, %v2695_v54  ;;  %v547_v31 = vmul.f32 %v2255_v45, %v2611_v12  ;;  %v548_v23 = vmul.f32 %v2255_v45, %v2701_v35 }
  0x6b   : > { %v549_v47 = vmul.f32 %v2255_v45, %v2615_v28  ;;  %v550_v37 = vmul.f32 %v2255_v45, %v2707_v60  ;;  %v551_v3 = vmul.f32 %v2255_v45, %v2619_v25  ;;  %v552_v19 = vmul.f32 %v2255_v45, %v2713_v6 }
  0x6c   : > { %v553_v54 = vmul.f32 %v2255_v45, %v2623_v33  ;;  %v554_v12 = vmul.f32 %v2255_v45, %v2719_v1  ;;  %v555_v35 = vmul.f32 %v2255_v45, %v2627_v40  ;;  %v556_v28 = vmul.f32 %v2255_v45, %v2725_v53 }
  0x6d   : > { %v557_v60 = vmul.f32 %v2255_v45, %v2631_v9  ;;  %v558_v25 = vmul.f32 %v2255_v45, %v2731_v16  ;;  %v559_v6 = vmul.f32 %v2255_v45, %v2635_v27  ;;  %v2796_v33 = vadd.f32 %v528_v61, %v2312_v8  ;;  %v5126_v8 = vld [vmem:[#allocation26_spill] sm:$0xff]  ;;  %v5180_v27 = vld [vmem:[#allocation19_spill] sm:$0xff] }
  0x6e   : > { %v2799_v1 = vadd.f32 %v529_v49, %v2324_v14  ;;  %v2802_v40 = vadd.f32 %v530_v52, %v2327_v15  ;;  %v2805_v53 = vadd.f32 %v531_v7, %v2338_v21  ;;  %v2808_v9 = vadd.f32 %v532_v29, %v5122_v63  ;;  %v5128_v14 = vld [vmem:[#allocation27_spill] sm:$0xff]  ;;  %v5130_v15 = vld [vmem:[#allocation29_spill] sm:$0xff]  ;;  %v5132_v21 = vld [vmem:[#allocation30_spill] sm:$0xff] }
  0x6f   : > { %v2811_v16 = vadd.f32 %v533_v4, %v5123_v46  ;;  %v2814_v45 = vadd.f32 %v534_v38, %v5124_v0  ;;  %v2817_v61 = vadd.f32 %v535_v44, %v5126_v8  ;;  %v2820_v49 = vadd.f32 %v536_v59, %v5128_v14  ;;  %v5134_v63 = vld [vmem:[#allocation32_spill] sm:$0xff]  ;;  %v5136_v46 = vld [vmem:[#allocation33_spill] sm:$0xff]  ;;  %v5138_v0 = vld [vmem:[#allocation35_spill] sm:$0xff] }
  0x70   : > { %v2823_v52 = vadd.f32 %v537_v10, %v5130_v15  ;;  %v2826_v7 = vadd.f32 %v538_v30, %v5132_v21  ;;  %v2829_v29 = vadd.f32 %v539_v51, %v5134_v63  ;;  %v2832_v4 = vadd.f32 %v540_v55, %v5136_v46  ;;  %v5140_v44 = vld [vmem:[#allocation36_spill] sm:$0xff]  ;;  %v5142_v59 = vld [vmem:[#allocation38_spill] sm:$0xff]  ;;  %v5144_v10 = vld [vmem:[#allocation39_spill] sm:$0xff] }
  0x71   : > { %5125 = vst [vmem:[#allocation21_spill] sm:$0xff] %v2814_v45  ;;  %5127 = vst [vmem:[#allocation23_spill] sm:$0xff] %v2817_v61  ;;  %v2835_v38 = vadd.f32 %v541_v41, %v5138_v0  ;;  %v2838_v8 = vadd.f32 %v542_v17, %v5140_v44  ;;  %v2841_v14 = vadd.f32 %v543_v22, %v5142_v59  ;;  %v5146_v30 = vld [vmem:[#allocation41_spill] sm:$0xff]  ;;  %v5148_v51 = vld [vmem:[#allocation42_spill] sm:$0xff] }
  0x72   : > { %5129 = vst [vmem:[#allocation24_spill] sm:$0xff] %v2820_v49  ;;  %5131 = vst [vmem:[#allocation26_spill] sm:$0xff] %v2823_v52  ;;  %v2844_v15 = vadd.f32 %v544_v57, %v5144_v10  ;;  %v2847_v21 = vadd.f32 %v545_v48, %v5146_v30  ;;  %v2850_v63 = vadd.f32 %v546_v36, %v5148_v51  ;;  %v5150_v55 = vld [vmem:[#allocation44_spill] sm:$0xff]  ;;  %v5152_v41 = vld [vmem:[#allocation45_spill] sm:$0xff] }
  0x73   : > { %5133 = vst [vmem:[#allocation27_spill] sm:$0xff] %v2826_v7  ;;  %5135 = vst [vmem:[#allocation29_spill] sm:$0xff] %v2829_v29  ;;  %v2853_v46 = vadd.f32 %v547_v31, %v5150_v55  ;;  %v2856_v0 = vadd.f32 %v548_v23, %v5152_v41  ;;  %v5154_v17 = vld [vmem:[#allocation47_spill] sm:$0xff]  ;;  %v5156_v22 = vld [vmem:[#allocation48_spill] sm:$0xff] }
  0x74   : > { %5137 = vst [vmem:[#allocation30_spill] sm:$0xff] %v2832_v4  ;;  %5139 = vst [vmem:[#allocation32_spill] sm:$0xff] %v2835_v38  ;;  %v2859_v44 = vadd.f32 %v549_v47, %v5154_v17  ;;  %v2862_v59 = vadd.f32 %v550_v37, %v5156_v22  ;;  %v5158_v57 = vld [vmem:[#allocation49_spill] sm:$0xff]  ;;  %v5160_v48 = vld [vmem:[#allocation50_spill] sm:$0xff] }
  0x75   : > { %5141 = vst [vmem:[#allocation33_spill] sm:$0xff] %v2838_v8  ;;  %5143 = vst [vmem:[#allocation35_spill] sm:$0xff] %v2841_v14  ;;  %v2865_v10 = vadd.f32 %v551_v3, %v5158_v57  ;;  %v2868_v30 = vadd.f32 %v552_v19, %v5160_v48  ;;  %v5162_v36 = vld [vmem:[#allocation51_spill] sm:$0xff]  ;;  %v5164_v31 = vld [vmem:[#allocation52_spill] sm:$0xff] }
  0x76   : > { %5145 = vst [vmem:[#allocation36_spill] sm:$0xff] %v2844_v15  ;;  %5147 = vst [vmem:[#allocation38_spill] sm:$0xff] %v2847_v21  ;;  %v2871_v51 = vadd.f32 %v553_v54, %v5162_v36  ;;  %v2874_v55 = vadd.f32 %v554_v12, %v5164_v31  ;;  %v5166_v23 = vld [vmem:[#allocation53_spill] sm:$0xff]  ;;  %v5168_v47 = vld [vmem:[#allocation54_spill] sm:$0xff] }
  0x77   : > { %5149 = vst [vmem:[#allocation39_spill] sm:$0xff] %v2850_v63  ;;  %5151 = vst [vmem:[#allocation41_spill] sm:$0xff] %v2853_v46  ;;  %v2877_v41 = vadd.f32 %v555_v35, %v5166_v23  ;;  %v2880_v17 = vadd.f32 %v556_v28, %v5168_v47  ;;  %v5170_v37 = vld [vmem:[#allocation55_spill] sm:$0xff]  ;;  %v5172_v3 = vld [vmem:[#allocation56_spill] sm:$0xff]  ;;  %v608_v28 = vrot.slane %v2247_v42, 2  ;;  %v613_v47 = vrot.slane %v5180_v27, 2 }
  0x78   : > { %5153 = vst [vmem:[#allocation42_spill] sm:$0xff] %v2856_v0  ;;  %5155 = vst [vmem:[#allocation44_spill] sm:$0xff] %v2859_v44  ;;  %v2883_v22 = vadd.f32 %v557_v60, %v5170_v37  ;;  %v2886_v57 = vadd.f32 %v558_v25, %v5172_v3  ;;  %v5174_v19 = vld [vmem:[#allocation57_spill] sm:$0xff]  ;;  %v5177_v36 = vld [vmem:[#allocation16_spill] sm:$0xff] }
  0x79   : > { %5157 = vst [vmem:[#allocation45_spill] sm:$0xff] %v2862_v59  ;;  %5159 = vst [vmem:[#allocation47_spill] sm:$0xff] %v2865_v10  ;;  %v2889_v48 = vadd.f32 %v559_v6, %v5174_v19  ;;  %v5176_v35 = vld [vmem:[#allocation13_spill] sm:$0xff]  ;;  %v610_v60 = vrot.slane %v5177_v36, 2  ;;  %v5179_v54 = vld [vmem:[#allocation18_spill] sm:$0xff] }
  0x7a   : > { %5161 = vst [vmem:[#allocation48_spill] sm:$0xff] %v2868_v30  ;;  %5163 = vst [vmem:[#allocation49_spill] sm:$0xff] %v2871_v51  ;;  %v609_v25 = vrot.slane %v5176_v35, 2  ;;  %v5178_v12 = vld [vmem:[#allocation17_spill] sm:$0xff]  ;;  %v612_v23 = vrot.slane %v5179_v54, 2  ;;  %v5188_v30 = vld [vmem:[#allocation40_spill] sm:$0xff] }
  0x7b   : > { %5165 = vst [vmem:[#allocation50_spill] sm:$0xff] %v2874_v55  ;;  %5167 = vst [vmem:[#allocation51_spill] sm:$0xff] %v2877_v41  ;;  %v611_v6 = vrot.slane %v5178_v12, 2  ;;  %v5185_v41 = vld [vmem:[#allocation31_spill] sm:$0xff]  ;;  %v5186_v55 = vld [vmem:[#allocation34_spill] sm:$0xff]  ;;  %v621_v12 = vrot.slane %v5188_v30, 2 }
  0x7c   : > { %5169 = vst [vmem:[#allocation52_spill] sm:$0xff] %v2880_v17  ;;  %5171 = vst [vmem:[#allocation53_spill] sm:$0xff] %v2883_v22  ;;  %v5183_v22 = vld [vmem:[#allocation25_spill] sm:$0xff]  ;;  %v5184_v17 = vld [vmem:[#allocation28_spill] sm:$0xff]  ;;  %v618_v42 = vrot.slane %v5185_v41, 2  ;;  %v619_v35 = vrot.slane %v5186_v55, 2 }
  0x7d   : > { %5173 = vst [vmem:[#allocation54_spill] sm:$0xff] %v2886_v57  ;;  %5175 = vst [vmem:[#allocation55_spill] sm:$0xff] %v2889_v48  ;;  %v5181_v48 = vld [vmem:[#allocation20_spill] sm:$0xff]  ;;  %v5182_v57 = vld [vmem:[#allocation22_spill] sm:$0xff]  ;;  %v616_v19 = vrot.slane %v5183_v22, 2  ;;  %v617_v31 = vrot.slane %v5184_v17, 2 }
  0x7e   : > { %v614_v37 = vrot.slane %v5181_v48, 2  ;;  %v615_v3 = vrot.slane %v5182_v57, 2  ;;  %v5187_v51 = vld [vmem:[#allocation37_spill] sm:$0xff]  ;;  %v5189_v10 = vld [vmem:[#allocation43_spill] sm:$0xff]  ;;  %v5190_v59 = vld [vmem:[#allocation46_spill] sm:$0xff] }
  0x7f   : > { %v620_v36 = vrot.slane %v5187_v51, 2  ;;  %v622_v54 = vrot.slane %v5189_v10, 2  ;;  %v623_v27 = vrot.slane %v5190_v59, 2  ;;  %v5191_v44 = vld [vmem:[#allocation58_spill] sm:$0xff]  ;;  %v5192_v0 = vld [vmem:[#allocation59_spill] sm:$0xff]  ;;  %v5193_v46 = vld [vmem:[#allocation60_spill] sm:$0xff] }
  0x80   : > { %v624_v48 = vrot.slane %v5191_v44, 2  ;;  %v625_v57 = vrot.slane %v5192_v0, 2  ;;  %v626_v22 = vrot.slane %v5193_v46, 2  ;;  %v5194_v63 = vld [vmem:[#allocation61_spill] sm:$0xff]  ;;  %v5195_v21 = vld [vmem:[#allocation62_spill] sm:$0xff]  ;;  %v5196_v15 = vld [vmem:[#allocation63_spill] sm:$0xff] }
  0x81   : > { %v627_v17 = vrot.slane %v5194_v63, 2  ;;  %v628_v41 = vrot.slane %v5195_v21, 2  ;;  %v629_v55 = vrot.slane %v5196_v15, 2  ;;  %v5197_v14 = vld [vmem:[#allocation64_spill] sm:$0xff]  ;;  %v5198_v8 = vld [vmem:[#allocation65_spill] sm:$0xff]  ;;  %v5199_v38 = vld [vmem:[#allocation66_spill] sm:$0xff] }
  0x82   : > { %v630_v51 = vrot.slane %v5197_v14, 2  ;;  %v631_v30 = vrot.slane %v5198_v8, 2  ;;  %v632_v10 = vrot.slane %v5199_v38, 2  ;;  %v5200_v4 = vld [vmem:[#allocation67_spill] sm:$0xff]  ;;  %v5201_v29 = vld [vmem:[#allocation68_spill] sm:$0xff]  ;;  %v5202_v7 = vld [vmem:[#allocation69_spill] sm:$0xff]  ;;  %v641_v14 = vsel %vm640_vm4, %v608_v28, %v624_v48 }
  0x83   : > { %v633_v59 = vrot.slane %v5200_v4, 2  ;;  %v634_v44 = vrot.slane %v5201_v29, 2  ;;  %v635_v0 = vrot.slane %v5202_v7, 2  ;;  %v5203_v52 = vld [vmem:[#allocation70_spill] sm:$0xff]  ;;  %v5204_v49 = vld [vmem:[#allocation71_spill] sm:$0xff]  ;;  %v5205_v61 = vld [vmem:[#allocation72_spill] sm:$0xff]  ;;  %v2943_v38 = vsel %vm640_vm4, %v609_v25, %v625_v57 }
  0x84   : > { %v636_v46 = vrot.slane %v5203_v52, 2  ;;  %v637_v63 = vrot.slane %v5204_v49, 2  ;;  %v638_v21 = vrot.slane %v5205_v61, 2  ;;  %v5206_v45 = vld [vmem:[#allocation73_spill] sm:$0xff]  ;;  %5207 = vst [vmem:[#allocation56_spill] sm:$0xff] %v2943_v38  ;;  %v2947_v29 = vsel %vm640_vm4, %v610_v60, %v626_v22 }
  0x85   : > { %v639_v15 = vrot.slane %v5206_v45, 2  ;;  %5208 = vst [vmem:[#allocation57_spill] sm:$0xff] %v2947_v29  ;;  %v2951_v52 = vsel %vm640_vm4, %v611_v6, %v627_v17  ;;  %v2955_v61 = vsel %vm640_vm4, %v612_v23, %v628_v41  ;;  %v2959_v45 = vsel %vm640_vm4, %v613_v47, %v629_v55  ;;  %v5222_v17 = vld [vmem:[#allocation10_spill] sm:$0xff] }
  0x86   : > { %5209 = vst [vmem:[#allocation58_spill] sm:$0xff] %v2951_v52  ;;  %5210 = vst [vmem:[#allocation59_spill] sm:$0xff] %v2955_v61  ;;  %v2963_v49 = vsel %vm640_vm4, %v614_v37, %v630_v51  ;;  %v2967_v7 = vsel %vm640_vm4, %v615_v3, %v631_v30  ;;  %v2971_v4 = vsel %vm640_vm4, %v616_v19, %v632_v10  ;;  %v5223_v22 = vrot.slane %v5222_v17, 2 }
  0x87   : > { %5211 = vst [vmem:[#allocation60_spill] sm:$0xff] %v2959_v45  ;;  %5212 = vst [vmem:[#allocation61_spill] sm:$0xff] %v2963_v49  ;;  %v2975_v8 = vsel %vm640_vm4, %v617_v31, %v633_v59  ;;  %v2979_v55 = vsel %vm640_vm4, %v618_v42, %v634_v44  ;;  %v2983_v51 = vsel %vm640_vm4, %v619_v35, %v635_v0  ;;  %v5224_v48 = vrot.slane %v2249_v43, 2 }
  0x88   : > { %5213 = vst [vmem:[#allocation62_spill] sm:$0xff] %v2967_v7  ;;  %5214 = vst [vmem:[#allocation63_spill] sm:$0xff] %v2971_v4  ;;  %v2987_v30 = vsel %vm640_vm4, %v620_v36, %v636_v46  ;;  %v2991_v10 = vsel %vm640_vm4, %v621_v12, %v637_v63  ;;  %v2995_v59 = vsel %vm640_vm4, %v622_v54, %v638_v21  ;;  %v5226_v0 = vrot.slane %v2270_v50, 2 }
  0x89   : > { %5215 = vst [vmem:[#allocation64_spill] sm:$0xff] %v2975_v8  ;;  %5216 = vst [vmem:[#allocation65_spill] sm:$0xff] %v2979_v55  ;;  %v2999_v41 = vsel %vm640_vm4, %v623_v27, %v639_v15  ;;  %v657_v57 = vsel %vm640_vm4, %v5223_v22, %v608_v28  ;;  %v3009_v44 = vsel %vm640_vm4, %v5224_v48, %v609_v25  ;;  %v5228_v63 = vrot.slane %v2285_v56, 2 }
  0x8a   : > { %5217 = vst [vmem:[#allocation66_spill] sm:$0xff] %v2983_v51  ;;  %5218 = vst [vmem:[#allocation67_spill] sm:$0xff] %v2987_v30  ;;  %v3015_v46 = vsel %vm640_vm4, %v5226_v0, %v610_v60  ;;  %v5230_v28 = vrot.slane %v2295_v62, 2  ;;  %v5232_v25 = vrot.slane %v2305_v5, 2  ;;  %v5234_v60 = vrot.slane %v2317_v11, 2 }
  0x8b   : > { %5219 = vst [vmem:[#allocation68_spill] sm:$0xff] %v2991_v10  ;;  %5220 = vst [vmem:[#allocation69_spill] sm:$0xff] %v2995_v59  ;;  %v3021_v21 = vsel %vm640_vm4, %v5228_v63, %v611_v6  ;;  %v5236_v6 = vrot.slane %v2331_v18, 2 }
  0x8c   : > { %5221 = vst [vmem:[#allocation70_spill] sm:$0xff] %v2999_v41  ;;  %5225 = vst [vmem:[#allocation71_spill] sm:$0xff] %v3009_v44  ;;  %v3027_v15 = vsel %vm640_vm4, %v5230_v28, %v612_v23  ;;  %v3033_v17 = vsel %vm640_vm4, %v5232_v25, %v613_v47  ;;  %v3039_v22 = vsel %vm640_vm4, %v5234_v60, %v614_v37  ;;  %v5238_v23 = vrot.slane %v2345_v24, 2 }
  0x8d   : > { %5227 = vst [vmem:[#allocation72_spill] sm:$0xff] %v3015_v46  ;;  %5229 = vst [vmem:[#allocation73_spill] sm:$0xff] %v3021_v21  ;;  %v3045_v48 = vsel %vm640_vm4, %v5236_v6, %v615_v3  ;;  %v5240_v47 = vrot.slane %v2359_v32, 2  ;;  %v5242_v37 = vrot.slane %v2373_v39, 2  ;;  %v5244_v3 = vrot.slane %v2387_v58, 2 }
  0x8e   : > { %5231 = vst [vmem:[#allocation10_spill] sm:$0xff] %v3027_v15  ;;  %5233 = vst [vmem:[#allocation104_spill] sm:$0xff] %v3033_v17  ;;  %v3051_v0 = vsel %vm640_vm4, %v5238_v23, %v616_v19  ;;  %v5246_v19 = vrot.slane %v2401_v13, 2 }
  0x8f   : > { %5235 = vst [vmem:[#allocation105_spill] sm:$0xff] %v3039_v22  ;;  %5237 = vst [vmem:[#allocation106_spill] sm:$0xff] %v3045_v48  ;;  %v3057_v63 = vsel %vm640_vm4, %v5240_v47, %v617_v31  ;;  %v3063_v28 = vsel %vm640_vm4, %v5242_v37, %v618_v42  ;;  %v3069_v25 = vsel %vm640_vm4, %v5244_v3, %v619_v35  ;;  %v5248_v31 = vrot.slane %v2415_v20, 2 }
  0x90   : > { %5239 = vst [vmem:[#allocation107_spill] sm:$0xff] %v3051_v0  ;;  %5241 = vst [vmem:[#allocation108_spill] sm:$0xff] %v3057_v63  ;;  %v3075_v60 = vsel %vm640_vm4, %v5246_v19, %v620_v36  ;;  %v5250_v42 = vrot.slane %v2429_v26, 2  ;;  %v5252_v35 = vrot.slane %v2443_v34, 2  ;;  %v5254_v36 = vld [vmem:[#allocation14_spill] sm:$0xff] }
  0x91   : > { %5243 = vst [vmem:[#allocation109_spill] sm:$0xff] %v3063_v28  ;;  %5245 = vst [vmem:[#allocation110_spill] sm:$0xff] %v3069_v25  ;;  %v3081_v6 = vsel %vm640_vm4, %v5248_v31, %v621_v12  ;;  %v677_v37 = vmul.f32 %v5254_v36, %v657_v57  ;;  %v678_v3 = vmul.f32 %v5254_v36, %v641_v14 }
  0x92   : > { %5247 = vst [vmem:[#allocation111_spill] sm:$0xff] %v3075_v60  ;;  %5249 = vst [vmem:[#allocation112_spill] sm:$0xff] %v3081_v6  ;;  %v3087_v23 = vsel %vm640_vm4, %v5250_v42, %v622_v54  ;;  %v3093_v47 = vsel %vm640_vm4, %v5252_v35, %v623_v27  ;;  %v679_v12 = vmul.f32 %v5254_v36, %v3009_v44  ;;  %v3283_v44 = vld [vmem:[#allocation2 + $0x180] sm:$0xff] }
  0x93   : > { %5251 = vst [vmem:[#allocation113_spill] sm:$0xff] %v3087_v23  ;;  %5253 = vst [vmem:[#allocation114_spill] sm:$0xff] %v3093_v47  ;;  %v680_v19 = vmul.f32 %v5254_v36, %v2943_v38  ;;  %v681_v54 = vmul.f32 %v5254_v36, %v3015_v46  ;;  %v682_v31 = vmul.f32 %v5254_v36, %v2947_v29  ;;  %v5255_v38 = vld [vmem:[#allocation21_spill] sm:$0xff] }
  0x94   : > { %v683_v27 = vmul.f32 %v5254_v36, %v3021_v21  ;;  %v684_v57 = vmul.f32 %v5254_v36, %v2951_v52  ;;  %v685_v14 = vmul.f32 %v5254_v36, %v3027_v15  ;;  %v686_v42 = vmul.f32 %v5254_v36, %v2955_v61 }
  0x95   : > { %v687_v35 = vmul.f32 %v5254_v36, %v3033_v17  ;;  %v688_v46 = vmul.f32 %v5254_v36, %v2959_v45  ;;  %v689_v29 = vmul.f32 %v5254_v36, %v3039_v22  ;;  %v690_v21 = vmul.f32 %v5254_v36, %v2963_v49 }
  0x96   : > { %v691_v52 = vmul.f32 %v5254_v36, %v3045_v48  ;;  %v692_v15 = vmul.f32 %v5254_v36, %v2967_v7  ;;  %v693_v61 = vmul.f32 %v5254_v36, %v3051_v0  ;;  %v694_v17 = vmul.f32 %v5254_v36, %v2971_v4 }
  0x97   : > { %v695_v45 = vmul.f32 %v5254_v36, %v3057_v63  ;;  %v696_v22 = vmul.f32 %v5254_v36, %v2975_v8  ;;  %v697_v49 = vmul.f32 %v5254_v36, %v3063_v28  ;;  %v698_v48 = vmul.f32 %v5254_v36, %v2979_v55 }
  0x98   : > { %v699_v7 = vmul.f32 %v5254_v36, %v3069_v25  ;;  %v700_v0 = vmul.f32 %v5254_v36, %v2983_v51  ;;  %v701_v4 = vmul.f32 %v5254_v36, %v3075_v60  ;;  %v702_v63 = vmul.f32 %v5254_v36, %v2987_v30 }
  0x99   : > { %v703_v8 = vmul.f32 %v5254_v36, %v3081_v6  ;;  %v704_v28 = vmul.f32 %v5254_v36, %v2991_v10  ;;  %v705_v55 = vmul.f32 %v5254_v36, %v3087_v23  ;;  %v706_v25 = vmul.f32 %v5254_v36, %v2995_v59 }
  0x9a   : > { %v707_v51 = vmul.f32 %v5254_v36, %v3093_v47  ;;  %v708_v60 = vmul.f32 %v5254_v36, %v2999_v41  ;;  %v3158_v30 = vadd.f32 %v677_v37, %v2796_v33  ;;  %v3161_v6 = vadd.f32 %v678_v3, %v2799_v1  ;;  %v5256_v33 = vld [vmem:[#allocation23_spill] sm:$0xff]  ;;  %v5257_v1 = vld [vmem:[#allocation24_spill] sm:$0xff]  ;;  %v5296_v41 = vld [vmem:[#allocation22_spill] sm:$0xff] }
  0x9b   : > { %v3164_v10 = vadd.f32 %v679_v12, %v2802_v40  ;;  %v3167_v23 = vadd.f32 %v680_v19, %v2805_v53  ;;  %v3170_v59 = vadd.f32 %v681_v54, %v2808_v9  ;;  %v3173_v47 = vadd.f32 %v682_v31, %v2811_v16  ;;  %v5258_v40 = vld [vmem:[#allocation26_spill] sm:$0xff]  ;;  %v5259_v53 = vld [vmem:[#allocation27_spill] sm:$0xff]  ;;  %v5260_v9 = vld [vmem:[#allocation29_spill] sm:$0xff] }
  0x9c   : > { %v3176_v36 = vadd.f32 %v683_v27, %v5255_v38  ;;  %v3179_v37 = vadd.f32 %v684_v57, %v5256_v33  ;;  %v3182_v3 = vadd.f32 %v685_v14, %v5257_v1  ;;  %v3185_v12 = vadd.f32 %v686_v42, %v5258_v40  ;;  %v5261_v16 = vld [vmem:[#allocation30_spill] sm:$0xff]  ;;  %v5262_v38 = vld [vmem:[#allocation32_spill] sm:$0xff]  ;;  %v5263_v57 = vld [vmem:[#allocation33_spill] sm:$0xff] }
  0x9d   : > { %v3188_v19 = vadd.f32 %v687_v35, %v5259_v53  ;;  %v3191_v54 = vadd.f32 %v688_v46, %v5260_v9  ;;  %v3194_v31 = vadd.f32 %v689_v29, %v5261_v16  ;;  %v3197_v27 = vadd.f32 %v690_v21, %v5262_v38  ;;  %v5264_v14 = vld [vmem:[#allocation35_spill] sm:$0xff]  ;;  %v5265_v42 = vld [vmem:[#allocation36_spill] sm:$0xff]  ;;  %v5266_v35 = vld [vmem:[#allocation38_spill] sm:$0xff]  ;;  %5297 = vst [vmem:[#allocation32_spill] sm:$0xff] %v3283_v44 }
  0x9e   : > { %v3200_v33 = vadd.f32 %v691_v52, %v5263_v57  ;;  %v3203_v1 = vadd.f32 %v692_v15, %v5264_v14  ;;  %v3206_v40 = vadd.f32 %v693_v61, %v5265_v42  ;;  %v3209_v53 = vadd.f32 %v694_v17, %v5266_v35  ;;  %v5267_v46 = vld [vmem:[#allocation39_spill] sm:$0xff]  ;;  %v5268_v29 = vld [vmem:[#allocation41_spill] sm:$0xff]  ;;  %v5269_v21 = vld [vmem:[#allocation42_spill] sm:$0xff] }
  0x9f   : > { %v3212_v9 = vadd.f32 %v695_v45, %v5267_v46  ;;  %v3215_v16 = vadd.f32 %v696_v22, %v5268_v29  ;;  %v3218_v38 = vadd.f32 %v697_v49, %v5269_v21  ;;  %v5270_v52 = vld [vmem:[#allocation44_spill] sm:$0xff]  ;;  %v5271_v15 = vld [vmem:[#allocation45_spill] sm:$0xff]  ;;  %v5272_v61 = vld [vmem:[#allocation47_spill] sm:$0xff] }
  0xa0   : > { %v3221_v57 = vadd.f32 %v698_v48, %v5270_v52  ;;  %v3224_v14 = vadd.f32 %v699_v7, %v5271_v15  ;;  %v3227_v42 = vadd.f32 %v700_v0, %v5272_v61  ;;  %v5273_v17 = vld [vmem:[#allocation48_spill] sm:$0xff]  ;;  %v5275_v45 = vld [vmem:[#allocation49_spill] sm:$0xff]  ;;  %v5277_v22 = vld [vmem:[#allocation50_spill] sm:$0xff] }
  0xa1   : > { %v3230_v35 = vadd.f32 %v701_v4, %v5273_v17  ;;  %v3233_v46 = vadd.f32 %v702_v63, %v5275_v45  ;;  %v3236_v29 = vadd.f32 %v703_v8, %v5277_v22  ;;  %v5279_v49 = vld [vmem:[#allocation51_spill] sm:$0xff]  ;;  %v5281_v48 = vld [vmem:[#allocation52_spill] sm:$0xff]  ;;  %v5283_v7 = vld [vmem:[#allocation53_spill] sm:$0xff] }
  0xa2   : > { %v3239_v21 = vadd.f32 %v704_v28, %v5279_v49  ;;  %v3242_v52 = vadd.f32 %v705_v55, %v5281_v48  ;;  %v3245_v15 = vadd.f32 %v706_v25, %v5283_v7  ;;  %v5285_v0 = vld [vmem:[#allocation54_spill] sm:$0xff]  ;;  %v5287_v4 = vld [vmem:[#allocation55_spill] sm:$0xff]  ;;  %v5290_v8 = vld [vmem:[#allocation13_spill] sm:$0xff] }
  0xa3   : > { %5274 = vst [vmem:[#allocation14_spill] sm:$0xff] %v3230_v35  ;;  %5276 = vst [vmem:[#allocation21_spill] sm:$0xff] %v3233_v46  ;;  %v3248_v61 = vadd.f32 %v707_v51, %v5285_v0  ;;  %v3251_v17 = vadd.f32 %v708_v60, %v5287_v4  ;;  %v5289_v63 = vld [vmem:[#allocation11_spill] sm:$0xff]  ;;  %v5291_v55 = vld [vmem:[#allocation16_spill] sm:$0xff] }
  0xa4   : > { %5278 = vst [vmem:[#allocation23_spill] sm:$0xff] %v3236_v29  ;;  %5280 = vst [vmem:[#allocation24_spill] sm:$0xff] %v3239_v21  ;;  %v793_v45 = vmul.f32 %v5289_v63, %v2249_v43  ;;  %v794_v22 = vmul.f32 %v5289_v63, %v5290_v8  ;;  %v795_v28 = vmul.f32 %v5289_v63, %v2270_v50  ;;  %v5292_v51 = vld [vmem:[#allocation17_spill] sm:$0xff]  ;;  %v5293_v7 = vld [vmem:[#allocation18_spill] sm:$0xff] }
  0xa5   : > { %5282 = vst [vmem:[#allocation26_spill] sm:$0xff] %v3242_v52  ;;  %5284 = vst [vmem:[#allocation27_spill] sm:$0xff] %v3245_v15  ;;  %v796_v49 = vmul.f32 %v5289_v63, %v5291_v55  ;;  %v797_v25 = vmul.f32 %v5289_v63, %v2285_v56  ;;  %v798_v48 = vmul.f32 %v5289_v63, %v5292_v51  ;;  %v5294_v4 = vld [vmem:[#allocation19_spill] sm:$0xff]  ;;  %v5295_v55 = vld [vmem:[#allocation20_spill] sm:$0xff] }
  0xa6   : > { %5286 = vst [vmem:[#allocation29_spill] sm:$0xff] %v3248_v61  ;;  %5288 = vst [vmem:[#allocation30_spill] sm:$0xff] %v3251_v17  ;;  %v799_v60 = vmul.f32 %v5289_v63, %v2295_v62  ;;  %v800_v43 = vmul.f32 %v5289_v63, %v5293_v7  ;;  %v801_v0 = vmul.f32 %v5289_v63, %v2305_v5  ;;  %v5298_v5 = vld [vmem:[#allocation25_spill] sm:$0xff]  ;;  %v5300_v17 = vld [vmem:[#allocation31_spill] sm:$0xff] }
  0xa7   : > { %v802_v50 = vmul.f32 %v5289_v63, %v5294_v4  ;;  %v803_v8 = vmul.f32 %v5289_v63, %v2317_v11  ;;  %v804_v56 = vmul.f32 %v5289_v63, %v5295_v55  ;;  %v805_v51 = vmul.f32 %v5289_v63, %v2331_v18  ;;  %v5301_v61 = vld [vmem:[#allocation34_spill] sm:$0xff]  ;;  %v5302_v52 = vld [vmem:[#allocation37_spill] sm:$0xff]  ;;  %v5303_v21 = vld [vmem:[#allocation40_spill] sm:$0xff] }
  0xa8   : > { %v806_v62 = vmul.f32 %v5289_v63, %v5296_v41  ;;  %v807_v7 = vmul.f32 %v5289_v63, %v2345_v24  ;;  %v808_v4 = vmul.f32 %v5289_v63, %v5298_v5  ;;  %v809_v11 = vmul.f32 %v5289_v63, %v2359_v32  ;;  %v3309_v29 = vld [vmem:[#allocation2 + $0x188] sm:$0xff]  ;;  %v5306_v46 = vld [vmem:[#allocation46_spill] sm:$0xff] }
  0xa9   : > { %v810_v55 = vmul.f32 %v5289_v63, %v5299_v2  ;;  %v811_v18 = vmul.f32 %v5289_v63, %v2373_v39  ;;  %v812_v41 = vmul.f32 %v5289_v63, %v5300_v17  ;;  %v813_v24 = vmul.f32 %v5289_v63, %v2387_v58  ;;  %5304 = vst [vmem:[#allocation33_spill] sm:$0xff] %v3309_v29  ;;  %v5305_v58 = vld [vmem:[#allocation43_spill] sm:$0xff] }
  0xaa   : > { %v814_v15 = vmul.f32 %v5289_v63, %v5301_v61  ;;  %v815_v5 = vmul.f32 %v5289_v63, %v2401_v13  ;;  %v816_v32 = vmul.f32 %v5289_v63, %v5302_v52  ;;  %v817_v2 = vmul.f32 %v5289_v63, %v2415_v20 }
  0xab   : > { %v818_v39 = vmul.f32 %v5289_v63, %v5303_v21  ;;  %v819_v17 = vmul.f32 %v5289_v63, %v2429_v26  ;;  %v820_v61 = vmul.f32 %v5289_v63, %v5305_v58  ;;  %v821_v13 = vmul.f32 %v5289_v63, %v2443_v34 }
  0xac   : > { %v822_v52 = vmul.f32 %v5289_v63, %v5306_v46  ;;  %v823_v20 = vmul.f32 %v5289_v63, %v3283_v44  ;;  %v824_v21 = vmul.f32 %v5289_v63, %v3309_v29  ;;  %v3322_v35 = vadd.f32 %v793_v45, %v3158_v30 }
  0xad   : > { %v3325_v26 = vadd.f32 %v794_v22, %v3161_v6  ;;  %v3328_v58 = vadd.f32 %v795_v28, %v3164_v10  ;;  %v3331_v34 = vadd.f32 %v796_v49, %v3167_v23  ;;  %v3334_v46 = vadd.f32 %v797_v25, %v3170_v59 }
  0xae   : > { %v3337_v44 = vadd.f32 %v798_v48, %v3173_v47  ;;  %v3340_v63 = vadd.f32 %v799_v60, %v3176_v36  ;;  %v3343_v30 = vadd.f32 %v800_v43, %v3179_v37  ;;  %v3346_v6 = vadd.f32 %v801_v0, %v3182_v3  ;;  %v3366_v3 = vld [vmem:[#allocation2 + $0x190] sm:$0xff]  ;;  %v5319_v43 = vld [vmem:[#allocation27_spill] sm:$0xff] }
  0xaf   : > { %v3349_v10 = vadd.f32 %v802_v50, %v3185_v12  ;;  %v3352_v23 = vadd.f32 %v803_v8, %v3188_v19  ;;  %v3355_v59 = vadd.f32 %v804_v56, %v3191_v54  ;;  %v3358_v47 = vadd.f32 %v805_v51, %v3194_v31  ;;  %5307 = vst [vmem:[#allocation35_spill] sm:$0xff] %v3366_v3  ;;  %v5321_v50 = vld [vmem:[#allocation29_spill] sm:$0xff]  ;;  %v5323_v56 = vld [vmem:[#allocation30_spill] sm:$0xff] }
  0xb0   : > { %v3361_v36 = vadd.f32 %v806_v62, %v3197_v27  ;;  %v3364_v37 = vadd.f32 %v807_v7, %v3200_v33  ;;  %v3369_v12 = vadd.f32 %v808_v4, %v3203_v1  ;;  %v3372_v19 = vadd.f32 %v809_v11, %v3206_v40  ;;  %v5325_v62 = vld [vmem:[#allocation89_spill] sm:$0xff]  ;;  %v5326_v7 = vld [vmem:[#allocation12_spill] sm:$0xff]  ;;  %v5327_v11 = vld [vmem:[#allocation74_spill] sm:$0xff] }
  0xb1   : > { %v3375_v54 = vadd.f32 %v810_v55, %v3209_v53  ;;  %v3378_v31 = vadd.f32 %v811_v18, %v3212_v9  ;;  %v3381_v27 = vadd.f32 %v812_v41, %v3215_v16  ;;  %v3384_v33 = vadd.f32 %v813_v24, %v3218_v38  ;;  %v5308_v53 = vld [vmem:[#allocation14_spill] sm:$0xff]  ;;  %v5310_v9 = vld [vmem:[#allocation21_spill] sm:$0xff]  ;;  %v5312_v16 = vld [vmem:[#allocation23_spill] sm:$0xff] }
  0xb2   : > { %v3387_v45 = vadd.f32 %v814_v15, %v3221_v57  ;;  %v3390_v1 = vadd.f32 %v815_v5, %v3224_v14  ;;  %v3393_v40 = vadd.f32 %v816_v32, %v3227_v42  ;;  %v3396_v22 = vadd.f32 %v817_v2, %v5308_v53  ;;  %v5314_v38 = vld [vmem:[#allocation24_spill] sm:$0xff]  ;;  %v5317_v42 = vld [vmem:[#allocation26_spill] sm:$0xff]  ;;  %v5329_v24 = vld [vmem:[#allocation75_spill] sm:$0xff] }
  0xb3   : > { %v3399_v28 = vadd.f32 %v818_v39, %v5310_v9  ;;  %v3402_v49 = vadd.f32 %v819_v17, %v5312_v16  ;;  %v3405_v25 = vadd.f32 %v820_v61, %v5314_v38  ;;  %v5316_v57 = vld [vmem:[#allocation32_spill] sm:$0xff]  ;;  %v888_v14 = vrot.slane %v3309_v29, 1  ;;  %v5328_v18 = vld [vmem:[#allocation90_spill] sm:$0xff]  ;;  %v5333_v17 = vld [vmem:[#allocation91_spill] sm:$0xff] }
  0xb4   : > { %5309 = vst [vmem:[#allocation36_spill] sm:$0xff] %v3396_v22  ;;  %v872_v15 = vrot.slane %v5316_v57, 1  ;;  %v904_v48 = vrot.slane %v3366_v3, 1  ;;  %v3411_v60 = vadd.f32 %v821_v13, %v5317_v42  ;;  %v3414_v0 = vadd.f32 %v822_v52, %v5319_v43  ;;  %v5334_v13 = vld [vmem:[#allocation76_spill] sm:$0xff]  ;;  %v5336_v53 = vld [vmem:[#allocation77_spill] sm:$0xff]  ;;  %v5340_v43 = vld [vmem:[#allocation79_spill] sm:$0xff] }
  0xb5   : > { %5311 = vst [vmem:[#allocation38_spill] sm:$0xff] %v3399_v28  ;;  %5313 = vst [vmem:[#allocation39_spill] sm:$0xff] %v3402_v49  ;;  %v3417_v8 = vadd.f32 %v823_v20, %v5321_v50  ;;  %v3420_v51 = vadd.f32 %v824_v21, %v5323_v56  ;;  %v941_v4 = vmul.f32 %v5326_v7, %v5325_v62  ;;  %v5335_v20 = vld [vmem:[#allocation92_spill] sm:$0xff]  ;;  %v5337_v16 = vld [vmem:[#allocation93_spill] sm:$0xff] }
  0xb6   : > { %5315 = vst [vmem:[#allocation41_spill] sm:$0xff] %v3405_v25  ;;  %5318 = vst [vmem:[#allocation42_spill] sm:$0xff] %v3411_v60  ;;  %v942_v55 = vmul.f32 %v5326_v7, %v5327_v11  ;;  %v943_v41 = vmul.f32 %v5326_v7, %v5328_v18  ;;  %v944_v5 = vmul.f32 %v5326_v7, %v5329_v24  ;;  %v5341_v56 = vld [vmem:[#allocation95_spill] sm:$0xff]  ;;  %v5342_v11 = vld [vmem:[#allocation80_spill] sm:$0xff] }
  0xb7   : > { %5320 = vst [vmem:[#allocation44_spill] sm:$0xff] %v3414_v0  ;;  %5322 = vst [vmem:[#allocation45_spill] sm:$0xff] %v3417_v8  ;;  %v3432_v2 = vsel %vm491_vm3, %v888_v14, %v904_v48  ;;  %v3436_v39 = vsel %vm491_vm3, %v872_v15, %v888_v14  ;;  %v945_v61 = vmul.f32 %v5326_v7, %v5333_v17  ;;  %v5338_v48 = vld [vmem:[#allocation78_spill] sm:$0xff]  ;;  %v5343_v24 = vld [vmem:[#allocation96_spill] sm:$0xff] }
  0xb8   : > { %5324 = vst [vmem:[#allocation47_spill] sm:$0xff] %v3420_v51  ;;  %5331 = vst [vmem:[#allocation48_spill] sm:$0xff] %v3432_v2  ;;  %v946_v52 = vmul.f32 %v5326_v7, %v5334_v13  ;;  %v947_v21 = vmul.f32 %v5326_v7, %v5335_v20  ;;  %v948_v9 = vmul.f32 %v5326_v7, %v5336_v53  ;;  %v5339_v15 = vld [vmem:[#allocation94_spill] sm:$0xff]  ;;  %v5344_v13 = vld [vmem:[#allocation81_spill] sm:$0xff] }
  0xb9   : > { %5332 = vst [vmem:[#allocation49_spill] sm:$0xff] %v3436_v39  ;;  %v949_v38 = vmul.f32 %v5326_v7, %v5337_v16  ;;  %v950_v42 = vmul.f32 %v5326_v7, %v5338_v48  ;;  %v951_v14 = vmul.f32 %v5326_v7, %v5339_v15  ;;  %v952_v50 = vmul.f32 %v5326_v7, %v5340_v43  ;;  %v5345_v53 = vld [vmem:[#allocation97_spill] sm:$0xff]  ;;  %v5346_v48 = vld [vmem:[#allocation82_spill] sm:$0xff]  ;;  %v5348_v51 = vld [vmem:[#allocation83_spill] sm:$0xff] }
  0xba   : > { %v953_v62 = vmul.f32 %v5326_v7, %v5341_v56  ;;  %v954_v18 = vmul.f32 %v5326_v7, %v5342_v11  ;;  %v955_v17 = vmul.f32 %v5326_v7, %v5343_v24  ;;  %v956_v20 = vmul.f32 %v5326_v7, %v5344_v13  ;;  %v5347_v32 = vld [vmem:[#allocation98_spill] sm:$0xff]  ;;  %v5349_v3 = vld [vmem:[#allocation99_spill] sm:$0xff]  ;;  %v5350_v8 = vld [vmem:[#allocation84_spill] sm:$0xff] }
  0xbb   : > { %v957_v16 = vmul.f32 %v5326_v7, %v5345_v53  ;;  %v958_v15 = vmul.f32 %v5326_v7, %v5346_v48  ;;  %v959_v43 = vmul.f32 %v5326_v7, %v5347_v32  ;;  %v960_v56 = vmul.f32 %v5326_v7, %v5348_v51  ;;  %v5351_v0 = vld [vmem:[#allocation100_spill] sm:$0xff]  ;;  %v5352_v60 = vld [vmem:[#allocation85_spill] sm:$0xff]  ;;  %v5354_v57 = vld [vmem:[#allocation86_spill] sm:$0xff] }
  0xbc   : > { %v961_v11 = vmul.f32 %v5326_v7, %v5349_v3  ;;  %v962_v24 = vmul.f32 %v5326_v7, %v5350_v8  ;;  %v963_v13 = vmul.f32 %v5326_v7, %v5351_v0  ;;  %v964_v53 = vmul.f32 %v5326_v7, %v5352_v60  ;;  %v5353_v29 = vld [vmem:[#allocation101_spill] sm:$0xff]  ;;  %v5355_v25 = vld [vmem:[#allocation102_spill] sm:$0xff]  ;;  %v5356_v49 = vld [vmem:[#allocation87_spill] sm:$0xff] }
  0xbd   : > { %v965_v48 = vmul.f32 %v5326_v7, %v5353_v29  ;;  %v966_v32 = vmul.f32 %v5326_v7, %v5354_v57  ;;  %v967_v51 = vmul.f32 %v5326_v7, %v5355_v25  ;;  %v968_v3 = vmul.f32 %v5326_v7, %v5356_v49  ;;  %v5357_v28 = vld [vmem:[#allocation103_spill] sm:$0xff]  ;;  %v5358_v22 = vld [vmem:[#allocation88_spill] sm:$0xff] }
  0xbe   : > { %v969_v8 = vmul.f32 %v5326_v7, %v5357_v28  ;;  %v970_v0 = vmul.f32 %v5326_v7, %v5358_v22  ;;  %v971_v60 = vmul.f32 %v5326_v7, %v3436_v39  ;;  %v972_v29 = vmul.f32 %v5326_v7, %v3432_v2  ;;  %v5400_v2 = vld [vmem:[#allocation109_spill] sm:$0xff] }
  0xbf   : > { %v3495_v57 = vadd.f32 %v941_v4, %v3322_v35  ;;  %v3498_v25 = vadd.f32 %v942_v55, %v3325_v26  ;;  %v3501_v49 = vadd.f32 %v943_v41, %v3328_v58  ;;  %v3504_v28 = vadd.f32 %v944_v5, %v3331_v34 }
  0xc0   : > { %v3507_v22 = vadd.f32 %v945_v61, %v3334_v46  ;;  %v3510_v39 = vadd.f32 %v946_v52, %v3337_v44  ;;  %v3513_v7 = vadd.f32 %v947_v21, %v3340_v63  ;;  %v3516_v35 = vadd.f32 %v948_v9, %v3343_v30  ;;  %v5368_v52 = vld [vmem:[#allocation33_spill] sm:$0xff]  ;;  %v5369_v21 = vld [vmem:[#allocation42_spill] sm:$0xff] }
  0xc1   : > { %v3519_v26 = vadd.f32 %v949_v38, %v3346_v6  ;;  %v3522_v58 = vadd.f32 %v950_v42, %v3349_v10  ;;  %v3525_v34 = vadd.f32 %v951_v14, %v3352_v23  ;;  %v3528_v46 = vadd.f32 %v952_v50, %v3355_v59  ;;  %v5373_v42 = vld [vmem:[#allocation45_spill] sm:$0xff]  ;;  %v5375_v50 = vld [vmem:[#allocation35_spill] sm:$0xff] }
  0xc2   : > { %v3531_v44 = vadd.f32 %v953_v62, %v3358_v47  ;;  %v3534_v63 = vadd.f32 %v954_v18, %v3361_v36  ;;  %v3537_v30 = vadd.f32 %v955_v17, %v3364_v37  ;;  %v3540_v6 = vadd.f32 %v956_v20, %v3369_v12  ;;  %v5376_v18 = vld [vmem:[#allocation47_spill] sm:$0xff] }
  0xc3   : > { %v3543_v10 = vadd.f32 %v957_v16, %v3372_v19  ;;  %v3546_v23 = vadd.f32 %v958_v15, %v3375_v54  ;;  %v3549_v59 = vadd.f32 %v959_v43, %v3378_v31  ;;  %v3552_v47 = vadd.f32 %v960_v56, %v3381_v27  ;;  %v5359_v54 = vld [vmem:[#allocation36_spill] sm:$0xff]  ;;  %v5361_v31 = vld [vmem:[#allocation38_spill] sm:$0xff]  ;;  %v5363_v27 = vld [vmem:[#allocation39_spill] sm:$0xff] }
  0xc4   : > { %v3555_v36 = vadd.f32 %v961_v11, %v3384_v33  ;;  %v3558_v37 = vadd.f32 %v962_v24, %v3387_v45  ;;  %v3561_v12 = vadd.f32 %v963_v13, %v3390_v1  ;;  %v3564_v19 = vadd.f32 %v964_v53, %v3393_v40  ;;  %v5365_v33 = vld [vmem:[#allocation41_spill] sm:$0xff]  ;;  %v5367_v45 = vld [vmem:[#allocation32_spill] sm:$0xff]  ;;  %v5378_v20 = vld [vmem:[#allocation71_spill] sm:$0xff] }
  0xc5   : > { %v3567_v4 = vadd.f32 %v965_v48, %v5359_v54  ;;  %v3570_v55 = vadd.f32 %v966_v32, %v5361_v31  ;;  %v3573_v41 = vadd.f32 %v967_v51, %v5363_v27  ;;  %v3576_v5 = vadd.f32 %v968_v3, %v5365_v33  ;;  %v5371_v40 = vld [vmem:[#allocation44_spill] sm:$0xff]  ;;  %v5379_v16 = vld [vmem:[#allocation15_spill] sm:$0xff]  ;;  %v5384_v48 = vld [vmem:[#allocation57_spill] sm:$0xff] }
  0xc6   : > { %v1020_v61 = vrot.slane %v5367_v45, 2  ;;  %v1036_v1 = vrot.slane %v5368_v52, 2  ;;  %v3581_v9 = vadd.f32 %v969_v8, %v5369_v21  ;;  %v3584_v38 = vadd.f32 %v970_v0, %v5371_v40  ;;  %v5380_v43 = vld [vmem:[#allocation56_spill] sm:$0xff]  ;;  %v5385_v51 = vld [vmem:[#allocation73_spill] sm:$0xff]  ;;  %v5386_v8 = vld [vmem:[#allocation58_spill] sm:$0xff] }
  0xc7   : > { %5360 = vst [vmem:[#allocation50_spill] sm:$0xff] %v3567_v4  ;;  %5362 = vst [vmem:[#allocation51_spill] sm:$0xff] %v3570_v55  ;;  %v3587_v14 = vadd.f32 %v971_v60, %v5373_v42  ;;  %v1052_v62 = vrot.slane %v5375_v50, 2  ;;  %v3591_v17 = vadd.f32 %v972_v29, %v5376_v18  ;;  %v1089_v15 = vmul.f32 %v5379_v16, %v5378_v20  ;;  %v5381_v11 = vld [vmem:[#allocation72_spill] sm:$0xff]  ;;  %v5388_v29 = vld [vmem:[#allocation10_spill] sm:$0xff] }
  0xc8   : > { %5364 = vst [vmem:[#allocation52_spill] sm:$0xff] %v3573_v41  ;;  %5366 = vst [vmem:[#allocation53_spill] sm:$0xff] %v3576_v5  ;;  %v1090_v56 = vmul.f32 %v5379_v16, %v5380_v43  ;;  %v1091_v24 = vmul.f32 %v5379_v16, %v5381_v11  ;;  %v3601_v53 = vsel %vm640_vm4, %v1020_v61, %v1036_v1  ;;  %v5389_v31 = vld [vmem:[#allocation59_spill] sm:$0xff]  ;;  %v5390_v33 = vld [vmem:[#allocation104_spill] sm:$0xff] }
  0xc9   : > { %5370 = vst [vmem:[#allocation54_spill] sm:$0xff] %v3581_v9  ;;  %5372 = vst [vmem:[#allocation55_spill] sm:$0xff] %v3584_v38  ;;  %v1092_v32 = vmul.f32 %v5379_v16, %v5384_v48  ;;  %v1093_v3 = vmul.f32 %v5379_v16, %v5385_v51  ;;  %v1094_v0 = vmul.f32 %v5379_v16, %v5386_v8  ;;  %v5391_v21 = vld [vmem:[#allocation60_spill] sm:$0xff]  ;;  %v5392_v42 = vld [vmem:[#allocation105_spill] sm:$0xff] }
  0xca   : > { %5374 = vst [vmem:[#allocation11_spill] sm:$0xff] %v3587_v14  ;;  %5377 = vst [vmem:[#allocation13_spill] sm:$0xff] %v3591_v17  ;;  %v3611_v60 = vsel %vm640_vm4, %v1036_v1, %v1052_v62  ;;  %v1095_v54 = vmul.f32 %v5379_v16, %v5388_v29  ;;  %v1096_v27 = vmul.f32 %v5379_v16, %v5389_v31  ;;  %v5393_v18 = vld [vmem:[#allocation61_spill] sm:$0xff]  ;;  %v5394_v1 = vld [vmem:[#allocation106_spill] sm:$0xff] }
  0xcb   : > { %5383 = vst [vmem:[#allocation16_spill] sm:$0xff] %v3601_v53  ;;  %5387 = vst [vmem:[#allocation17_spill] sm:$0xff] %v3611_v60  ;;  %v1097_v61 = vmul.f32 %v5379_v16, %v5390_v33  ;;  %v1098_v40 = vmul.f32 %v5379_v16, %v5391_v21  ;;  %v1099_v50 = vmul.f32 %v5379_v16, %v5392_v42  ;;  %v5395_v43 = vld [vmem:[#allocation62_spill] sm:$0xff]  ;;  %v5396_v48 = vld [vmem:[#allocation107_spill] sm:$0xff] }
  0xcc   : > { %v1100_v20 = vmul.f32 %v5379_v16, %v5393_v18  ;;  %v1101_v62 = vmul.f32 %v5379_v16, %v5394_v1  ;;  %v1102_v11 = vmul.f32 %v5379_v16, %v5395_v43  ;;  %v1103_v51 = vmul.f32 %v5379_v16, %v5396_v48  ;;  %v5397_v8 = vld [vmem:[#allocation63_spill] sm:$0xff]  ;;  %v5398_v31 = vld [vmem:[#allocation108_spill] sm:$0xff]  ;;  %v5401_v13 = vld [vmem:[#allocation65_spill] sm:$0xff] }
  0xcd   : > { %v1104_v29 = vmul.f32 %v5379_v16, %v5397_v8  ;;  %v1105_v33 = vmul.f32 %v5379_v16, %v5398_v31  ;;  %v5399_v21 = vld [vmem:[#allocation64_spill] sm:$0xff]  ;;  %v1107_v18 = vmul.f32 %v5379_v16, %v5400_v2  ;;  %v1108_v1 = vmul.f32 %v5379_v16, %v5401_v13  ;;  %v5402_v52 = vld [vmem:[#allocation110_spill] sm:$0xff]  ;;  %v5404_v17 = vld [vmem:[#allocation111_spill] sm:$0xff] }
  0xce   : > { %v1106_v42 = vmul.f32 %v5379_v16, %v5399_v21  ;;  %v1109_v43 = vmul.f32 %v5379_v16, %v5402_v52  ;;  %v5403_v45 = vld [vmem:[#allocation66_spill] sm:$0xff]  ;;  %v1111_v8 = vmul.f32 %v5379_v16, %v5404_v17  ;;  %v5405_v14 = vld [vmem:[#allocation67_spill] sm:$0xff]  ;;  %v5406_v38 = vld [vmem:[#allocation112_spill] sm:$0xff] }
  0xcf   : > { %v1110_v48 = vmul.f32 %v5379_v16, %v5403_v45  ;;  %v1112_v31 = vmul.f32 %v5379_v16, %v5405_v14  ;;  %v1113_v21 = vmul.f32 %v5379_v16, %v5406_v38  ;;  %v5407_v9 = vld [vmem:[#allocation68_spill] sm:$0xff]  ;;  %v5408_v5 = vld [vmem:[#allocation113_spill] sm:$0xff]  ;;  %v5410_v55 = vld [vmem:[#allocation114_spill] sm:$0xff]  ;;  %v1119_v14 = vmul.f32 %v5379_v16, %v3601_v53 }
  0xd0   : > { %v1114_v2 = vmul.f32 %v5379_v16, %v5407_v9  ;;  %v1115_v13 = vmul.f32 %v5379_v16, %v5408_v5  ;;  %v5409_v41 = vld [vmem:[#allocation69_spill] sm:$0xff]  ;;  %v1117_v45 = vmul.f32 %v5379_v16, %v5410_v55  ;;  %v5411_v4 = vld [vmem:[#allocation70_spill] sm:$0xff]  ;;  %v1120_v38 = vmul.f32 %v5379_v16, %v3611_v60 }
  0xd1   : > { %v1116_v52 = vmul.f32 %v5379_v16, %v5409_v41  ;;  %v1118_v17 = vmul.f32 %v5379_v16, %v5411_v4  ;;  %v3666_v9 = vadd.f32 %v1089_v15, %v3495_v57  ;;  %v3669_v5 = vadd.f32 %v1090_v56, %v3498_v25  ;;  %v5414_v56 = vld [vmem:[#allocation50_spill] sm:$0xff] }
  0xd2   : > { %v3672_v41 = vadd.f32 %v1091_v24, %v3501_v49  ;;  %v3675_v55 = vadd.f32 %v1092_v32, %v3504_v28  ;;  %v3678_v4 = vadd.f32 %v1093_v3, %v3507_v22  ;;  %v3681_v53 = vadd.f32 %v1094_v0, %v3510_v39  ;;  %v3747_v24 = vld [vmem:[#allocation2 + $0x48] sm:$0xff]  ;;  %v5419_v32 = vld [vmem:[#allocation51_spill] sm:$0xff] }
  0xd3   : > { %v3684_v16 = vadd.f32 %v1095_v54, %v3513_v7  ;;  %v3687_v57 = vadd.f32 %v1096_v27, %v3516_v35  ;;  %v3690_v25 = vadd.f32 %v1097_v61, %v3519_v26  ;;  %v3693_v49 = vadd.f32 %v1098_v40, %v3522_v58  ;;  %v3707_v7 = vld [vmem:[%s4785_s1 + $0x8] sm:$0x7]  ;;  %5416 = vst [vmem:[#allocation22_spill] sm:$0xff] %v3747_v24  ;;  %v3764_v27 = vld [vmem:[#allocation2 + $0x50] sm:$0xff]  ;;  %v5427_v61 = vld [vmem:[#allocation7_spill] sm:$0xff] }
  0xd4   : > { %v3696_v28 = vadd.f32 %v1099_v50, %v3525_v34  ;;  %v3699_v22 = vadd.f32 %v1100_v20, %v3528_v46  ;;  %v3702_v39 = vadd.f32 %v1101_v62, %v3531_v44  ;;  %5412 = vst [vmem:[#allocation18_spill] sm:$0xff] %v3707_v7  ;;  %v3710_v35 = vadd.f32 %v1102_v11, %v3534_v63  ;;  %v5428_v50 = vld [vmem:[#allocation54_spill] sm:$0xff]  ;;  %v5430_v62 = vld [vmem:[#allocation55_spill] sm:$0xff] }
  0xd5   : > { %v3713_v26 = vadd.f32 %v1103_v51, %v3537_v30  ;;  %v3716_v58 = vadd.f32 %v1104_v29, %v3540_v6  ;;  %v3719_v34 = vadd.f32 %v1105_v33, %v3543_v10  ;;  %v3722_v46 = vadd.f32 %v1106_v42, %v3546_v23  ;;  %v3733_v30 = vld [vmem:[#allocation2 + $0x30] sm:$0xff]  ;;  %5426 = vst [vmem:[#allocation43_spill] sm:$0xff] %v3764_v27  ;;  %v5432_v51 = vld [vmem:[#allocation11_spill] sm:$0xff] }
  0xd6   : > { %v3725_v44 = vadd.f32 %v1107_v18, %v3549_v59  ;;  %v3728_v15 = vadd.f32 %v1108_v1, %v3552_v47  ;;  %v3731_v63 = vadd.f32 %v1109_v43, %v3555_v36  ;;  %5413 = vst [vmem:[#allocation19_spill] sm:$0xff] %v3733_v30  ;;  %v3736_v6 = vadd.f32 %v1110_v48, %v3558_v37  ;;  %v3749_v47 = vld [vmem:[#allocation2 + $0x60] sm:$0xff]  ;;  %v3751_v36 = vld [vmem:[#allocation2 + $0x78] sm:$0xff]  ;;  %v5434_v33 = vld [vmem:[#allocation13_spill] sm:$0xff] }
  0xd7   : > { %v3739_v10 = vadd.f32 %v1111_v8, %v3561_v12  ;;  %v3742_v23 = vadd.f32 %v1112_v31, %v3564_v19  ;;  %v3745_v59 = vadd.f32 %v1113_v21, %v5414_v56  ;;  %5417 = vst [vmem:[#allocation25_spill] sm:$0xff] %v3749_v47  ;;  %5418 = vst [vmem:[#allocation28_spill] sm:$0xff] %v3751_v36  ;;  %v5421_v37 = vld [vmem:[#allocation52_spill] sm:$0xff]  ;;  %v5423_v12 = vld [vmem:[#allocation53_spill] sm:$0xff] }
  0xd8   : > { %v3754_v3 = vadd.f32 %v1114_v2, %v5419_v32  ;;  %v3757_v0 = vadd.f32 %v1115_v13, %v5421_v37  ;;  %v3760_v54 = vadd.f32 %v1116_v52, %v5423_v12  ;;  %v3762_v19 = vld [vmem:[#allocation2 + $0x38] sm:$0xff]  ;;  %v3768_v40 = vrot.slane %v3707_v7, %v5427_v61  ;;  %v3782_v18 = vld [vmem:[#allocation2 + $0x68] sm:$0xff]  ;;  %v3784_v1 = vld [vmem:[#allocation2 + $0x80] sm:$0xff] }
  0xd9   : > { %5415 = vst [vmem:[#allocation20_spill] sm:$0xff] %v3745_v59  ;;  %5425 = vst [vmem:[#allocation40_spill] sm:$0xff] %v3762_v19  ;;  %v3771_v20 = vadd.f32 %v1117_v45, %v5428_v50  ;;  %v3774_v11 = vadd.f32 %v1118_v17, %v5430_v62  ;;  %v3777_v29 = vadd.f32 %v1119_v14, %v5432_v51  ;;  %v3786_v43 = vld [vmem:[#allocation2 + $0x90] sm:$0xff]  ;;  %v3788_v48 = vld [vmem:[#allocation2 + $0x98] sm:$0xff] }
  0xda   : > { %5420 = vst [vmem:[#allocation31_spill] sm:$0xff] %v3754_v3  ;;  %5422 = vst [vmem:[#allocation34_spill] sm:$0xff] %v3757_v0  ;;  %v3780_v42 = vadd.f32 %v1120_v38, %v5434_v33  ;;  %v3790_v8 = vld [vmem:[#allocation2 + $0xa8] sm:$0xff]  ;;  %v3792_v31 = vld [vmem:[#allocation2 + $0xb0] sm:$0xff]  ;;  %v1206_v38 = vmul.f32 %v3768_v40, %v3733_v30  ;;  %v1207_v56 = vmul.f32 %v3768_v40, %v3762_v19 }
  0xdb   : > { %5424 = vst [vmem:[#allocation37_spill] sm:$0xff] %v3760_v54  ;;  %5429 = vst [vmem:[#allocation46_spill] sm:$0xff] %v3771_v20  ;;  %v3798_v45 = vld [vmem:[#allocation2 + $0xc0] sm:$0xff]  ;;  %v3800_v17 = vld [vmem:[#allocation2 + $0xc8] sm:$0xff]  ;;  %v1208_v32 = vmul.f32 %v3768_v40, %v3747_v24  ;;  %v1209_v37 = vmul.f32 %v3768_v40, %v3764_v27  ;;  %v1210_v62 = vmul.f32 %v3768_v40, %v3749_v47 }
  0xdc   : > { %5431 = vst [vmem:[#allocation14_spill] sm:$0xff] %v3774_v11  ;;  %5433 = vst [vmem:[#allocation21_spill] sm:$0xff] %v3777_v29  ;;  %v3802_v14 = vld [vmem:[#allocation2 + $0xd8] sm:$0xff]  ;;  %v3812_v12 = vld [vmem:[#allocation2 + $0xe0] sm:$0xff]  ;;  %v1211_v51 = vmul.f32 %v3768_v40, %v3782_v18  ;;  %v1212_v33 = vmul.f32 %v3768_v40, %v3751_v36  ;;  %v1213_v52 = vmul.f32 %v3768_v40, %v3784_v1 }
  0xdd   : > { %5435 = vst [vmem:[#allocation23_spill] sm:$0xff] %v3780_v42  ;;  %5436 = vst [vmem:[#allocation24_spill] sm:$0xff] %v3782_v18  ;;  %v3814_v61 = vld [vmem:[#allocation2 + $0xf0] sm:$0xff]  ;;  %v3816_v50 = vld [vmem:[#allocation2 + $0x108] sm:$0xff]  ;;  %v1214_v60 = vmul.f32 %v3768_v40, %v3786_v43  ;;  %v1215_v7 = vmul.f32 %v3768_v40, %v3788_v48  ;;  %v1216_v47 = vmul.f32 %v3768_v40, %v3790_v8 }
  0xde   : > { %5437 = vst [vmem:[#allocation26_spill] sm:$0xff] %v3784_v1  ;;  %5438 = vst [vmem:[#allocation27_spill] sm:$0xff] %v3786_v43  ;;  %v3826_v13 = vld [vmem:[#allocation2 + $0xf8] sm:$0xff]  ;;  %v3828_v2 = vld [vmem:[#allocation2 + $0x120] sm:$0xff]  ;;  %v1217_v36 = vmul.f32 %v3768_v40, %v3792_v31  ;;  %v1218_v18 = vmul.f32 %v3768_v40, %v3798_v45  ;;  %v1219_v27 = vmul.f32 %v3768_v40, %v3800_v17 }
  0xdf   : > { %5439 = vst [vmem:[#allocation29_spill] sm:$0xff] %v3788_v48  ;;  %5440 = vst [vmem:[#allocation30_spill] sm:$0xff] %v3790_v8  ;;  %v3830_v21 = vld [vmem:[#allocation2 + $0x138] sm:$0xff]  ;;  %v3840_v24 = vld [vmem:[#allocation2 + $0x110] sm:$0xff]  ;;  %v1220_v48 = vmul.f32 %v3768_v40, %v3802_v14  ;;  %v1221_v19 = vmul.f32 %v3768_v40, %v3812_v12  ;;  %v1222_v42 = vmul.f32 %v3768_v40, %v3814_v61 }
  0xe0   : > { %5441 = vst [vmem:[#allocation89_spill] sm:$0xff] %v3792_v31  ;;  %5442 = vst [vmem:[#allocation12_spill] sm:$0xff] %v3798_v45  ;;  %v3842_v30 = vld [vmem:[#allocation2 + $0x150] sm:$0xff]  ;;  %v3844_v1 = vld [vmem:[#allocation2 + $0x168] sm:$0xff]  ;;  %v1223_v45 = vmul.f32 %v3768_v40, %v3826_v13  ;;  %v1226_v11 = vmul.f32 %v3768_v40, %v3828_v2 }
  0xe1   : > { %5443 = vst [vmem:[#allocation74_spill] sm:$0xff] %v3800_v17  ;;  %5444 = vst [vmem:[#allocation90_spill] sm:$0xff] %v3802_v14  ;;  %v3854_v8 = vld [vmem:[#allocation2 + $0x128] sm:$0xff]  ;;  %v3856_v31 = vld [vmem:[#allocation2 + $0x140] sm:$0xff]  ;;  %v1224_v17 = vmul.f32 %v3768_v40, %v3816_v50  ;;  %v1225_v14 = vmul.f32 %v3768_v40, %v3840_v24 }
  0xe2   : > { %5445 = vst [vmem:[#allocation75_spill] sm:$0xff] %v3812_v12  ;;  %5446 = vst [vmem:[#allocation91_spill] sm:$0xff] %v3814_v61  ;;  %v3858_v43 = vld [vmem:[#allocation2 + $0x198] sm:$0xff]  ;;  %v3870_v12 = vld [vmem:[#allocation2 + $0x170] sm:$0xff]  ;;  %v1227_v20 = vmul.f32 %v3768_v40, %v3854_v8  ;;  %v1228_v61 = vmul.f32 %v3768_v40, %v3830_v21 }
  0xe3   : > { %5447 = vst [vmem:[#allocation76_spill] sm:$0xff] %v3816_v50  ;;  %5448 = vst [vmem:[#allocation92_spill] sm:$0xff] %v3826_v13  ;;  %v3868_v29 = vld [vmem:[#allocation2 + $0x158] sm:$0xff]  ;;  %v1229_v13 = vmul.f32 %v3768_v40, %v3856_v31  ;;  %v3880_v50 = vld [vmem:[#allocation2 + $0x1a0] sm:$0xff]  ;;  %v1236_v59 = vmul.f32 %v3768_v40, %v3858_v43 }
  0xe4   : > { %5449 = vst [vmem:[#allocation77_spill] sm:$0xff] %v3828_v2  ;;  %5450 = vst [vmem:[#allocation93_spill] sm:$0xff] %v3830_v21  ;;  %v1231_v54 = vmul.f32 %v3768_v40, %v3868_v29  ;;  %v1232_v2 = vmul.f32 %v3768_v40, %v3844_v1  ;;  %v5460_v0 = vld [vmem:[#allocation32_spill] sm:$0xff]  ;;  %v5461_v3 = vld [vmem:[#allocation33_spill] sm:$0xff] }
  0xe5   : > { %5451 = vst [vmem:[#allocation78_spill] sm:$0xff] %v3840_v24  ;;  %5452 = vst [vmem:[#allocation94_spill] sm:$0xff] %v3842_v30  ;;  %v1230_v24 = vmul.f32 %v3768_v40, %v3842_v30  ;;  %v1234_v21 = vmul.f32 %v3768_v40, %v5460_v0  ;;  %v1237_v30 = vmul.f32 %v3768_v40, %v3880_v50 }
  0xe6   : > { %5453 = vst [vmem:[#allocation79_spill] sm:$0xff] %v3844_v1  ;;  %5454 = vst [vmem:[#allocation95_spill] sm:$0xff] %v3854_v8  ;;  %v1233_v8 = vmul.f32 %v3768_v40, %v3870_v12  ;;  %v3902_v1 = vadd.f32 %v1207_v56, %v3669_v5  ;;  %v3908_v0 = vadd.f32 %v1209_v37, %v3675_v55  ;;  %v4022_v56 = vld [vmem:[#allocation2 + $0x100] sm:$0xff] }
  0xe7   : > { %5455 = vst [vmem:[#allocation80_spill] sm:$0xff] %v3856_v31  ;;  %5456 = vst [vmem:[#allocation96_spill] sm:$0xff] %v3858_v43  ;;  %v1235_v31 = vmul.f32 %v3768_v40, %v5461_v3  ;;  %v3911_v3 = vadd.f32 %v1210_v62, %v3678_v4  ;;  %v3914_v43 = vadd.f32 %v1211_v51, %v3681_v53  ;;  %v4010_v62 = vld [vmem:[#allocation2 + $0xa0] sm:$0xff]  ;;  %v4012_v51 = vld [vmem:[#allocation2 + $0xb8] sm:$0xff] }
  0xe8   : > { %5457 = vst [vmem:[#allocation81_spill] sm:$0xff] %v3868_v29  ;;  %5458 = vst [vmem:[#allocation97_spill] sm:$0xff] %v3870_v12  ;;  %v3899_v29 = vadd.f32 %v1206_v38, %v3666_v9  ;;  %v3905_v12 = vadd.f32 %v1208_v32, %v3672_v41  ;;  %v3917_v40 = vadd.f32 %v1212_v33, %v3684_v16  ;;  %v4014_v33 = vld [vmem:[#allocation2 + $0xd0] sm:$0xff]  ;;  %v4020_v38 = vld [vmem:[#allocation2 + $0xe8] sm:$0xff] }
  0xe9   : > { %5459 = vst [vmem:[#allocation82_spill] sm:$0xff] %v3880_v50  ;;  %v3920_v9 = vadd.f32 %v1213_v52, %v3687_v57  ;;  %v3923_v5 = vadd.f32 %v1214_v60, %v3690_v25  ;;  %v3926_v41 = vadd.f32 %v1215_v7, %v3693_v49  ;;  %v3929_v55 = vadd.f32 %v1216_v47, %v3696_v28  ;;  %v5514_v37 = vld [vmem:[#allocation43_spill] sm:$0xff]  ;;  %v5515_v52 = vld [vmem:[#allocation24_spill] sm:$0xff] }
  0xea   : > { %v3932_v4 = vadd.f32 %v1217_v36, %v3699_v22  ;;  %v3935_v53 = vadd.f32 %v1218_v18, %v3702_v39  ;;  %v3938_v16 = vadd.f32 %v1219_v27, %v3710_v35  ;;  %v3941_v57 = vadd.f32 %v1220_v48, %v3713_v26  ;;  %v5494_v18 = vld [vmem:[#allocation30_spill] sm:$0xff]  ;;  %5505 = vst [vmem:[#allocation58_spill] sm:$0xff] %v4010_v62 }
  0xeb   : > { %5462 = vst [vmem:[#allocation98_spill] sm:$0xff] %v3926_v41  ;;  %5463 = vst [vmem:[#allocation83_spill] sm:$0xff] %v3929_v55  ;;  %v3944_v60 = vadd.f32 %v1221_v19, %v3716_v58  ;;  %v3947_v25 = vadd.f32 %v1222_v42, %v3719_v34  ;;  %v3950_v49 = vadd.f32 %v1223_v45, %v3722_v46  ;;  %v5477_v58 = vld [vmem:[#allocation20_spill] sm:$0xff]  ;;  %v5479_v46 = vld [vmem:[#allocation31_spill] sm:$0xff] }
  0xec   : > { %5464 = vst [vmem:[#allocation99_spill] sm:$0xff] %v3932_v4  ;;  %5465 = vst [vmem:[#allocation84_spill] sm:$0xff] %v3935_v53  ;;  %v3953_v28 = vadd.f32 %v1224_v17, %v3725_v44  ;;  %v3956_v22 = vadd.f32 %v1225_v14, %v3728_v15  ;;  %v3959_v39 = vadd.f32 %v1226_v11, %v3731_v63  ;;  %v5481_v15 = vld [vmem:[#allocation34_spill] sm:$0xff]  ;;  %v5483_v63 = vld [vmem:[#allocation37_spill] sm:$0xff] }
  0xed   : > { %5466 = vst [vmem:[#allocation100_spill] sm:$0xff] %v3938_v16  ;;  %5467 = vst [vmem:[#allocation85_spill] sm:$0xff] %v3941_v57  ;;  %v3962_v7 = vadd.f32 %v1227_v20, %v3736_v6  ;;  %v3965_v35 = vadd.f32 %v1228_v61, %v3739_v10  ;;  %v3968_v26 = vadd.f32 %v1229_v13, %v3742_v23  ;;  %v5485_v6 = vld [vmem:[#allocation46_spill] sm:$0xff]  ;;  %v5489_v23 = vld [vmem:[#allocation21_spill] sm:$0xff]  ;;  %v1288_v13 = vrot.slane %v5515_v52, 1 }
  0xee   : > { %5468 = vst [vmem:[#allocation101_spill] sm:$0xff] %v3944_v60  ;;  %5469 = vst [vmem:[#allocation86_spill] sm:$0xff] %v3947_v25  ;;  %v3971_v34 = vadd.f32 %v1230_v24, %v5477_v58  ;;  %v3974_v44 = vadd.f32 %v1231_v54, %v5479_v46  ;;  %v3977_v47 = vadd.f32 %v1232_v2, %v5481_v15  ;;  %v5487_v10 = vld [vmem:[#allocation14_spill] sm:$0xff]  ;;  %v5491_v24 = vld [vmem:[#allocation23_spill] sm:$0xff]  ;;  %v1309_v57 = vrot.slane %v4020_v38, 1 }
  0xef   : > { %5470 = vst [vmem:[#allocation102_spill] sm:$0xff] %v3950_v49  ;;  %5471 = vst [vmem:[#allocation87_spill] sm:$0xff] %v3953_v28  ;;  %v3980_v36 = vadd.f32 %v1233_v8, %v5483_v63  ;;  %v3983_v19 = vadd.f32 %v1234_v21, %v5485_v6  ;;  %v3986_v27 = vadd.f32 %v1235_v31, %v5487_v10  ;;  %v5493_v54 = vld [vmem:[#allocation27_spill] sm:$0xff]  ;;  %v5495_v2 = vld [vmem:[#allocation12_spill] sm:$0xff]  ;;  %v1310_v16 = vrot.slane %v4022_v56, 1 }
  0xf0   : > { %5472 = vst [vmem:[#allocation103_spill] sm:$0xff] %v3956_v22  ;;  %5473 = vst [vmem:[#allocation88_spill] sm:$0xff] %v3959_v39  ;;  %v3989_v20 = vadd.f32 %v1236_v59, %v5489_v23  ;;  %v3992_v11 = vadd.f32 %v1237_v30, %v5491_v24  ;;  %v5496_v8 = vld [vmem:[#allocation90_spill] sm:$0xff]  ;;  %v3998_v45 = vld [vmem:[#allocation2 + $0x40] sm:$0xff]  ;;  %v1287_v59 = vrot.slane %v5514_v37, 1  ;;  %v5542_v41 = vrot.slane %v5493_v54, 1 }
  0xf1   : > { %5474 = vst [vmem:[#allocation36_spill] sm:$0xff] %v3962_v7  ;;  %5475 = vst [vmem:[#allocation38_spill] sm:$0xff] %v3965_v35  ;;  %v4000_v21 = vld [vmem:[#allocation2 + $0x58] sm:$0xff]  ;;  %v4002_v31 = vld [vmem:[#allocation2 + $0x70] sm:$0xff] }
  0xf2   : > { %5476 = vst [vmem:[#allocation39_spill] sm:$0xff] %v3968_v26  ;;  %5478 = vst [vmem:[#allocation41_spill] sm:$0xff] %v3971_v34  ;;  %v5500_v17 = vld [vmem:[#allocation91_spill] sm:$0xff]  ;;  %v5501_v14 = vld [vmem:[#allocation76_spill] sm:$0xff]  ;;  %v1303_v25 = vrot.slane %v4000_v21, 1  ;;  %v1304_v60 = vrot.slane %v4002_v31, 1 }
  0xf3   : > { %5480 = vst [vmem:[#allocation42_spill] sm:$0xff] %v3974_v44  ;;  %5482 = vst [vmem:[#allocation44_spill] sm:$0xff] %v3977_v47  ;;  %v5502_v30 = vld [vmem:[#allocation77_spill] sm:$0xff]  ;;  %v5508_v58 = vld [vmem:[#allocation94_spill] sm:$0xff] }
  0xf4   : > { %5484 = vst [vmem:[#allocation45_spill] sm:$0xff] %v3980_v36  ;;  %5486 = vst [vmem:[#allocation35_spill] sm:$0xff] %v3983_v19  ;;  %v5503_v32 = vld [vmem:[#allocation93_spill] sm:$0xff]  ;;  %v5509_v15 = vld [vmem:[#allocation79_spill] sm:$0xff] }
  0xf5   : > { %5488 = vst [vmem:[#allocation47_spill] sm:$0xff] %v3986_v27  ;;  %5490 = vst [vmem:[#allocation71_spill] sm:$0xff] %v3989_v20  ;;  %v4008_v61 = vld [vmem:[#allocation2 + $0x88] sm:$0xff]  ;;  %v5516_v48 = vld [vmem:[#allocation26_spill] sm:$0xff] }
  0xf6   : > { %5492 = vst [vmem:[#allocation15_spill] sm:$0xff] %v3992_v11  ;;  %5497 = vst [vmem:[#allocation56_spill] sm:$0xff] %v3998_v45  ;;  %v5510_v6 = vld [vmem:[#allocation96_spill] sm:$0xff]  ;;  %v1289_v42 = vrot.slane %v5516_v48, 1  ;;  %v5517_v11 = vld [vmem:[#allocation29_spill] sm:$0xff] }
  0xf7   : > { %5498 = vst [vmem:[#allocation72_spill] sm:$0xff] %v4000_v21  ;;  %5499 = vst [vmem:[#allocation57_spill] sm:$0xff] %v4002_v31  ;;  %v5511_v23 = vld [vmem:[#allocation40_spill] sm:$0xff]  ;;  %v1290_v20 = vrot.slane %v5517_v11, 1  ;;  %v4028_v27 = vld [vmem:[#allocation2 + $0x118] sm:$0xff] }
  0xf8   : > { %5504 = vst [vmem:[#allocation73_spill] sm:$0xff] %v4008_v61  ;;  %5506 = vst [vmem:[#allocation10_spill] sm:$0xff] %v4012_v51  ;;  %v1286_v24 = vrot.slane %v5511_v23, 1  ;;  %v4030_v46 = vld [vmem:[#allocation2 + $0x130] sm:$0xff]  ;;  %v5522_v36 = vld [vmem:[#allocation75_spill] sm:$0xff] }
  0xf9   : > { %5507 = vst [vmem:[#allocation59_spill] sm:$0xff] %v4014_v33  ;;  %5512 = vst [vmem:[#allocation104_spill] sm:$0xff] %v4020_v38  ;;  %v5520_v63 = vld [vmem:[#allocation89_spill] sm:$0xff]  ;;  %v5521_v19 = vld [vmem:[#allocation74_spill] sm:$0xff]  ;;  %v1293_v47 = vrot.slane %v5522_v36, 1 }
  0xfa   : > { %5513 = vst [vmem:[#allocation60_spill] sm:$0xff] %v4022_v56  ;;  %5518 = vst [vmem:[#allocation105_spill] sm:$0xff] %v4028_v27  ;;  %v1291_v10 = vrot.slane %v5520_v63, 1  ;;  %v1292_v23 = vrot.slane %v5521_v19, 1  ;;  %v5523_v44 = vld [vmem:[#allocation92_spill] sm:$0xff]  ;;  %v5526_v52 = vld [vmem:[#allocation78_spill] sm:$0xff]  ;;  %v1319_v56 = vsel %vm491_vm3, %v1287_v59, %v1303_v25 }
  0xfb   : > { %5519 = vst [vmem:[#allocation61_spill] sm:$0xff] %v4030_v46  ;;  %v1294_v34 = vrot.slane %v5523_v44, 1  ;;  %v4036_v26 = vld [vmem:[#allocation2 + $0x148] sm:$0xff]  ;;  %v4038_v37 = vld [vmem:[#allocation2 + $0x160] sm:$0xff]  ;;  %v1295_v48 = vrot.slane %v5526_v52, 1  ;;  %v4044_v49 = vld [vmem:[#allocation2 + $0x178] sm:$0xff] }
  0xfc   : > { %5524 = vst [vmem:[#allocation106_spill] sm:$0xff] %v4036_v26  ;;  %5525 = vst [vmem:[#allocation62_spill] sm:$0xff] %v4038_v37  ;;  %v5527_v35 = vld [vmem:[#allocation95_spill] sm:$0xff]  ;;  %v5528_v7 = vld [vmem:[#allocation80_spill] sm:$0xff]  ;;  %v1302_v44 = vrot.slane %v3998_v45, 1  ;;  %v1305_v52 = vrot.slane %v4008_v61, 1 }
  0xfd   : > { %v1296_v11 = vrot.slane %v5527_v35, 1  ;;  %v1297_v39 = vrot.slane %v5528_v7, 1  ;;  %v5529_v22 = vld [vmem:[#allocation81_spill] sm:$0xff]  ;;  %5530 = vst [vmem:[#allocation107_spill] sm:$0xff] %v4044_v49  ;;  %v1306_v35 = vrot.slane %v4010_v62, 1  ;;  %v1307_v7 = vrot.slane %v4012_v51, 1 }
  0xfe   : > { %v1298_v28 = vrot.slane %v5529_v22, 1  ;;  %v4046_v63 = vld [vmem:[#allocation2 + $0x1a8] sm:$0xff]  ;;  %v1308_v22 = vrot.slane %v4014_v33, 1  ;;  %v1312_v45 = vrot.slane %v4030_v46, 1  ;;  %v1313_v21 = vrot.slane %v4036_v26, 1  ;;  %v5536_v46 = vld [vmem:[#allocation22_spill] sm:$0xff] }
  0xff   : > { %5531 = vst [vmem:[#allocation63_spill] sm:$0xff] %v4046_v63  ;;  %v5532_v19 = vld [vmem:[#allocation97_spill] sm:$0xff]  ;;  %v1314_v31 = vrot.slane %v4038_v37, 1  ;;  %v1315_v61 = vrot.slane %v4044_v49, 1  ;;  %v1317_v62 = vrot.slane %v4046_v63, 1  ;;  %v1301_v51 = vrot.slane %v3880_v50, 1 }
 0x100   : > { %v1299_v36 = vrot.slane %v5532_v19, 1  ;;  %v1311_v19 = vrot.slane %v4028_v27, 1  ;;  %v1318_v33 = vsel %vm491_vm3, %v1286_v24, %v1302_v44  ;;  %v1320_v27 = vsel %vm491_vm3, %v1288_v13, %v1304_v60  ;;  %v5534_v49 = vld [vmem:[#allocation19_spill] sm:$0xff]  ;;  %v5540_v55 = vld [vmem:[#allocation28_spill] sm:$0xff] }
 0x101   : > { %v1321_v26 = vsel %vm491_vm3, %v1289_v42, %v1305_v52  ;;  %v1322_v37 = vsel %vm491_vm3, %v1290_v20, %v1306_v35  ;;  %v1323_v63 = vsel %vm491_vm3, %v1291_v10, %v1307_v7  ;;  %v1324_v50 = vsel %vm491_vm3, %v1292_v23, %v1308_v22 }
 0x102   : > { %v1325_v44 = vsel %vm491_vm3, %v1293_v47, %v1309_v57  ;;  %v1326_v25 = vsel %vm491_vm3, %v1294_v34, %v1310_v16  ;;  %v1327_v60 = vsel %vm491_vm3, %v1295_v48, %v1311_v19  ;;  %v1328_v52 = vsel %vm491_vm3, %v1296_v11, %v1312_v45 }
 0x103   : > { %v1329_v35 = vsel %vm491_vm3, %v1297_v39, %v1313_v21  ;;  %v1330_v7 = vsel %vm491_vm3, %v1298_v28, %v1314_v31  ;;  %v1331_v22 = vsel %vm491_vm3, %v1299_v36, %v1315_v61  ;;  %v1333_v57 = vsel %vm491_vm3, %v1301_v51, %v1317_v62  ;;  %v5538_v21 = vld [vmem:[#allocation25_spill] sm:$0xff] }
 0x104   : > { %v5535_v16 = vrot.slane %v5534_v49, 1  ;;  %v5537_v38 = vrot.slane %v5536_v46, 1  ;;  %v5539_v4 = vrot.slane %v5538_v21, 1  ;;  %v5541_v61 = vrot.slane %v5540_v55, 1 }
 0x106   : > { %v1334_v19 = vsel %vm491_vm3, %v5535_v16, %v1286_v24  ;;  %v1335_v45 = vsel %vm491_vm3, %v5537_v38, %v1287_v59  ;;  %v1336_v31 = vsel %vm491_vm3, %v5539_v4, %v1288_v13  ;;  %v1337_v62 = vsel %vm491_vm3, %v5541_v61, %v1289_v42 }
 0x107   : > { %v1338_v24 = vsel %vm491_vm3, %v5542_v41, %v1290_v20  ;;  %v5543_v16 = vrot.slane %v5494_v18, 1  ;;  %v5544_v38 = vrot.slane %v5495_v2, 1  ;;  %v5545_v13 = vrot.slane %v5496_v8, 1  ;;  %v5550_v8 = vld [vmem:[#allocation18_spill] sm:$0xff] }
 0x108   : > { %v5546_v61 = vrot.slane %v5500_v17, 1  ;;  %v5547_v20 = vrot.slane %v5501_v14, 1 }
 0x109   : > { %v1339_v59 = vsel %vm491_vm3, %v5543_v16, %v1291_v10  ;;  %v1340_v4 = vsel %vm491_vm3, %v5544_v38, %v1292_v23  ;;  %v1341_v42 = vsel %vm491_vm3, %v5545_v13, %v1293_v47  ;;  %v5548_v16 = vrot.slane %v5502_v30, 1  ;;  %v5549_v38 = vld [vmem:[#allocation8_spill] sm:$0xff] }
 0x10a   : > { %v1342_v41 = vsel %vm491_vm3, %v5546_v61, %v1294_v34  ;;  %v1343_v10 = vsel %vm491_vm3, %v5547_v20, %v1295_v48  ;;  %v1353_v2 = vrot.slane %v5550_v8, %v5549_v38  ;;  %v5551_v47 = vrot.slane %v5503_v32, 1 }
 0x10b   : > { %v1344_v23 = vsel %vm491_vm3, %v5548_v16, %v1296_v11  ;;  %v5552_v34 = vrot.slane %v5508_v58, 1  ;;  %v5553_v48 = vrot.slane %v5509_v15, 1  ;;  %v5554_v11 = vrot.slane %v5510_v6, 1 }
 0x10c   : > { %v1345_v13 = vsel %vm491_vm3, %v5551_v47, %v1297_v39  ;;  %v1354_v58 = vmul.f32 %v1353_v2, %v1334_v19  ;;  %v1357_v15 = vmul.f32 %v1353_v2, %v1319_v56  ;;  %v1358_v32 = vmul.f32 %v1353_v2, %v1336_v31 }
 0x10d   : > { %v1346_v61 = vsel %vm491_vm3, %v5552_v34, %v1298_v28  ;;  %v1347_v20 = vsel %vm491_vm3, %v5553_v48, %v1299_v36  ;;  %v1349_v16 = vsel %vm491_vm3, %v5554_v11, %v1301_v51  ;;  %v1355_v28 = vmul.f32 %v1353_v2, %v1318_v33 }
 0x10e   : > { %v1356_v34 = vmul.f32 %v1353_v2, %v1335_v45  ;;  %v1359_v30 = vmul.f32 %v1353_v2, %v1320_v27  ;;  %v1360_v36 = vmul.f32 %v1353_v2, %v1337_v62  ;;  %v1361_v48 = vmul.f32 %v1353_v2, %v1321_v26 }
 0x10f   : > { %v1362_v6 = vmul.f32 %v1353_v2, %v1338_v24  ;;  %v1363_v14 = vmul.f32 %v1353_v2, %v1322_v37  ;;  %v1364_v53 = vmul.f32 %v1353_v2, %v1339_v59  ;;  %v1365_v51 = vmul.f32 %v1353_v2, %v1323_v63  ;;  %v5555_v24 = vld [vmem:[#allocation49_spill] sm:$0xff]  ;;  %v5556_v59 = vld [vmem:[#allocation48_spill] sm:$0xff] }
 0x110   : > { %v1366_v11 = vmul.f32 %v1353_v2, %v1340_v4  ;;  %v1367_v38 = vmul.f32 %v1353_v2, %v1324_v50  ;;  %v1368_v49 = vmul.f32 %v1353_v2, %v1341_v42  ;;  %v1369_v8 = vmul.f32 %v1353_v2, %v1325_v44 }
 0x111   : > { %v1370_v46 = vmul.f32 %v1353_v2, %v1342_v41  ;;  %v1371_v39 = vmul.f32 %v1353_v2, %v1326_v25  ;;  %v1372_v21 = vmul.f32 %v1353_v2, %v1343_v10  ;;  %v1373_v47 = vmul.f32 %v1353_v2, %v1327_v60  ;;  %v5574_v10 = vld [vmem:[#allocation87_spill] sm:$0xff] }
 0x112   : > { %v1374_v19 = vmul.f32 %v1353_v2, %v1344_v23  ;;  %v1375_v33 = vmul.f32 %v1353_v2, %v1328_v52  ;;  %v1376_v45 = vmul.f32 %v1353_v2, %v1345_v13  ;;  %v1377_v56 = vmul.f32 %v1353_v2, %v1329_v35  ;;  %v5576_v13 = vld [vmem:[#allocation103_spill] sm:$0xff] }
 0x113   : > { %v1378_v31 = vmul.f32 %v1353_v2, %v1346_v61  ;;  %v1379_v27 = vmul.f32 %v1353_v2, %v1330_v7  ;;  %v1380_v62 = vmul.f32 %v1353_v2, %v1347_v20  ;;  %v1381_v26 = vmul.f32 %v1353_v2, %v1331_v22  ;;  %v5578_v20 = vld [vmem:[#allocation88_spill] sm:$0xff] }
 0x114   : > { %v1382_v37 = vmul.f32 %v1353_v2, %v5555_v24  ;;  %v1383_v63 = vmul.f32 %v1353_v2, %v5556_v59  ;;  %v1384_v4 = vmul.f32 %v1353_v2, %v1349_v16  ;;  %v1385_v50 = vmul.f32 %v1353_v2, %v1333_v57 }
 0x115   : > { %v4164_v44 = vadd.f32 %v1354_v58, %v3899_v29  ;;  %v4167_v25 = vadd.f32 %v1355_v28, %v3902_v1  ;;  %v4170_v60 = vadd.f32 %v1356_v34, %v3905_v12  ;;  %v4173_v52 = vadd.f32 %v1357_v15, %v3908_v0  ;;  %v5557_v12 = vld [vmem:[#allocation98_spill] sm:$0xff]  ;;  %v5558_v0 = vld [vmem:[#allocation83_spill] sm:$0xff] }
 0x116   : > { %v4176_v35 = vadd.f32 %v1358_v32, %v3911_v3  ;;  %v4179_v7 = vadd.f32 %v1359_v30, %v3914_v43  ;;  %v4182_v2 = vadd.f32 %v1360_v36, %v3917_v40  ;;  %v4185_v29 = vadd.f32 %v1361_v48, %v3920_v9  ;;  %v5560_v3 = vld [vmem:[#allocation99_spill] sm:$0xff]  ;;  %v5562_v43 = vld [vmem:[#allocation84_spill] sm:$0xff]  ;;  %v5566_v9 = vld [vmem:[#allocation85_spill] sm:$0xff] }
 0x117   : > { %v4188_v1 = vadd.f32 %v1362_v6, %v3923_v5  ;;  %v4191_v58 = vadd.f32 %v1363_v14, %v5557_v12  ;;  %v4194_v15 = vadd.f32 %v1364_v53, %v5558_v0  ;;  %v4197_v32 = vadd.f32 %v1365_v51, %v5560_v3  ;;  %v5564_v40 = vld [vmem:[#allocation100_spill] sm:$0xff]  ;;  %v5568_v5 = vld [vmem:[#allocation101_spill] sm:$0xff]  ;;  %v5570_v14 = vld [vmem:[#allocation86_spill] sm:$0xff] }
 0x118   : > { %v4200_v30 = vadd.f32 %v1366_v11, %v5562_v43  ;;  %v4203_v22 = vadd.f32 %v1367_v38, %v5564_v40  ;;  %v4206_v57 = vadd.f32 %v1368_v49, %v5566_v9  ;;  %v4209_v6 = vadd.f32 %v1369_v8, %v5568_v5  ;;  %v5572_v53 = vld [vmem:[#allocation102_spill] sm:$0xff]  ;;  %v5580_v49 = vld [vmem:[#allocation36_spill] sm:$0xff]  ;;  %v5592_v11 = vld [vmem:[#allocation45_spill] sm:$0xff] }
 0x119   : > { %5559 = vst [vmem:[#allocation108_spill] sm:$0xff] %v4194_v15  ;;  %5561 = vst [vmem:[#allocation64_spill] sm:$0xff] %v4197_v32  ;;  %v4212_v42 = vadd.f32 %v1370_v46, %v5570_v14  ;;  %v4215_v41 = vadd.f32 %v1371_v39, %v5572_v53  ;;  %v4218_v23 = vadd.f32 %v1372_v21, %v5574_v10  ;;  %v5582_v8 = vld [vmem:[#allocation38_spill] sm:$0xff]  ;;  %v5584_v46 = vld [vmem:[#allocation39_spill] sm:$0xff] }
 0x11a   : > { %5563 = vst [vmem:[#allocation109_spill] sm:$0xff] %v4200_v30  ;;  %5565 = vst [vmem:[#allocation65_spill] sm:$0xff] %v4203_v22  ;;  %v4221_v61 = vadd.f32 %v1373_v47, %v5576_v13  ;;  %v4224_v16 = vadd.f32 %v1374_v19, %v5578_v20  ;;  %v4227_v38 = vadd.f32 %v1375_v33, %v5580_v49  ;;  %v5586_v39 = vld [vmem:[#allocation41_spill] sm:$0xff]  ;;  %v5588_v21 = vld [vmem:[#allocation42_spill] sm:$0xff] }
 0x11b   : > { %5567 = vst [vmem:[#allocation110_spill] sm:$0xff] %v4206_v57  ;;  %5569 = vst [vmem:[#allocation66_spill] sm:$0xff] %v4209_v6  ;;  %v4230_v28 = vadd.f32 %v1376_v45, %v5582_v8  ;;  %v4233_v34 = vadd.f32 %v1377_v56, %v5584_v46  ;;  %v4236_v36 = vadd.f32 %v1378_v31, %v5586_v39  ;;  %v5590_v47 = vld [vmem:[#allocation44_spill] sm:$0xff]  ;;  %v5594_v33 = vld [vmem:[#allocation35_spill] sm:$0xff] }
 0x11c   : > { %5571 = vst [vmem:[#allocation111_spill] sm:$0xff] %v4212_v42  ;;  %5573 = vst [vmem:[#allocation67_spill] sm:$0xff] %v4215_v41  ;;  %v4239_v48 = vadd.f32 %v1379_v27, %v5588_v21  ;;  %v4242_v51 = vadd.f32 %v1380_v62, %v5590_v47  ;;  %v4245_v19 = vadd.f32 %v1381_v26, %v5592_v11  ;;  %v5596_v45 = vld [vmem:[#allocation47_spill] sm:$0xff]  ;;  %v1422_v27 = vrot.slane %v5493_v54, 2  ;;  %v5602_v3 = vld [vmem:[#allocation12_spill] sm:$0xff] }
 0x11d   : > { %5575 = vst [vmem:[#allocation112_spill] sm:$0xff] %v4218_v23  ;;  %5577 = vst [vmem:[#allocation68_spill] sm:$0xff] %v4221_v61  ;;  %v4248_v24 = vadd.f32 %v1382_v37, %v5594_v33  ;;  %v4251_v59 = vadd.f32 %v1383_v63, %v5596_v45  ;;  %v5598_v56 = vld [vmem:[#allocation71_spill] sm:$0xff]  ;;  %v1423_v62 = vrot.slane %v5494_v18, 2  ;;  %v1424_v43 = vrot.slane %v5602_v3, 2  ;;  %v5603_v26 = vld [vmem:[#allocation90_spill] sm:$0xff] }
 0x11e   : > { %5579 = vst [vmem:[#allocation113_spill] sm:$0xff] %v4224_v16  ;;  %5581 = vst [vmem:[#allocation69_spill] sm:$0xff] %v4227_v38  ;;  %v4254_v12 = vadd.f32 %v1384_v4, %v5598_v56  ;;  %v5600_v31 = vld [vmem:[#allocation15_spill] sm:$0xff]  ;;  %v1425_v40 = vrot.slane %v5603_v26, 2  ;;  %v1426_v37 = vrot.slane %v5500_v17, 2  ;;  %v5604_v9 = vld [vmem:[#allocation76_spill] sm:$0xff] }
 0x11f   : > { %5583 = vst [vmem:[#allocation114_spill] sm:$0xff] %v4230_v28  ;;  %5585 = vst [vmem:[#allocation70_spill] sm:$0xff] %v4233_v34  ;;  %v4257_v0 = vadd.f32 %v1385_v50, %v5600_v31  ;;  %v1427_v5 = vrot.slane %v5604_v9, 2  ;;  %v5605_v63 = vld [vmem:[#allocation77_spill] sm:$0xff]  ;;  %v5607_v10 = vld [vmem:[#allocation94_spill] sm:$0xff] }
 0x120   : > { %5587 = vst [vmem:[#allocation50_spill] sm:$0xff] %v4236_v36  ;;  %5589 = vst [vmem:[#allocation51_spill] sm:$0xff] %v4239_v48  ;;  %v1428_v14 = vrot.slane %v5605_v63, 2  ;;  %v5606_v53 = vld [vmem:[#allocation93_spill] sm:$0xff]  ;;  %v1430_v13 = vrot.slane %v5607_v10, 2  ;;  %v5608_v50 = vld [vmem:[#allocation79_spill] sm:$0xff] }
 0x121   : > { %5591 = vst [vmem:[#allocation52_spill] sm:$0xff] %v4242_v51  ;;  %5593 = vst [vmem:[#allocation53_spill] sm:$0xff] %v4245_v19  ;;  %v1429_v4 = vrot.slane %v5606_v53, 2  ;;  %v1431_v20 = vrot.slane %v5608_v50, 2  ;;  %v5609_v49 = vld [vmem:[#allocation96_spill] sm:$0xff]  ;;  %v5611_v46 = vld [vmem:[#allocation43_spill] sm:$0xff] }
 0x122   : > { %5595 = vst [vmem:[#allocation7_spill] sm:$0xff] %v4248_v24  ;;  %5597 = vst [vmem:[#allocation54_spill] sm:$0xff] %v4251_v59  ;;  %v1433_v54 = vrot.slane %v5609_v49, 2  ;;  %v5610_v8 = vld [vmem:[#allocation40_spill] sm:$0xff]  ;;  %v1435_v39 = vrot.slane %v5611_v46, 2  ;;  %v5613_v11 = vld [vmem:[#allocation26_spill] sm:$0xff] }
 0x123   : > { %5599 = vst [vmem:[#allocation55_spill] sm:$0xff] %v4254_v12  ;;  %5601 = vst [vmem:[#allocation11_spill] sm:$0xff] %v4257_v0  ;;  %v1434_v18 = vrot.slane %v5610_v8, 2  ;;  %v5612_v21 = vld [vmem:[#allocation24_spill] sm:$0xff]  ;;  %v1437_v17 = vrot.slane %v5613_v11, 2  ;;  %v5614_v33 = vld [vmem:[#allocation29_spill] sm:$0xff] }
 0x124   : > { %v1436_v47 = vrot.slane %v5612_v21, 2  ;;  %v1438_v45 = vrot.slane %v5614_v33, 2  ;;  %v5615_v56 = vld [vmem:[#allocation89_spill] sm:$0xff]  ;;  %v5616_v3 = vld [vmem:[#allocation74_spill] sm:$0xff]  ;;  %v5617_v9 = vld [vmem:[#allocation75_spill] sm:$0xff] }
 0x125   : > { %v1439_v31 = vrot.slane %v5615_v56, 2  ;;  %v1440_v26 = vrot.slane %v5616_v3, 2  ;;  %v1441_v63 = vrot.slane %v5617_v9, 2  ;;  %v5618_v53 = vld [vmem:[#allocation92_spill] sm:$0xff]  ;;  %v5619_v50 = vld [vmem:[#allocation78_spill] sm:$0xff]  ;;  %v5620_v0 = vld [vmem:[#allocation95_spill] sm:$0xff] }
 0x126   : > { %v1442_v10 = vrot.slane %v5618_v53, 2  ;;  %v1443_v49 = vrot.slane %v5619_v50, 2  ;;  %v1444_v8 = vrot.slane %v5620_v0, 2  ;;  %v5621_v12 = vld [vmem:[#allocation80_spill] sm:$0xff]  ;;  %v5622_v59 = vld [vmem:[#allocation81_spill] sm:$0xff]  ;;  %v5628_v34 = vld [vmem:[#allocation58_spill] sm:$0xff] }
 0x127   : > { %v1445_v46 = vrot.slane %v5621_v12, 2  ;;  %v1446_v21 = vrot.slane %v5622_v59, 2  ;;  %v5623_v24 = vld [vmem:[#allocation97_spill] sm:$0xff]  ;;  %v5624_v19 = vld [vmem:[#allocation56_spill] sm:$0xff]  ;;  %v1454_v53 = vrot.slane %v5628_v34, 2  ;;  %v5629_v28 = vld [vmem:[#allocation10_spill] sm:$0xff] }
 0x128   : > { %v1447_v11 = vrot.slane %v5623_v24, 2  ;;  %v1450_v33 = vrot.slane %v5624_v19, 2  ;;  %v5625_v51 = vld [vmem:[#allocation72_spill] sm:$0xff]  ;;  %v5626_v48 = vld [vmem:[#allocation57_spill] sm:$0xff]  ;;  %v1455_v50 = vrot.slane %v5629_v28, 2  ;;  %v5630_v38 = vld [vmem:[#allocation59_spill] sm:$0xff] }
 0x129   : > { %v1451_v56 = vrot.slane %v5625_v51, 2  ;;  %v1452_v3 = vrot.slane %v5626_v48, 2  ;;  %v5627_v36 = vld [vmem:[#allocation73_spill] sm:$0xff]  ;;  %v1456_v0 = vrot.slane %v5630_v38, 2  ;;  %v5631_v16 = vld [vmem:[#allocation104_spill] sm:$0xff]  ;;  %v5635_v42 = vld [vmem:[#allocation106_spill] sm:$0xff] }
 0x12a   : > { %v1453_v9 = vrot.slane %v5627_v36, 2  ;;  %v1457_v12 = vrot.slane %v5631_v16, 2  ;;  %v5632_v61 = vld [vmem:[#allocation60_spill] sm:$0xff]  ;;  %v5633_v23 = vld [vmem:[#allocation105_spill] sm:$0xff]  ;;  %v1461_v51 = vrot.slane %v5635_v42, 2  ;;  %v5636_v6 = vld [vmem:[#allocation62_spill] sm:$0xff]  ;;  %v1466_v38 = vsel %vm640_vm4, %v1434_v18, %v1450_v33 }
 0x12b   : > { %v1458_v59 = vrot.slane %v5632_v61, 2  ;;  %v1459_v24 = vrot.slane %v5633_v23, 2  ;;  %v5634_v41 = vld [vmem:[#allocation61_spill] sm:$0xff]  ;;  %v1462_v48 = vrot.slane %v5636_v6, 2  ;;  %v5637_v57 = vld [vmem:[#allocation107_spill] sm:$0xff]  ;;  %v5639_v30 = vld [vmem:[#allocation82_spill] sm:$0xff]  ;;  %v1467_v61 = vsel %vm640_vm4, %v1435_v39, %v1451_v56 }
 0x12c   : > { %v1460_v19 = vrot.slane %v5634_v41, 2  ;;  %v1463_v36 = vrot.slane %v5637_v57, 2  ;;  %v5638_v22 = vld [vmem:[#allocation63_spill] sm:$0xff]  ;;  %v1449_v28 = vrot.slane %v5639_v30, 2  ;;  %v1468_v23 = vsel %vm640_vm4, %v1436_v47, %v1452_v3 }
 0x12d   : > { %v1465_v34 = vrot.slane %v5638_v22, 2  ;;  %v1469_v42 = vsel %vm640_vm4, %v1437_v17, %v1453_v9  ;;  %v1470_v6 = vsel %vm640_vm4, %v1438_v45, %v1454_v53  ;;  %v1471_v22 = vsel %vm640_vm4, %v1439_v31, %v1455_v50  ;;  %v5641_v50 = vld [vmem:[#allocation19_spill] sm:$0xff] }
 0x12e   : > { %v1472_v30 = vsel %vm640_vm4, %v1440_v26, %v1456_v0  ;;  %v1473_v57 = vsel %vm640_vm4, %v1441_v63, %v1457_v12  ;;  %v1474_v41 = vsel %vm640_vm4, %v1442_v10, %v1458_v59  ;;  %v1475_v16 = vsel %vm640_vm4, %v1443_v49, %v1459_v24  ;;  %v5643_v59 = vld [vmem:[#allocation22_spill] sm:$0xff] }
 0x12f   : > { %v1476_v33 = vsel %vm640_vm4, %v1444_v8, %v1460_v19  ;;  %v1477_v56 = vsel %vm640_vm4, %v1445_v46, %v1461_v51  ;;  %v1478_v3 = vsel %vm640_vm4, %v1446_v21, %v1462_v48  ;;  %v1479_v9 = vsel %vm640_vm4, %v1447_v11, %v1463_v36  ;;  %v5645_v51 = vld [vmem:[#allocation25_spill] sm:$0xff] }
 0x130   : > { %v1481_v53 = vsel %vm640_vm4, %v1449_v28, %v1465_v34  ;;  %v5642_v0 = vrot.slane %v5641_v50, 2  ;;  %v5644_v24 = vrot.slane %v5643_v59, 2  ;;  %v5646_v15 = vrot.slane %v5645_v51, 2 }
 0x131   : > { %v5647_v36 = vrot.slane %v5540_v55, 2  ;;  %v1486_v50 = vsel %vm640_vm4, %v1422_v27, %v1438_v45  ;;  %v1491_v55 = vsel %vm640_vm4, %v1427_v5, %v1443_v49  ;;  %v5649_v27 = vld [vmem:[#allocation18_spill] sm:$0xff] }
 0x132   : > { %v1482_v12 = vsel %vm640_vm4, %v5642_v0, %v1434_v18  ;;  %v1483_v19 = vsel %vm640_vm4, %v5644_v24, %v1435_v39  ;;  %v1484_v48 = vsel %vm640_vm4, %v5646_v15, %v1436_v47  ;;  %v1487_v18 = vsel %vm640_vm4, %v1423_v62, %v1439_v31 }
 0x133   : > { %v1485_v34 = vsel %vm640_vm4, %v5647_v36, %v1437_v17  ;;  %v1488_v0 = vsel %vm640_vm4, %v1424_v43, %v1440_v26  ;;  %v1489_v39 = vsel %vm640_vm4, %v1425_v40, %v1441_v63  ;;  %v1490_v15 = vsel %vm640_vm4, %v1426_v37, %v1442_v10  ;;  %v5648_v17 = vld [vmem:[#allocation9_spill] sm:$0xff] }
 0x134   : > { %v1492_v47 = vsel %vm640_vm4, %v1428_v14, %v1444_v8  ;;  %v1501_v45 = vrot.slane %v5649_v27, %v5648_v17  ;;  %v1493_v62 = vsel %vm640_vm4, %v1429_v4, %v1445_v46  ;;  %v1494_v43 = vsel %vm640_vm4, %v1430_v13, %v1446_v21  ;;  %v5659_v27 = vld [vmem:[#allocation67_spill] sm:$0xff] }
 0x135   : > { %v1495_v40 = vsel %vm640_vm4, %v1431_v20, %v1447_v11  ;;  %v1497_v37 = vsel %vm640_vm4, %v1433_v54, %v1449_v28 }
 0x136   : > { %v1502_v31 = vmul.f32 %v1501_v45, %v1482_v12  ;;  %v1503_v5 = vmul.f32 %v1501_v45, %v1466_v38  ;;  %v1504_v26 = vmul.f32 %v1501_v45, %v1483_v19  ;;  %v1505_v63 = vmul.f32 %v1501_v45, %v1467_v61 }
 0x137   : > { %v1506_v14 = vmul.f32 %v1501_v45, %v1484_v48  ;;  %v1507_v10 = vmul.f32 %v1501_v45, %v1468_v23  ;;  %v1508_v49 = vmul.f32 %v1501_v45, %v1485_v34  ;;  %v1509_v8 = vmul.f32 %v1501_v45, %v1469_v42 }
 0x138   : > { %v1510_v59 = vmul.f32 %v1501_v45, %v1486_v50  ;;  %v1511_v24 = vmul.f32 %v1501_v45, %v1470_v6  ;;  %v1512_v4 = vmul.f32 %v1501_v45, %v1487_v18  ;;  %v1513_v46 = vmul.f32 %v1501_v45, %v1471_v22  ;;  %v5650_v6 = vld [vmem:[#allocation16_spill] sm:$0xff] }
 0x139   : > { %v1514_v51 = vmul.f32 %v1501_v45, %v1488_v0  ;;  %v1515_v13 = vmul.f32 %v1501_v45, %v1472_v30  ;;  %v1516_v21 = vmul.f32 %v1501_v45, %v1489_v39  ;;  %v1517_v20 = vmul.f32 %v1501_v45, %v1473_v57  ;;  %v5651_v30 = vld [vmem:[#allocation17_spill] sm:$0xff]  ;;  %v5656_v0 = vld [vmem:[#allocation110_spill] sm:$0xff] }
 0x13a   : > { %v1518_v11 = vmul.f32 %v1501_v45, %v1490_v15  ;;  %v1519_v32 = vmul.f32 %v1501_v45, %v1474_v41  ;;  %v1520_v54 = vmul.f32 %v1501_v45, %v1491_v55  ;;  %v1521_v28 = vmul.f32 %v1501_v45, %v1475_v16  ;;  %v5657_v15 = vld [vmem:[#allocation66_spill] sm:$0xff] }
 0x13b   : > { %v1522_v38 = vmul.f32 %v1501_v45, %v1492_v47  ;;  %v1523_v12 = vmul.f32 %v1501_v45, %v1476_v33  ;;  %v1524_v61 = vmul.f32 %v1501_v45, %v1493_v62  ;;  %v1525_v19 = vmul.f32 %v1501_v45, %v1477_v56  ;;  %v5658_v47 = vld [vmem:[#allocation111_spill] sm:$0xff]  ;;  %v5660_v62 = vld [vmem:[#allocation112_spill] sm:$0xff] }
 0x13c   : > { %v1526_v23 = vmul.f32 %v1501_v45, %v1494_v43  ;;  %v1527_v48 = vmul.f32 %v1501_v45, %v1478_v3  ;;  %v1528_v42 = vmul.f32 %v1501_v45, %v1495_v40  ;;  %v1529_v36 = vmul.f32 %v1501_v45, %v1479_v9  ;;  %v5661_v40 = vld [vmem:[#allocation68_spill] sm:$0xff] }
 0x13d   : > { %v1530_v22 = vmul.f32 %v1501_v45, %v5650_v6  ;;  %v1531_v57 = vmul.f32 %v1501_v45, %v5651_v30  ;;  %v1532_v41 = vmul.f32 %v1501_v45, %v1497_v37  ;;  %v1533_v16 = vmul.f32 %v1501_v45, %v1481_v53 }
 0x13e   : > { %v4380_v33 = vadd.f32 %v1502_v31, %v4164_v44  ;;  %v4383_v56 = vadd.f32 %v1503_v5, %v4167_v25  ;;  %v4386_v3 = vadd.f32 %v1504_v26, %v4170_v60  ;;  %v4389_v9 = vadd.f32 %v1505_v63, %v4173_v52  ;;  %v5662_v31 = vld [vmem:[#allocation113_spill] sm:$0xff] }
 0x13f   : > { %v4392_v34 = vadd.f32 %v1506_v14, %v4176_v35  ;;  %v4395_v50 = vadd.f32 %v1507_v10, %v4179_v7  ;;  %v4398_v44 = vadd.f32 %v1508_v49, %v4182_v2  ;;  %v4401_v25 = vadd.f32 %v1509_v8, %v4185_v29  ;;  %v5652_v35 = vld [vmem:[#allocation108_spill] sm:$0xff]  ;;  %v5654_v2 = vld [vmem:[#allocation109_spill] sm:$0xff]  ;;  %v5664_v14 = vld [vmem:[#allocation114_spill] sm:$0xff] }
 0x140   : > { %v4404_v60 = vadd.f32 %v1510_v59, %v4188_v1  ;;  %v4407_v52 = vadd.f32 %v1511_v24, %v4191_v58  ;;  %v4410_v53 = vadd.f32 %v1512_v4, %v5652_v35  ;;  %v5653_v7 = vld [vmem:[#allocation64_spill] sm:$0xff]  ;;  %1566 = vst.msk [vmem:[%s4375_s22] sm:$0xff] %vm208_vm0, %v4380_v33  ;;  %1567 = vst.msk [vmem:[%s4375_s22 + $0x8] sm:$0xff] %vm208_vm0, %v4383_v56  ;;  %v5655_v1 = vld [vmem:[#allocation65_spill] sm:$0xff]  ;;  %v1603_v6 = vsel %vm208_vm0, %v4389_v9, 0.0 }
 0x141   : > { %v4413_v18 = vadd.f32 %v1513_v46, %v5653_v7  ;;  %1568 = vst.msk [vmem:[%s4375_s22 + $0x10] sm:$0xff] %vm208_vm0, %v4386_v3  ;;  %1569 = vst.msk [vmem:[%s4375_s22 + $0x18] sm:$0xff] %vm208_vm0, %v4389_v9  ;;  %v4428_v29 = vadd.f32 %v1514_v51, %v5654_v2  ;;  %v4431_v58 = vadd.f32 %v1515_v13, %v5655_v1  ;;  %v5663_v26 = vld [vmem:[#allocation69_spill] sm:$0xff]  ;;  %v5665_v49 = vld [vmem:[#allocation70_spill] sm:$0xff]  ;;  %v1605_v30 = vsel %vm208_vm0, %v4392_v34, 0.0 }
 0x142   : > { %v4434_v39 = vadd.f32 %v1516_v21, %v5656_v0  ;;  %v4437_v55 = vadd.f32 %v1517_v20, %v5657_v15  ;;  %1570 = vst.msk [vmem:[%s4375_s22 + $0x20] sm:$0xff] %vm208_vm0, %v4392_v34  ;;  %1571 = vst.msk [vmem:[%s4375_s22 + $0x28] sm:$0xff] %vm208_vm0, %v4395_v50  ;;  %v4452_v17 = vadd.f32 %v1518_v11, %v5658_v47  ;;  %v5666_v59 = vld [vmem:[#allocation50_spill] sm:$0xff]  ;;  %v5667_v4 = vld [vmem:[#allocation51_spill] sm:$0xff]  ;;  %v1609_v35 = vsel %vm208_vm0, %v4398_v44, 0.0 }
 0x143   : > { %1572 = vst.msk [vmem:[%s4375_s22 + $0x30] sm:$0xff] %vm208_vm0, %v4398_v44  ;;  %1573 = vst.msk [vmem:[%s4375_s22 + $0x38] sm:$0xff] %vm208_vm0, %v4401_v25  ;;  %v4455_v45 = vadd.f32 %v1519_v32, %v5659_v27  ;;  %v4458_v43 = vadd.f32 %v1520_v54, %v5660_v62  ;;  %v4461_v37 = vadd.f32 %v1521_v28, %v5661_v40  ;;  %v5668_v51 = vld [vmem:[#allocation52_spill] sm:$0xff]  ;;  %v5669_v21 = vld [vmem:[#allocation53_spill] sm:$0xff]  ;;  %v1611_v2 = vsel %vm208_vm0, %v4401_v25, 0.0 }
 0x144   : > { %1574 = vst.msk [vmem:[%s4375_s22 + $0x40] sm:$0xff] %vm208_vm0, %v4404_v60  ;;  %1575 = vst.msk [vmem:[%s4375_s22 + $0x48] sm:$0xff] %vm208_vm0, %v4407_v52  ;;  %v4476_v5 = vadd.f32 %v1522_v38, %v5662_v31  ;;  %v4479_v63 = vadd.f32 %v1523_v12, %v5663_v26  ;;  %v4482_v10 = vadd.f32 %v1524_v61, %v5664_v14  ;;  %v5670_v11 = vld [vmem:[#allocation7_spill] sm:$0xff]  ;;  %v5671_v54 = vld [vmem:[#allocation54_spill] sm:$0xff]  ;;  %v1613_v0 = vsel %vm208_vm0, %v4404_v60, 0.0 }
 0x145   : > { %1576 = vst.msk [vmem:[%s4375_s22 + $0x50] sm:$0xff] %vm208_vm0, %v4410_v53  ;;  %1577 = vst.msk [vmem:[%s4375_s22 + $0x58] sm:$0xff] %vm208_vm0, %v4413_v18  ;;  %v4485_v8 = vadd.f32 %v1525_v19, %v5665_v49  ;;  %v4500_v24 = vadd.f32 %v1526_v23, %v5666_v59  ;;  %v4503_v46 = vadd.f32 %v1527_v48, %v5667_v4  ;;  %v5672_v38 = vld [vmem:[#allocation55_spill] sm:$0xff]  ;;  %v1598_v23 = vsel %vm208_vm0, %v4380_v33, 0.0 }
 0x146   : > { %1578 = vst.msk [vmem:[%s4375_s22 + $0x60] sm:$0xff] %vm208_vm0, %v4428_v29  ;;  %1579 = vst.msk [vmem:[%s4375_s22 + $0x68] sm:$0xff] %vm208_vm0, %v4431_v58  ;;  %v4506_v13 = vadd.f32 %v1528_v42, %v5668_v51  ;;  %v4509_v20 = vadd.f32 %v1529_v36, %v5669_v21  ;;  %v4524_v32 = vadd.f32 %v1530_v22, %v5670_v11  ;;  %v5673_v61 = vld [vmem:[#allocation11_spill] sm:$0xff]  ;;  %v1599_v48 = vsel %vm208_vm0, %v4383_v56, 0.0 }
 0x147   : > { %1580 = vst.msk [vmem:[%s4375_s22 + $0x70] sm:$0xff] %vm208_vm0, %v4434_v39  ;;  %1581 = vst.msk [vmem:[%s4375_s22 + $0x78] sm:$0xff] %vm208_vm0, %v4437_v55  ;;  %v4527_v28 = vadd.f32 %v1531_v57, %v5671_v54  ;;  %v4530_v12 = vadd.f32 %v1532_v41, %v5672_v38  ;;  %v4533_v19 = vadd.f32 %v1533_v16, %v5673_v61  ;;  %v1601_v42 = vsel %vm208_vm0, %v4386_v3, 0.0  ;;  %v4598_v14 = vld [vmem:[%s4786_s2] ss:$0 sm:$0xff] }
 0x148   : > { %1582 = vst.msk [vmem:[%s4375_s22 + $0x80] sm:$0xff] %vm208_vm0, %v4452_v17  ;;  %1583 = vst.msk [vmem:[%s4375_s22 + $0x88] sm:$0xff] %vm208_vm0, %v4455_v45  ;;  %v1600_v36 = vadd.f32 %v1599_v48, %v1598_v23  ;;  %v1607_v41 = vsel %vm208_vm0, %v4395_v50, 0.0  ;;  %v1615_v47 = vsel %vm208_vm0, %v4407_v52, 0.0  ;;  %v1617_v62 = vsel %vm208_vm0, %v4410_v53, 0.0 }
 0x149   : > { %1584 = vst.msk [vmem:[%s4375_s22 + $0x90] sm:$0xff] %vm208_vm0, %v4458_v43  ;;  %1585 = vst.msk [vmem:[%s4375_s22 + $0x98] sm:$0xff] %vm208_vm0, %v4461_v37  ;;  %v1619_v31 = vsel %vm208_vm0, %v4413_v18, 0.0  ;;  %v1668_v49 = vsub.f32 %v4380_v33, %v4598_v14  ;;  %v1669_v59 = vsub.f32 %v4383_v56, %v4598_v14  ;;  %v1621_v4 = vsel %vm208_vm0, %v4428_v29, 0.0 }
 0x14a   : > { %1586 = vst.msk [vmem:[%s4375_s22 + $0xa0] sm:$0xff] %vm208_vm0, %v4476_v5  ;;  %1587 = vst.msk [vmem:[%s4375_s22 + $0xa8] sm:$0xff] %vm208_vm0, %v4479_v63  ;;  %v1602_v22 = vadd.f32 %v1601_v42, %v1600_v36  ;;  %v1670_v51 = vsub.f32 %v4386_v3, %v4598_v14  ;;  %v1671_v11 = vsub.f32 %v4389_v9, %v4598_v14  ;;  %v1623_v54 = vsel %vm208_vm0, %v4431_v58, 0.0 }
 0x14b   : > { %1588 = vst.msk [vmem:[%s4375_s22 + $0xb0] sm:$0xff] %vm208_vm0, %v4482_v10  ;;  %1589 = vst.msk [vmem:[%s4375_s22 + $0xb8] sm:$0xff] %vm208_vm0, %v4485_v8  ;;  %v1672_v33 = vsub.f32 %v4392_v34, %v4598_v14  ;;  %v1700_v61 = vmul.f32 %v1668_v49, %v1668_v49  ;;  %v1701_v23 = vmul.f32 %v1669_v59, %v1669_v59  ;;  %v1625_v56 = vsel %vm208_vm0, %v4434_v39, 0.0 }
 0x14c   : > { %1590 = vst.msk [vmem:[%s4375_s22 + $0xc0] sm:$0xff] %vm208_vm0, %v4500_v24  ;;  %1591 = vst.msk [vmem:[%s4375_s22 + $0xc8] sm:$0xff] %vm208_vm0, %v4503_v46  ;;  %v1604_v57 = vadd.f32 %v1603_v6, %v1602_v22  ;;  %v1702_v48 = vmul.f32 %v1670_v51, %v1670_v51  ;;  %v1673_v3 = vsub.f32 %v4395_v50, %v4598_v14  ;;  %v1627_v9 = vsel %vm208_vm0, %v4437_v55, 0.0 }
 0x14d   : > { %1592 = vst.msk [vmem:[%s4375_s22 + $0xd0] sm:$0xff] %vm208_vm0, %v4506_v13  ;;  %1593 = vst.msk [vmem:[%s4375_s22 + $0xd8] sm:$0xff] %vm208_vm0, %v4509_v20  ;;  %v1703_v36 = vmul.f32 %v1671_v11, %v1671_v11  ;;  %v1674_v6 = vsub.f32 %v4398_v44, %v4598_v14  ;;  %v1732_v34 = vsel %vm208_vm0, %v1700_v61, 0.0  ;;  %v1631_v44 = vsel %vm208_vm0, %v4455_v45, 0.0 }
 0x14e   : > { %1594 = vst.msk [vmem:[%s4375_s22 + $0xe0] sm:$0xff] %vm208_vm0, %v4524_v32  ;;  %1595 = vst.msk [vmem:[%s4375_s22 + $0xe8] sm:$0xff] %vm208_vm0, %v4527_v28  ;;  %v1606_v16 = vadd.f32 %v1605_v30, %v1604_v57  ;;  %v1704_v30 = vmul.f32 %v1672_v33, %v1672_v33  ;;  %v1733_v57 = vsel %vm208_vm0, %v1701_v23, 0.0 }
 0x14f   : > { %1596 = vst.msk [vmem:[%s4375_s22 + $0xf0] sm:$0xff] %vm208_vm0, %v4530_v12  ;;  %1597 = vst.msk [vmem:[%s4375_s22 + $0xf8] sm:$0xff] %vm208_vm0, %v4533_v19 }
 0x150   : > { %v1608_v7 = vadd.f32 %v1607_v41, %v1606_v16  ;;  %v1629_v41 = vsel %vm208_vm0, %v4452_v17, 0.0  ;;  %v1734_v16 = vadd.f32 %v1733_v57, %v1732_v34 }
 0x152   : > { %v1610_v1 = vadd.f32 %v1609_v35, %v1608_v7  ;;  %v1735_v35 = vsel %vm208_vm0, %v1702_v48, 0.0  ;;  %v1675_v7 = vsub.f32 %v4401_v25, %v4598_v14  ;;  %v1677_v25 = vsub.f32 %v4407_v52, %v4598_v14 }
 0x153   : > { %v1679_v52 = vsub.f32 %v4413_v18, %v4598_v14  ;;  %v1639_v48 = vsel %vm208_vm0, %v4479_v63, 0.0  ;;  %v1681_v18 = vsub.f32 %v4431_v58, %v4598_v14  ;;  %v1683_v58 = vsub.f32 %v4437_v55, %v4598_v14 }
 0x154   : > { %v1612_v15 = vadd.f32 %v1611_v2, %v1610_v1  ;;  %v1705_v2 = vmul.f32 %v1673_v3, %v1673_v3  ;;  %v1737_v1 = vsel %vm208_vm0, %v1703_v36, 0.0  ;;  %v1707_v49 = vmul.f32 %v1675_v7, %v1675_v7 }
 0x155   : > { %v1709_v23 = vmul.f32 %v1677_v25, %v1677_v25  ;;  %v1711_v34 = vmul.f32 %v1679_v52, %v1679_v52  ;;  %v1685_v55 = vsub.f32 %v4455_v45, %v4598_v14  ;;  %v1687_v45 = vsub.f32 %v4461_v37, %v4598_v14 }
 0x156   : > { %v1614_v27 = vadd.f32 %v1613_v0, %v1612_v15  ;;  %v1736_v0 = vadd.f32 %v1735_v35, %v1734_v16  ;;  %v1741_v59 = vsel %vm208_vm0, %v1705_v2, 0.0  ;;  %v1645_v2 = vsel %vm208_vm0, %v4500_v24, 0.0 }
 0x157   : > { %v1749_v57 = vsel %vm208_vm0, %v1709_v23, 0.0  ;;  %v1717_v52 = vmul.f32 %v1685_v55, %v1685_v55 }
 0x158   : > { %v1616_v40 = vadd.f32 %v1615_v47, %v1614_v27  ;;  %v1676_v47 = vsub.f32 %v4404_v60, %v4598_v14  ;;  %v1706_v27 = vmul.f32 %v1674_v6, %v1674_v6  ;;  %v1678_v60 = vsub.f32 %v4410_v53, %v4598_v14 }
 0x159   : > { %v1680_v53 = vsub.f32 %v4428_v29, %v4598_v14  ;;  %v1641_v6 = vsel %vm208_vm0, %v4482_v10, 0.0  ;;  %v1682_v29 = vsub.f32 %v4434_v39, %v4598_v14  ;;  %v1684_v39 = vsub.f32 %v4452_v17, %v4598_v14 }
 0x15a   : > { %v1618_v26 = vadd.f32 %v1617_v62, %v1616_v40  ;;  %v1739_v62 = vsel %vm208_vm0, %v1704_v30, 0.0  ;;  %v1633_v40 = vsel %vm208_vm0, %v4458_v43, 0.0  ;;  %v1708_v11 = vmul.f32 %v1676_v47, %v1676_v47 }
 0x15b   : > { %v1710_v36 = vmul.f32 %v1678_v60, %v1678_v60  ;;  %v1647_v47 = vsel %vm208_vm0, %v4503_v46, 0.0  ;;  %v1686_v17 = vsub.f32 %v4458_v43, %v4598_v14  ;;  %v1688_v43 = vsub.f32 %v4476_v5, %v4598_v14 }
 0x15c   : > { %v1620_v21 = vadd.f32 %v1619_v31, %v1618_v26  ;;  %v1738_v31 = vadd.f32 %v1737_v1, %v1736_v0  ;;  %v1713_v0 = vmul.f32 %v1681_v18, %v1681_v18  ;;  %v1659_v18 = vsel %vm208_vm0, %v4533_v19, 0.0 }
 0x15d   : > { %v1751_v7 = vsel %vm208_vm0, %v1710_v36, 0.0  ;;  %v1657_v36 = vsel %vm208_vm0, %v4530_v12, 0.0 }
 0x15e   : > { %v1622_v38 = vadd.f32 %v1621_v4, %v1620_v21  ;;  %v1635_v4 = vsel %vm208_vm0, %v4461_v37, 0.0  ;;  %v1740_v51 = vadd.f32 %v1739_v62, %v1738_v31  ;;  %v1689_v37 = vsub.f32 %v4479_v63, %v4598_v14 }
 0x160   : > { %v1624_v42 = vadd.f32 %v1623_v54, %v1622_v38  ;;  %v1743_v54 = vsel %vm208_vm0, %v1706_v27, 0.0  ;;  %v1637_v38 = vsel %vm208_vm0, %v4476_v5, 0.0  ;;  %v1742_v33 = vadd.f32 %v1741_v59, %v1740_v51 }
 0x161   : > { %v1715_v59 = vmul.f32 %v1683_v58, %v1683_v58  ;;  %v1651_v51 = vsel %vm208_vm0, %v4509_v20, 0.0  ;;  %v1690_v5 = vsub.f32 %v4482_v10, %v4598_v14  ;;  %v1721_v63 = vmul.f32 %v1689_v37, %v1689_v37 }
 0x162   : > { %v1626_v22 = vadd.f32 %v1625_v56, %v1624_v42  ;;  %v1745_v56 = vsel %vm208_vm0, %v1707_v49, 0.0  ;;  %v1744_v42 = vadd.f32 %v1743_v54, %v1742_v33  ;;  %v1693_v10 = vsub.f32 %v4503_v46, %v4598_v14 }
 0x163   : > { %v1761_v23 = vsel %vm208_vm0, %v1715_v59, 0.0  ;;  %v1696_v46 = vsub.f32 %v4524_v32, %v4598_v14 }
 0x164   : > { %v1628_v50 = vadd.f32 %v1627_v9, %v1626_v22  ;;  %v1747_v9 = vsel %vm208_vm0, %v1708_v11, 0.0  ;;  %v1746_v22 = vadd.f32 %v1745_v56, %v1744_v42  ;;  %v1716_v11 = vmul.f32 %v1684_v39, %v1684_v39 }
 0x165   : > { %v1655_v56 = vsel %vm208_vm0, %v4527_v28, 0.0 }
 0x166   : > { %v1630_v15 = vadd.f32 %v1629_v41, %v1628_v50  ;;  %v1643_v41 = vsel %vm208_vm0, %v4485_v8, 0.0  ;;  %v1748_v16 = vadd.f32 %v1747_v9, %v1746_v22  ;;  %v1712_v50 = vmul.f32 %v1680_v53, %v1680_v53 }
 0x167   : > { %v1763_v53 = vsel %vm208_vm0, %v1716_v11, 0.0  ;;  %v1719_v22 = vmul.f32 %v1687_v45, %v1687_v45 }
 0x168   : > { %v1632_v26 = vadd.f32 %v1631_v44, %v1630_v15  ;;  %v1750_v1 = vadd.f32 %v1749_v57, %v1748_v16  ;;  %v1753_v15 = vsel %vm208_vm0, %v1711_v34, 0.0  ;;  %v1755_v31 = vsel %vm208_vm0, %v1712_v50, 0.0 }
 0x169   : > { %v1691_v50 = vsub.f32 %v4485_v8, %v4598_v14  ;;  %v1694_v8 = vsub.f32 %v4506_v13, %v4598_v14 }
 0x16a   : > { %v1634_v21 = vadd.f32 %v1633_v40, %v1632_v26  ;;  %v1752_v27 = vadd.f32 %v1751_v7, %v1750_v1  ;;  %v1714_v40 = vmul.f32 %v1682_v29, %v1682_v29  ;;  %v1649_v26 = vsel %vm208_vm0, %v4506_v13, 0.0 }
 0x16b   : > { %v1769_v7 = vsel %vm208_vm0, %v1719_v22, 0.0  ;;  %v1692_v1 = vsub.f32 %v4500_v24, %v4598_v14  ;;  %v1695_v24 = vsub.f32 %v4509_v20, %v4598_v14  ;;  %v1697_v13 = vsub.f32 %v4527_v28, %v4598_v14 }
 0x16c   : > { %v1636_v61 = vadd.f32 %v1635_v4, %v1634_v21  ;;  %v1754_v25 = vadd.f32 %v1753_v15, %v1752_v27  ;;  %v1757_v4 = vsel %vm208_vm0, %v1713_v0, 0.0  ;;  %v1759_v54 = vsel %vm208_vm0, %v1714_v40, 0.0 }
 0x16d   : > { %v1723_v15 = vmul.f32 %v1691_v50, %v1691_v50  ;;  %v1698_v20 = vsub.f32 %v4530_v12, %v4598_v14 }
 0x16e   : > { %v1638_v3 = vadd.f32 %v1637_v38, %v1636_v61  ;;  %v1756_v21 = vadd.f32 %v1755_v31, %v1754_v25  ;;  %v1653_v38 = vsel %vm208_vm0, %v4524_v32, 0.0  ;;  %v1725_v31 = vmul.f32 %v1693_v10, %v1693_v10 }
 0x16f   : > { %v1699_v32 = vsub.f32 %v4533_v19, %v4598_v14 }
 0x170   : > { %v1640_v30 = vadd.f32 %v1639_v48, %v1638_v3  ;;  %v1758_v33 = vadd.f32 %v1757_v4, %v1756_v21  ;;  %v1718_v3 = vmul.f32 %v1686_v17, %v1686_v17  ;;  %v1727_v4 = vmul.f32 %v1695_v24, %v1695_v24 }
 0x172   : > { %v1642_v35 = vadd.f32 %v1641_v6, %v1640_v30  ;;  %v1760_v48 = vadd.f32 %v1759_v54, %v1758_v33  ;;  %v1765_v30 = vsel %vm208_vm0, %v1717_v52, 0.0  ;;  %v1767_v16 = vsel %vm208_vm0, %v1718_v3, 0.0 }
 0x173   : > { %v1729_v54 = vmul.f32 %v1697_v13, %v1697_v13  ;;  %v1731_v52 = vmul.f32 %v1699_v32, %v1699_v32 }
 0x174   : > { %v1644_v44 = vadd.f32 %v1643_v41, %v1642_v35  ;;  %v1762_v9 = vadd.f32 %v1761_v23, %v1760_v48  ;;  %v1720_v41 = vmul.f32 %v1688_v43, %v1688_v43 }
 0x175   : > { %v1789_v23 = vsel %vm208_vm0, %v1729_v54, 0.0 }
 0x176   : > { %v1646_v62 = vadd.f32 %v1645_v2, %v1644_v44  ;;  %v1764_v34 = vadd.f32 %v1763_v53, %v1762_v9  ;;  %v1722_v44 = vmul.f32 %v1690_v5, %v1690_v5  ;;  %v1771_v58 = vsel %vm208_vm0, %v1720_v41, 0.0 }
 0x178   : > { %v1648_v49 = vadd.f32 %v1647_v47, %v1646_v62  ;;  %v1766_v35 = vadd.f32 %v1765_v30, %v1764_v34  ;;  %v1773_v47 = vsel %vm208_vm0, %v1721_v63, 0.0  ;;  %v1724_v62 = vmul.f32 %v1692_v1, %v1692_v1 }
 0x179   : > { %v1775_v39 = vsel %vm208_vm0, %v1722_v44, 0.0 }
 0x17a   : > { %v1650_v60 = vadd.f32 %v1649_v26, %v1648_v49  ;;  %v1768_v2 = vadd.f32 %v1767_v16, %v1766_v35  ;;  %v1777_v26 = vsel %vm208_vm0, %v1723_v15, 0.0  ;;  %v1726_v49 = vmul.f32 %v1694_v8, %v1694_v8 }
 0x17b   : > { %v1779_v55 = vsel %vm208_vm0, %v1724_v62, 0.0 }
 0x17c   : > { %v1652_v61 = vadd.f32 %v1651_v51, %v1650_v60  ;;  %v1770_v0 = vadd.f32 %v1769_v7, %v1768_v2  ;;  %v1781_v51 = vsel %vm208_vm0, %v1725_v31, 0.0  ;;  %v1728_v60 = vmul.f32 %v1696_v46, %v1696_v46 }
 0x17d   : > { %v1783_v17 = vsel %vm208_vm0, %v1726_v49, 0.0 }
 0x17e   : > { %v1654_v42 = vadd.f32 %v1653_v38, %v1652_v61  ;;  %v1772_v27 = vadd.f32 %v1771_v58, %v1770_v0  ;;  %v1785_v38 = vsel %vm208_vm0, %v1727_v4, 0.0  ;;  %v1730_v61 = vmul.f32 %v1698_v20, %v1698_v20 }
 0x17f   : > { %v1787_v28 = vsel %vm208_vm0, %v1728_v60, 0.0 }
 0x180   : > { %v1656_v6 = vadd.f32 %v1655_v56, %v1654_v42  ;;  %v1774_v40 = vadd.f32 %v1773_v47, %v1772_v27  ;;  %v1791_v12 = vsel %vm208_vm0, %v1730_v61, 0.0  ;;  %v1793_v42 = vsel %vm208_vm0, %v1731_v52, 0.0 }
 0x182   : > { %v1658_v57 = vadd.f32 %v1657_v36, %v1656_v6  ;;  %v1776_v25 = vadd.f32 %v1775_v39, %v1774_v40 }
 0x184   : > { %v1660_v29 = vadd.f32 %v1659_v18, %v1658_v57  ;;  %v1778_v59 = vadd.f32 %v1777_v26, %v1776_v25 }
 0x186   : > { %v1780_v21 = vadd.f32 %v1779_v55, %v1778_v59  ;;  %v1661_v37 = vrot.slane %v1660_v29, 4 }
 0x188   : > { %v1782_v11 = vadd.f32 %v1781_v51, %v1780_v21  ;;  %v1662_v22 = vadd.f32 %v1661_v37, %v1660_v29 }
 0x18a   : > { %v1784_v33 = vadd.f32 %v1783_v17, %v1782_v11  ;;  %v1663_v30 = vrot.slane %v1662_v22, 2 }
 0x18c   : > { %v1786_v45 = vadd.f32 %v1785_v38, %v1784_v33  ;;  %v1664_v18 = vadd.f32 %v1663_v30, %v1662_v22 }
 0x18e   : > { %v1788_v56 = vadd.f32 %v1787_v28, %v1786_v45  ;;  %v1665_v34 = vrot.slane %v1664_v18, 1 }
 0x190   : > { %v1790_v48 = vadd.f32 %v1789_v23, %v1788_v56  ;;  %v1666_v57 = vadd.f32 %v1665_v34, %v1664_v18 }
 0x192   : > { %v1792_v43 = vadd.f32 %v1791_v12, %v1790_v48 }
 0x194   : > { %v1794_v19 = vadd.f32 %v1793_v42, %v1792_v43 }
 0x196   : > { %v1795_v14 = vrot.slane %v1794_v19, 4 }
 0x198   : > { %v1796_v3 = vadd.f32 %v1795_v14, %v1794_v19 }
 0x19a   : > { %v1797_v53 = vrot.slane %v1796_v3, 2 }
 0x19c   : > { %v1798_v36 = vadd.f32 %v1797_v53, %v1796_v3 }
 0x19e   : > { %v1799_v9 = vrot.slane %v1798_v36, 1 }
 0x1a0   : > { %v1800_v6 = vadd.f32 %v1799_v9, %v1798_v36 }
 0x1a2   : > { %1803 = vrot.lane.b32.xlu0 %v1800_v6, %s2031_s28 }
 0x214   : > { %v1804_v5 = vpop.permute.xlu0 %1803 }
 0x215   : > { %v1806_v41 = vsel %vm208_vm0, %v1666_v57, %v1804_v5 }
 0x216   : > { %1808 = vst.msk [vmem:[%s197_s5] sm:$0x1] %vm1807_vm5, %v1806_v41 }
 0x217   : > { %1979 = shalt.err (!%p1976_p3)
}
 0x218   : > { %s1980_s14 = scalar_lea.hbm %s4741_s9, 16  ;;  %s1984_s23 = scalar_lea.hbm %s4788_s4, 32 }
 0x219   : > { %p1981_p4 = scmp.ne.s32.totalorder %s4741_s9, %s1980_s14  ;;  %p1985_p9 = scmp.lt.u32.totalorder %s4741_s9, %s4788_s4 }
 0x21a   : > { %p1986_p10 = scmp.lt.u32.totalorder %s1984_s23, %s1980_s14  ;;  %p1988_p12 = scmp.lt.u32.totalorder %s1980_s14, %s4741_s9 }
 0x21b   : > { %p1982_p7 = pnand %p1981_p4, %p2096_p5 }
 0x21c   : > { %p1987_p11 = por %p1986_p10, %p1985_p9 }
 0x21d   : > { %p1983_p8 = pneg %p1982_p7 }
 0x21e   : > { %p1989_p13 = por %p1988_p12, %p1987_p11 }
 0x220   : > { %p1990_p0 = pnand %p1989_p13, %p1983_p8 }
 0x222   : > { %1993 = shalt.err (!%p1990_p0)
}
 0x223   : > { %1924 = dma.vmem_to_hbm [thread:$0]  (%p2096_p5), %s4743_s6, 16, %s4741_s9, %s1815_s10  }
 0x224 PF: > { %p1930_p1 = scmp.ge.s32.totalorder %s2028_s18, 2  ;;  %s1850_s29 = sand.u32 1, %s2016_s15  }
 0x225   : > { %s1851_s30 = scalar_lea.sflag [#allocation4], %s1850_s29 }
 0x226   : > { %p1927_p2 = pnand %p1930_p1, %p2100_p6 }
 0x228   : > { %2011 = dma.done.wait (!%p1927_p2), %s1851_s30, 16  }
 0x229   : > { %2013 = vsyncadd (!%p1927_p2), %s1851_s30, 4294967280  ;;  %p15_p3 = scmp.ge.s32.totalorder %s2083_s21, 4   ;;  %s5674_s15 = smov %s2020_s16 }
 0x22a   : > { %s5675_s16 = smov %s2024_s17  ;;  %s5676_s17 = smov %s2094_s24 }
 0x22b   : > { %s5677_s18 = smov %s2083_s21  ;;  %17 = sbr.rel (!%p15_p3) target bundleno = 3 (0x3), region = 82 }
 0x232   :  { %1855 = vsyncpa [#allocation4], 1 }
 0x233   :  { %1857 = vsyncpa [#allocation4 + $0x1], 1 }

</bundles_post_ra>
